<compile_context>
chip_gen: v6e
topology: v6e:2x2x1
jax: 0.10.0
libtpu: 0.0.40
codegen_flags: <defaults>
</compile_context>

<pallas_src>
import functools

import jax
import jax.numpy as jnp
from jax.experimental import pallas as pl
from jax.experimental.pallas import tpu as pltpu

K = 5            # conv kernel size for both conv layers
CIN_PAD = 8      # conv input channels padded to one aligned sublane tile
NCLASS_PAD = 128 # lane-dense softmax width (10 real classes + padding)


def _geometry(h, w, k=K):
    """Static lane-offset bookkeeping for the wide-row (pitch-W) conv/pool layout.

    Validity chain (all offsets are static):
      conv1 wide row r = oh*W + wc is exact for wc <= W-K (no row wrap);
      pool1 value (h2, w2) = max of conv1 rows {q, q+1, q+W, q+W+1}, q = 2*W*h2 + 2*w2,
        i.e. the pooled map keeps pitch 2W / stride 2 and is never decimated;
      conv2 tap (kh, kw) therefore shifts by 2*W*kh + 2*kw and its wide output row
        (oh2, wc) sits at lane 2*W*oh2 + 2*wc;
      pool2 value (h3, w3) sits at lane 4*W*h3 + 4*w3 and is gathered by `sel`.
    """
    oh1, ow1 = h - k + 1, w - k + 1            # conv1 valid output (28, 28)
    ph1, pw1 = oh1 // 2, ow1 // 2              # pool1 output       (14, 14)
    oh2, ow2 = ph1 - k + 1, pw1 - k + 1        # conv2 valid output (10, 10)
    ph2, pw2 = oh2 // 2, ow2 // 2              # pool2 output       (5, 5)
    l2 = 4 * w * (ph2 - 1) + 4 * (pw2 - 1) + 1  # pooled-2 lane extent    (529)
    n2 = l2 + 2 * w + 2                         # conv-2 wide-row length  (595)
    l1 = n2 + 2 * w * (k - 1) + 2 * (k - 1)     # pooled-1 lane extent    (859)
    n1 = l1 + w + 1                             # conv-1 wide-row length  (892)
    xl = n1 + w * (k - 1) + (k - 1)             # input lanes actually read (1024)
    return dict(oh1=oh1, ow1=ow1, ph1=ph1, pw1=pw1, oh2=oh2, ow2=ow2,
                ph2=ph2, pw2=pw2, l1=l1, n1=n1, l2=l2, n2=n2, xl=xl)


# ---------------------------------------------------------------------------
# Fused whole-network kernel: block of `block_n` images per grid step.
# ---------------------------------------------------------------------------
def _lenet_kernel(x_ref, c1w_ref, c1b_ref, c2w_ref, c2b_ref, sel_ref,
                  f1w_ref, f1b_ref, f2w_ref, f2b_ref, f3w_ref, f3b_ref,
                  o_ref, feat_ref, *, width, n1, l1, n2, l2, c2out, pp):
    # x_ref   : (block_n, 8, H*W) f32  -- channels in sublanes, flat rows in lanes
    # c1w_ref : (8, 200)  bf16   column (kh*K+kw)*8 + cin   (padded rows/cols = 0)
    # c2w_ref : (16, 200) bf16
    # sel_ref : (l2, 25)  bf16   0/1 matrix: lane 4W*h3+4*w3 -> feature h3*5+w3
    # f3w_ref : (84, 128) bf16 / f3b_ref (1, 128) f32 with -1e30 on padded classes
    # o_ref   : (1, block_n, 128) f32  lane-dense softmax
    # feat_ref: (block_n, 400) f32 VMEM scratch (torch (c, h3, w3) flatten order)
    block_n = x_ref.shape[0]
    bf16 = jnp.bfloat16
    w = width

    for i in range(block_n):
        xi = x_ref[i]                                              # (8, H*W) f32
        # ---- conv1: all 25 taps folded into one 200-long contraction ----------
        col1 = jnp.concatenate(
            [xi[:, kh * w + kw: kh * w + kw + n1]
             for kh in range(K) for kw in range(K)], axis=0)       # (200, n1) f32
        c1 = jnp.dot(c1w_ref[...], col1.astype(bf16),
                     preferred_element_type=jnp.float32)           # (8, n1)
        c1 = jnp.maximum(c1 + c1b_ref[...], 0.0)
        # ---- pool1: 2x2/stride-2 max via lane shifts (wide rows, pitch w) -----
        m1 = jnp.maximum(jnp.maximum(c1[:, 0:l1], c1[:, 1:l1 + 1]),
                         jnp.maximum(c1[:, w:w + l1], c1[:, w + 1:w + 1 + l1]))
        # pooled1(h2, w2) now sits (undecimated) at lane 2*w*h2 + 2*w2 of m1.
        # ---- conv2 on the undecimated pooled map: pitch 2w, stride-2 taps -----
        col2 = jnp.concatenate(
            [m1[:, 2 * w * kh + 2 * kw: 2 * w * kh + 2 * kw + n2]
             for kh in range(K) for kw in range(K)], axis=0)       # (200, n2) f32
        c2 = jnp.dot(c2w_ref[...], col2.astype(bf16),
                     preferred_element_type=jnp.float32)           # (16, n2)
        c2 = jnp.maximum(c2 + c2b_ref[...], 0.0)
        # ---- pool2 -------------------------------------------------------------
        m2 = jnp.maximum(jnp.maximum(c2[:, 0:l2], c2[:, 2:l2 + 2]),
                         jnp.maximum(c2[:, 2 * w:2 * w + l2],
                                     c2[:, 2 * w + 2:2 * w + 2 + l2]))
        # pooled2(h3, w3) sits at lane 4*w*h3 + 4*w3 of m2.
        # ---- gather the 25 valid pooled positions with one 0/1 matmul ----------
        feat = jnp.dot(m2.astype(bf16), sel_ref[...],
                       preferred_element_type=jnp.float32)         # (16, 25)
        # torch.flatten order is (c, h3, w3): channel c -> lanes [c*25, c*25+25).
        for c in range(c2out):
            feat_ref[pl.ds(i, 1), pl.ds(c * pp, pp)] = feat[c:c + 1, :]

    # ---- fused MLP head over the whole block (lane-dense 128-wide softmax) ----
    xf = feat_ref[...].astype(bf16)                                # (block_n, 400)
    h = jnp.dot(xf, f1w_ref[...], preferred_element_type=jnp.float32) + f1b_ref[...]
    h = jnp.maximum(h, 0.0)
    h = jnp.dot(h.astype(bf16), f2w_ref[...],
                preferred_element_type=jnp.float32) + f2b_ref[...]
    h = jnp.maximum(h, 0.0)
    z = jnp.dot(h.astype(bf16), f3w_ref[...],
                preferred_element_type=jnp.float32) + f3b_ref[...]
    z = z - jnp.max(z, axis=-1, keepdims=True)
    e = jnp.exp(z)                       # padded classes (-1e30 bias) -> exactly 0
    o_ref[0] = e / jnp.sum(e, axis=-1, keepdims=True)


def lenet_forward(x_nchw, p, *, block_n=None):
    n, cin, h, w = x_nchw.shape                      # (N, 3, 32, 32)
    g = _geometry(h, w)
    hw = h * w
    assert cin == 3 and g["xl"] <= hw and hw % 128 == 0, "expects 3x32x32-style input"
    assert 16 * g["ph2"] * g["pw2"] == p["fc1_w"].shape[0]

    if block_n is None:
        # Keep >= 2 parallel grid steps for v7x's two TensorCores whenever N >= 2;
        # cap the per-step block so per-image temporaries stay well under the
        # scoped-VMEM defaults on every generation (incl. v5e's 16 MiB).
        block_n = 1 if n <= 8 else 4
    grid_n = pl.cdiv(n, block_n)
    npad = grid_n * block_n

    # One-time layout glue: NCHW -> (N, 8, H*W) with zero-padded channels/batch.
    x = x_nchw.astype(jnp.float32).reshape(n, cin, hw)
    x = jnp.pad(x, ((0, npad - n), (0, CIN_PAD - cin), (0, 0)))

    kern = functools.partial(
        _lenet_kernel, width=w, n1=g["n1"], l1=g["l1"], n2=g["n2"], l2=g["l2"],
        c2out=16, pp=g["ph2"] * g["pw2"])

    def resident(a):                       # weight stays VMEM-resident across steps
        return pl.BlockSpec(a.shape, lambda i: (0,) * a.ndim)

    per_img_macs = (8 * g["n1"] * K * K * CIN_PAD          # conv1
                    + 16 * g["n2"] * K * K * CIN_PAD       # conv2
                    + 16 * g["l2"] * g["ph2"] * g["pw2"]   # feature selection
                    + 400 * 120 + 120 * 84 + 84 * NCLASS_PAD)
    weights = (p["c1_w"], p["c1_b"], p["c2_w"], p["c2_b"], p["sel"],
               p["fc1_w"], p["fc1_b"], p["fc2_w"], p["fc2_b"],
               p["fc3_w"], p["fc3_b"])
    bytes_accessed = int(x.size * 4 + npad * NCLASS_PAD * 4
                         + sum(int(v.size) * v.dtype.itemsize for v in weights))

    out = pl.pallas_call(
        kern,
        out_shape=jax.ShapeDtypeStruct((grid_n, block_n, NCLASS_PAD), jnp.float32),
        grid=(grid_n,),
        in_specs=[
            pl.BlockSpec((block_n, CIN_PAD, hw), lambda i: (i, 0, 0)),
            resident(p["c1_w"]), resident(p["c1_b"]),
            resident(p["c2_w"]), resident(p["c2_b"]),
            resident(p["sel"]),
            resident(p["fc1_w"]), resident(p["fc1_b"]),
            resident(p["fc2_w"]), resident(p["fc2_b"]),
            resident(p["fc3_w"]), resident(p["fc3_b"]),
        ],
        out_specs=pl.BlockSpec((1, block_n, NCLASS_PAD), lambda i: (i, 0, 0)),
        scratch_shapes=[pltpu.VMEM((block_n, 16 * g["ph2"] * g["pw2"]), jnp.float32)],
        compiler_params=pltpu.CompilerParams(dimension_semantics=("parallel",)),
        cost_estimate=pl.CostEstimate(flops=int(2 * per_img_macs * npad),
                                      transcendentals=int(npad * NCLASS_PAD),
                                      bytes_accessed=bytes_accessed),
    )(x, *weights)
    return out.reshape(npad, NCLASS_PAD)[:n, :10]


# ---------------------------------------------------------------------------
# Parameters (PyTorch layouts) + one-time layout preparation.
# ---------------------------------------------------------------------------
def init_params(key):
    ks = jax.random.split(key, 10)
    s = 0.1
    return {
        "conv1_w": s * jax.random.normal(ks[0], (6, 3, 5, 5), jnp.float32),
        "conv1_b": s * jax.random.normal(ks[1], (6,), jnp.float32),
        "conv2_w": s * jax.random.normal(ks[2], (16, 6, 5, 5), jnp.float32),
        "conv2_b": s * jax.random.normal(ks[3], (16,), jnp.float32),
        "fc1_w": s * jax.random.normal(ks[4], (120, 400), jnp.float32),
        "fc1_b": s * jax.random.normal(ks[5], (120,), jnp.float32),
        "fc2_w": s * jax.random.normal(ks[6], (84, 120), jnp.float32),
        "fc2_b": s * jax.random.normal(ks[7], (84,), jnp.float32),
        "fc3_w": s * jax.random.normal(ks[8], (10, 84), jnp.float32),
        "fc3_b": s * jax.random.normal(ks[9], (10,), jnp.float32),
    }


def prepare_params(params, h=32, w=32):
    """One-time prep outside the hot path: fold conv taps into a 200-wide
    contraction (channels padded to 8, taps ordered (kh, kw, cin)), build the 0/1
    pooled-position selection matrix, transpose FC weights, pad fc3 to a
    lane-dense 128-class head."""
    g = _geometry(h, w)

    def conv_taps(wt, cout_pad):
        cout, cin, _, _ = wt.shape
        wt = jnp.transpose(wt, (0, 2, 3, 1))                      # (co, kh, kw, cin)
        wt = jnp.pad(wt, ((0, cout_pad - cout), (0, 0), (0, 0), (0, CIN_PAD - cin)))
        return wt.reshape(cout_pad, K * K * CIN_PAD).astype(jnp.bfloat16)

    pp = g["ph2"] * g["pw2"]
    idx = jnp.arange(pp)
    q = 4 * w * (idx // g["pw2"]) + 4 * (idx % g["pw2"])          # pooled-2 lanes
    sel = (jnp.arange(g["l2"])[:, None] == q[None, :]).astype(jnp.bfloat16)

    fc3_w = jnp.zeros((84, NCLASS_PAD), jnp.float32).at[:, :10].set(params["fc3_w"].T)
    fc3_b = jnp.full((1, NCLASS_PAD), -1e30, jnp.float32).at[:, :10].set(
        params["fc3_b"][None, :])

    return {
        "c1_w": conv_taps(params["conv1_w"], CIN_PAD),
        "c1_b": jnp.pad(params["conv1_b"], (0, CIN_PAD - 6))
                  .reshape(CIN_PAD, 1).astype(jnp.float32),
        "c2_w": conv_taps(params["conv2_w"], 16),
        "c2_b": params["conv2_b"].reshape(16, 1).astype(jnp.float32),
        "sel": sel,
        "fc1_w": params["fc1_w"].T.astype(jnp.bfloat16),   # (400, 120), torch order
        "fc1_b": params["fc1_b"].reshape(1, 120).astype(jnp.float32),
        "fc2_w": params["fc2_w"].T.astype(jnp.bfloat16),
        "fc2_b": params["fc2_b"].reshape(1, 84).astype(jnp.float32),
        "fc3_w": fc3_w.astype(jnp.bfloat16),
        "fc3_b": fc3_b,
    }


# ---------------------------------------------------------------------------
# Pure-JAX reference (mirrors the PyTorch module exactly) for validation.
# ---------------------------------------------------------------------------
def reference_forward(x, params):
    dn = ("NCHW", "OIHW", "NCHW")

    def pool(y):
        n, c, hh, ww = y.shape
        return y.reshape(n, c, hh // 2, 2, ww // 2, 2).max(axis=(3, 5))

    y = jax.lax.conv_general_dilated(x, params["conv1_w"], (1, 1), "VALID",
                                     dimension_numbers=dn)
    y = pool(jax.nn.relu(y + params["conv1_b"][None, :, None, None]))
    y = jax.lax.conv_general_dilated(y, params["conv2_w"], (1, 1), "VALID",
                                     dimension_numbers=dn)
    y = pool(jax.nn.relu(y + params["conv2_b"][None, :, None, None]))
    y = y.reshape(y.shape[0], -1)
    y = jax.nn.relu(y @ params["fc1_w"].T + params["fc1_b"])
    y = jax.nn.relu(y @ params["fc2_w"].T + params["fc2_b"])
    return jax.nn.softmax(y @ params["fc3_w"].T + params["fc3_b"], axis=-1)


if __name__ == "__main__":
    key = jax.random.PRNGKey(0)
    k_x, k_p = jax.random.split(key)
    # fc1 expects 16*5*5 features, which forces a 3x32x32 (CIFAR-like) input.
    x = jax.random.normal(k_x, (2, 3, 32, 32), jnp.float32)
    raw_params = init_params(k_p)
    params = prepare_params(raw_params)

    fwd = jax.jit(lenet_forward)
    out = jax.block_until_ready(fwd(x, params))

    assert out.shape == (2, 10)
    assert bool(jnp.all(jnp.isfinite(out)))
    assert bool(jnp.allclose(jnp.sum(out, axis=-1), 1.0, atol=1e-4))

    ref = jax.block_until_ready(reference_forward(x, raw_params))
    # bf16 MXU operands with f32 accumulation: intentional precision tradeoff.
    assert bool(jnp.max(jnp.abs(out - ref)) < 3e-2), "mismatch vs JAX reference"

    print("KERNEL_OK")
</pallas_src>

<mosaic_0001>
module attributes {stable_mosaic.version = 11 : i64} {
  func.func @_lenet_kernel(%arg0: i32, %arg1: memref<1x8x1024xf32, #tpu.memory_space<vmem>>, %arg2: memref<8x200xbf16, #tpu.memory_space<vmem>>, %arg3: memref<8x1xf32, #tpu.memory_space<vmem>>, %arg4: memref<16x200xbf16, #tpu.memory_space<vmem>>, %arg5: memref<16x1xf32, #tpu.memory_space<vmem>>, %arg6: memref<529x25xbf16, #tpu.memory_space<vmem>>, %arg7: memref<400x120xbf16, #tpu.memory_space<vmem>>, %arg8: memref<1x120xf32, #tpu.memory_space<vmem>>, %arg9: memref<120x84xbf16, #tpu.memory_space<vmem>>, %arg10: memref<1x84xf32, #tpu.memory_space<vmem>>, %arg11: memref<84x128xbf16, #tpu.memory_space<vmem>>, %arg12: memref<1x128xf32, #tpu.memory_space<vmem>>, %arg13: memref<1x1x128xf32, #tpu.memory_space<vmem>>, %arg14: memref<1x400xf32, #tpu.memory_space<vmem>>) attributes {dimension_semantics = [#tpu.dimension_semantics<parallel>], iteration_bounds = array<i64: 2>, scalar_prefetch = 0 : i64, scratch_operands = 1 : i64, tpu.core_type = #tpu.core_type<tc>, window_params = [{transform_indices = @transform_0, window_bounds = array<i64: 1, 8, 1024>}, {pipeline_mode = #tpu.pipeline_mode<synchronous>, transform_indices = @transform_1, window_bounds = array<i64: 8, 200>}, {pipeline_mode = #tpu.pipeline_mode<synchronous>, transform_indices = @transform_2, window_bounds = array<i64: 8, 1>}, {pipeline_mode = #tpu.pipeline_mode<synchronous>, transform_indices = @transform_3, window_bounds = array<i64: 16, 200>}, {pipeline_mode = #tpu.pipeline_mode<synchronous>, transform_indices = @transform_4, window_bounds = array<i64: 16, 1>}, {pipeline_mode = #tpu.pipeline_mode<synchronous>, transform_indices = @transform_5, window_bounds = array<i64: 529, 25>}, {pipeline_mode = #tpu.pipeline_mode<synchronous>, transform_indices = @transform_6, window_bounds = array<i64: 400, 120>}, {pipeline_mode = #tpu.pipeline_mode<synchronous>, transform_indices = @transform_7, window_bounds = array<i64: 1, 120>}, {pipeline_mode = #tpu.pipeline_mode<synchronous>, transform_indices = @transform_8, window_bounds = array<i64: 120, 84>}, {pipeline_mode = #tpu.pipeline_mode<synchronous>, transform_indices = @transform_9, window_bounds = array<i64: 1, 84>}, {pipeline_mode = #tpu.pipeline_mode<synchronous>, transform_indices = @transform_10, window_bounds = array<i64: 84, 128>}, {pipeline_mode = #tpu.pipeline_mode<synchronous>, transform_indices = @transform_11, window_bounds = array<i64: 1, 128>}, {transform_indices = @transform_12, window_bounds = array<i64: 1, 1, 128>}]} {
    %c0 = arith.constant 0 : index
    %c0_0 = arith.constant 0 : index
    %c0_1 = arith.constant 0 : index
    %0 = vector.load %arg1[%c0, %c0_0, %c0_1] : memref<1x8x1024xf32, #tpu.memory_space<vmem>>, vector<1x8x1024xf32>
    %1 = vector.shape_cast %0 : vector<1x8x1024xf32> to vector<8x1024xf32>
    %2 = vector.extract_strided_slice %1 {offsets = [0, 0], sizes = [8, 892], strides = [1, 1]} : vector<8x1024xf32> to vector<8x892xf32>
    %3 = vector.extract_strided_slice %1 {offsets = [0, 1], sizes = [8, 892], strides = [1, 1]} : vector<8x1024xf32> to vector<8x892xf32>
    %4 = vector.extract_strided_slice %1 {offsets = [0, 2], sizes = [8, 892], strides = [1, 1]} : vector<8x1024xf32> to vector<8x892xf32>
    %5 = vector.extract_strided_slice %1 {offsets = [0, 3], sizes = [8, 892], strides = [1, 1]} : vector<8x1024xf32> to vector<8x892xf32>
    %6 = vector.extract_strided_slice %1 {offsets = [0, 4], sizes = [8, 892], strides = [1, 1]} : vector<8x1024xf32> to vector<8x892xf32>
    %7 = vector.extract_strided_slice %1 {offsets = [0, 32], sizes = [8, 892], strides = [1, 1]} : vector<8x1024xf32> to vector<8x892xf32>
    %8 = vector.extract_strided_slice %1 {offsets = [0, 33], sizes = [8, 892], strides = [1, 1]} : vector<8x1024xf32> to vector<8x892xf32>
    %9 = vector.extract_strided_slice %1 {offsets = [0, 34], sizes = [8, 892], strides = [1, 1]} : vector<8x1024xf32> to vector<8x892xf32>
    %10 = vector.extract_strided_slice %1 {offsets = [0, 35], sizes = [8, 892], strides = [1, 1]} : vector<8x1024xf32> to vector<8x892xf32>
    %11 = vector.extract_strided_slice %1 {offsets = [0, 36], sizes = [8, 892], strides = [1, 1]} : vector<8x1024xf32> to vector<8x892xf32>
    %12 = vector.extract_strided_slice %1 {offsets = [0, 64], sizes = [8, 892], strides = [1, 1]} : vector<8x1024xf32> to vector<8x892xf32>
    %13 = vector.extract_strided_slice %1 {offsets = [0, 65], sizes = [8, 892], strides = [1, 1]} : vector<8x1024xf32> to vector<8x892xf32>
    %14 = vector.extract_strided_slice %1 {offsets = [0, 66], sizes = [8, 892], strides = [1, 1]} : vector<8x1024xf32> to vector<8x892xf32>
    %15 = vector.extract_strided_slice %1 {offsets = [0, 67], sizes = [8, 892], strides = [1, 1]} : vector<8x1024xf32> to vector<8x892xf32>
    %16 = vector.extract_strided_slice %1 {offsets = [0, 68], sizes = [8, 892], strides = [1, 1]} : vector<8x1024xf32> to vector<8x892xf32>
    %17 = vector.extract_strided_slice %1 {offsets = [0, 96], sizes = [8, 892], strides = [1, 1]} : vector<8x1024xf32> to vector<8x892xf32>
    %18 = vector.extract_strided_slice %1 {offsets = [0, 97], sizes = [8, 892], strides = [1, 1]} : vector<8x1024xf32> to vector<8x892xf32>
    %19 = vector.extract_strided_slice %1 {offsets = [0, 98], sizes = [8, 892], strides = [1, 1]} : vector<8x1024xf32> to vector<8x892xf32>
    %20 = vector.extract_strided_slice %1 {offsets = [0, 99], sizes = [8, 892], strides = [1, 1]} : vector<8x1024xf32> to vector<8x892xf32>
    %21 = vector.extract_strided_slice %1 {offsets = [0, 100], sizes = [8, 892], strides = [1, 1]} : vector<8x1024xf32> to vector<8x892xf32>
    %22 = vector.extract_strided_slice %1 {offsets = [0, 128], sizes = [8, 892], strides = [1, 1]} : vector<8x1024xf32> to vector<8x892xf32>
    %23 = vector.extract_strided_slice %1 {offsets = [0, 129], sizes = [8, 892], strides = [1, 1]} : vector<8x1024xf32> to vector<8x892xf32>
    %24 = vector.extract_strided_slice %1 {offsets = [0, 130], sizes = [8, 892], strides = [1, 1]} : vector<8x1024xf32> to vector<8x892xf32>
    %25 = vector.extract_strided_slice %1 {offsets = [0, 131], sizes = [8, 892], strides = [1, 1]} : vector<8x1024xf32> to vector<8x892xf32>
    %26 = vector.extract_strided_slice %1 {offsets = [0, 132], sizes = [8, 892], strides = [1, 1]} : vector<8x1024xf32> to vector<8x892xf32>
    %27 = tpu.concatenate %2, %3, %4, %5, %6, %7, %8, %9, %10, %11, %12, %13, %14, %15, %16, %17 in 0 : vector<8x892xf32>, vector<8x892xf32>, vector<8x892xf32>, vector<8x892xf32>, vector<8x892xf32>, vector<8x892xf32>, vector<8x892xf32>, vector<8x892xf32>, vector<8x892xf32>, vector<8x892xf32>, vector<8x892xf32>, vector<8x892xf32>, vector<8x892xf32>, vector<8x892xf32>, vector<8x892xf32>, vector<8x892xf32> -> vector<128x892xf32>
    %28 = tpu.concatenate %18, %19, %20, %21, %22, %23, %24, %25, %26 in 0 : vector<8x892xf32>, vector<8x892xf32>, vector<8x892xf32>, vector<8x892xf32>, vector<8x892xf32>, vector<8x892xf32>, vector<8x892xf32>, vector<8x892xf32>, vector<8x892xf32> -> vector<72x892xf32>
    %29 = tpu.concatenate %27, %28 in 0 : vector<128x892xf32>, vector<72x892xf32> -> vector<200x892xf32>
    %c0_2 = arith.constant 0 : index
    %c0_3 = arith.constant 0 : index
    %30 = vector.load %arg2[%c0_2, %c0_3] : memref<8x200xbf16, #tpu.memory_space<vmem>>, vector<8x200xbf16>
    %31 = arith.truncf %29 : vector<200x892xf32> to vector<200x892xbf16>
    %cst = arith.constant dense<0.000000e+00> : vector<8x892xf32>
    %32 = tpu.matmul %30, %31, %cst {dimension_numbers = #tpu.dot_dimension_numbers<[1], [0], [0], [1], [0, 0, 1, 1], [], []>} : vector<8x200xbf16>, vector<200x892xbf16>, vector<8x892xf32> -> vector<8x892xf32>
    %c0_4 = arith.constant 0 : index
    %c0_5 = arith.constant 0 : index
    %33 = vector.load %arg3[%c0_4, %c0_5] : memref<8x1xf32, #tpu.memory_space<vmem>>, vector<8x1xf32>
    %34 = vector.broadcast %33 : vector<8x1xf32> to vector<8x892xf32>
    %35 = arith.addf %32, %34 : vector<8x892xf32>
    %cst_6 = arith.constant 0.000000e+00 : f32
    %36 = vector.broadcast %cst_6 : f32 to vector<8x892xf32>
    %37 = arith.maximumf %35, %36 : vector<8x892xf32>
    %38 = vector.extract_strided_slice %37 {offsets = [0, 0], sizes = [8, 859], strides = [1, 1]} : vector<8x892xf32> to vector<8x859xf32>
    %39 = vector.extract_strided_slice %37 {offsets = [0, 1], sizes = [8, 859], strides = [1, 1]} : vector<8x892xf32> to vector<8x859xf32>
    %40 = arith.maximumf %38, %39 : vector<8x859xf32>
    %41 = vector.extract_strided_slice %37 {offsets = [0, 32], sizes = [8, 859], strides = [1, 1]} : vector<8x892xf32> to vector<8x859xf32>
    %42 = vector.extract_strided_slice %37 {offsets = [0, 33], sizes = [8, 859], strides = [1, 1]} : vector<8x892xf32> to vector<8x859xf32>
    %43 = arith.maximumf %41, %42 : vector<8x859xf32>
    %44 = arith.maximumf %40, %43 : vector<8x859xf32>
    %45 = vector.extract_strided_slice %44 {offsets = [0, 0], sizes = [8, 595], strides = [1, 1]} : vector<8x859xf32> to vector<8x595xf32>
    %46 = vector.extract_strided_slice %44 {offsets = [0, 2], sizes = [8, 595], strides = [1, 1]} : vector<8x859xf32> to vector<8x595xf32>
    %47 = vector.extract_strided_slice %44 {offsets = [0, 4], sizes = [8, 595], strides = [1, 1]} : vector<8x859xf32> to vector<8x595xf32>
    %48 = vector.extract_strided_slice %44 {offsets = [0, 6], sizes = [8, 595], strides = [1, 1]} : vector<8x859xf32> to vector<8x595xf32>
    %49 = vector.extract_strided_slice %44 {offsets = [0, 8], sizes = [8, 595], strides = [1, 1]} : vector<8x859xf32> to vector<8x595xf32>
    %50 = vector.extract_strided_slice %44 {offsets = [0, 64], sizes = [8, 595], strides = [1, 1]} : vector<8x859xf32> to vector<8x595xf32>
    %51 = vector.extract_strided_slice %44 {offsets = [0, 66], sizes = [8, 595], strides = [1, 1]} : vector<8x859xf32> to vector<8x595xf32>
    %52 = vector.extract_strided_slice %44 {offsets = [0, 68], sizes = [8, 595], strides = [1, 1]} : vector<8x859xf32> to vector<8x595xf32>
    %53 = vector.extract_strided_slice %44 {offsets = [0, 70], sizes = [8, 595], strides = [1, 1]} : vector<8x859xf32> to vector<8x595xf32>
    %54 = vector.extract_strided_slice %44 {offsets = [0, 72], sizes = [8, 595], strides = [1, 1]} : vector<8x859xf32> to vector<8x595xf32>
    %55 = vector.extract_strided_slice %44 {offsets = [0, 128], sizes = [8, 595], strides = [1, 1]} : vector<8x859xf32> to vector<8x595xf32>
    %56 = vector.extract_strided_slice %44 {offsets = [0, 130], sizes = [8, 595], strides = [1, 1]} : vector<8x859xf32> to vector<8x595xf32>
    %57 = vector.extract_strided_slice %44 {offsets = [0, 132], sizes = [8, 595], strides = [1, 1]} : vector<8x859xf32> to vector<8x595xf32>
    %58 = vector.extract_strided_slice %44 {offsets = [0, 134], sizes = [8, 595], strides = [1, 1]} : vector<8x859xf32> to vector<8x595xf32>
    %59 = vector.extract_strided_slice %44 {offsets = [0, 136], sizes = [8, 595], strides = [1, 1]} : vector<8x859xf32> to vector<8x595xf32>
    %60 = vector.extract_strided_slice %44 {offsets = [0, 192], sizes = [8, 595], strides = [1, 1]} : vector<8x859xf32> to vector<8x595xf32>
    %61 = vector.extract_strided_slice %44 {offsets = [0, 194], sizes = [8, 595], strides = [1, 1]} : vector<8x859xf32> to vector<8x595xf32>
    %62 = vector.extract_strided_slice %44 {offsets = [0, 196], sizes = [8, 595], strides = [1, 1]} : vector<8x859xf32> to vector<8x595xf32>
    %63 = vector.extract_strided_slice %44 {offsets = [0, 198], sizes = [8, 595], strides = [1, 1]} : vector<8x859xf32> to vector<8x595xf32>
    %64 = vector.extract_strided_slice %44 {offsets = [0, 200], sizes = [8, 595], strides = [1, 1]} : vector<8x859xf32> to vector<8x595xf32>
    %65 = vector.extract_strided_slice %44 {offsets = [0, 256], sizes = [8, 595], strides = [1, 1]} : vector<8x859xf32> to vector<8x595xf32>
    %66 = vector.extract_strided_slice %44 {offsets = [0, 258], sizes = [8, 595], strides = [1, 1]} : vector<8x859xf32> to vector<8x595xf32>
    %67 = vector.extract_strided_slice %44 {offsets = [0, 260], sizes = [8, 595], strides = [1, 1]} : vector<8x859xf32> to vector<8x595xf32>
    %68 = vector.extract_strided_slice %44 {offsets = [0, 262], sizes = [8, 595], strides = [1, 1]} : vector<8x859xf32> to vector<8x595xf32>
    %69 = vector.extract_strided_slice %44 {offsets = [0, 264], sizes = [8, 595], strides = [1, 1]} : vector<8x859xf32> to vector<8x595xf32>
    %70 = tpu.concatenate %45, %46, %47, %48, %49, %50, %51, %52, %53, %54, %55, %56, %57, %58, %59, %60 in 0 : vector<8x595xf32>, vector<8x595xf32>, vector<8x595xf32>, vector<8x595xf32>, vector<8x595xf32>, vector<8x595xf32>, vector<8x595xf32>, vector<8x595xf32>, vector<8x595xf32>, vector<8x595xf32>, vector<8x595xf32>, vector<8x595xf32>, vector<8x595xf32>, vector<8x595xf32>, vector<8x595xf32>, vector<8x595xf32> -> vector<128x595xf32>
    %71 = tpu.concatenate %61, %62, %63, %64, %65, %66, %67, %68, %69 in 0 : vector<8x595xf32>, vector<8x595xf32>, vector<8x595xf32>, vector<8x595xf32>, vector<8x595xf32>, vector<8x595xf32>, vector<8x595xf32>, vector<8x595xf32>, vector<8x595xf32> -> vector<72x595xf32>
    %72 = tpu.concatenate %70, %71 in 0 : vector<128x595xf32>, vector<72x595xf32> -> vector<200x595xf32>
    %c0_7 = arith.constant 0 : index
    %c0_8 = arith.constant 0 : index
    %73 = vector.load %arg4[%c0_7, %c0_8] : memref<16x200xbf16, #tpu.memory_space<vmem>>, vector<16x200xbf16>
    %74 = arith.truncf %72 : vector<200x595xf32> to vector<200x595xbf16>
    %cst_9 = arith.constant dense<0.000000e+00> : vector<16x595xf32>
    %75 = tpu.matmul %73, %74, %cst_9 {dimension_numbers = #tpu.dot_dimension_numbers<[1], [0], [0], [1], [0, 0, 1, 1], [], []>} : vector<16x200xbf16>, vector<200x595xbf16>, vector<16x595xf32> -> vector<16x595xf32>
    %c0_10 = arith.constant 0 : index
    %c0_11 = arith.constant 0 : index
    %76 = vector.load %arg5[%c0_10, %c0_11] : memref<16x1xf32, #tpu.memory_space<vmem>>, vector<16x1xf32>
    %77 = vector.broadcast %76 : vector<16x1xf32> to vector<16x595xf32>
    %78 = arith.addf %75, %77 : vector<16x595xf32>
    %cst_12 = arith.constant 0.000000e+00 : f32
    %79 = vector.broadcast %cst_12 : f32 to vector<16x595xf32>
    %80 = arith.maximumf %78, %79 : vector<16x595xf32>
    %81 = vector.extract_strided_slice %80 {offsets = [0, 0], sizes = [16, 529], strides = [1, 1]} : vector<16x595xf32> to vector<16x529xf32>
    %82 = vector.extract_strided_slice %80 {offsets = [0, 2], sizes = [16, 529], strides = [1, 1]} : vector<16x595xf32> to vector<16x529xf32>
    %83 = arith.maximumf %81, %82 : vector<16x529xf32>
    %84 = vector.extract_strided_slice %80 {offsets = [0, 64], sizes = [16, 529], strides = [1, 1]} : vector<16x595xf32> to vector<16x529xf32>
    %85 = vector.extract_strided_slice %80 {offsets = [0, 66], sizes = [16, 529], strides = [1, 1]} : vector<16x595xf32> to vector<16x529xf32>
    %86 = arith.maximumf %84, %85 : vector<16x529xf32>
    %87 = arith.maximumf %83, %86 : vector<16x529xf32>
    %88 = arith.truncf %87 : vector<16x529xf32> to vector<16x529xbf16>
    %c0_13 = arith.constant 0 : index
    %c0_14 = arith.constant 0 : index
    %89 = vector.load %arg6[%c0_13, %c0_14] : memref<529x25xbf16, #tpu.memory_space<vmem>>, vector<529x25xbf16>
    %cst_15 = arith.constant dense<0.000000e+00> : vector<16x25xf32>
    %90 = tpu.matmul %88, %89, %cst_15 {dimension_numbers = #tpu.dot_dimension_numbers<[1], [0], [0], [1], [0, 0, 1, 1], [], []>} : vector<16x529xbf16>, vector<529x25xbf16>, vector<16x25xf32> -> vector<16x25xf32>
    %91 = vector.extract_strided_slice %90 {offsets = [0, 0], sizes = [1, 25], strides = [1, 1]} : vector<16x25xf32> to vector<1x25xf32>
    %c0_16 = arith.constant 0 : index
    %c0_17 = arith.constant 0 : index
    %92 = vector.load %arg14[%c0_16, %c0_17] : memref<1x400xf32, #tpu.memory_space<vmem>>, vector<1x25xf32>
    tpu.vector_store %arg14[%c0_16, %c0_17], %91 {strides = array<i32>} : memref<1x400xf32, #tpu.memory_space<vmem>>, vector<1x25xf32>,
    %93 = vector.extract_strided_slice %90 {offsets = [1, 0], sizes = [1, 25], strides = [1, 1]} : vector<16x25xf32> to vector<1x25xf32>
    %c0_18 = arith.constant 0 : index
    %c25 = arith.constant 25 : index
    %94 = vector.load %arg14[%c0_18, %c25] : memref<1x400xf32, #tpu.memory_space<vmem>>, vector<1x25xf32>
    tpu.vector_store %arg14[%c0_18, %c25], %93 {strides = array<i32>} : memref<1x400xf32, #tpu.memory_space<vmem>>, vector<1x25xf32>,
    %95 = vector.extract_strided_slice %90 {offsets = [2, 0], sizes = [1, 25], strides = [1, 1]} : vector<16x25xf32> to vector<1x25xf32>
    %c0_19 = arith.constant 0 : index
    %c50 = arith.constant 50 : index
    %96 = vector.load %arg14[%c0_19, %c50] : memref<1x400xf32, #tpu.memory_space<vmem>>, vector<1x25xf32>
    tpu.vector_store %arg14[%c0_19, %c50], %95 {strides = array<i32>} : memref<1x400xf32, #tpu.memory_space<vmem>>, vector<1x25xf32>,
    %97 = vector.extract_strided_slice %90 {offsets = [3, 0], sizes = [1, 25], strides = [1, 1]} : vector<16x25xf32> to vector<1x25xf32>
    %c0_20 = arith.constant 0 : index
    %c75 = arith.constant 75 : index
    %98 = vector.load %arg14[%c0_20, %c75] : memref<1x400xf32, #tpu.memory_space<vmem>>, vector<1x25xf32>
    tpu.vector_store %arg14[%c0_20, %c75], %97 {strides = array<i32>} : memref<1x400xf32, #tpu.memory_space<vmem>>, vector<1x25xf32>,
    %99 = vector.extract_strided_slice %90 {offsets = [4, 0], sizes = [1, 25], strides = [1, 1]} : vector<16x25xf32> to vector<1x25xf32>
    %c0_21 = arith.constant 0 : index
    %c100 = arith.constant 100 : index
    %100 = vector.load %arg14[%c0_21, %c100] : memref<1x400xf32, #tpu.memory_space<vmem>>, vector<1x25xf32>
    tpu.vector_store %arg14[%c0_21, %c100], %99 {strides = array<i32>} : memref<1x400xf32, #tpu.memory_space<vmem>>, vector<1x25xf32>,
    %101 = vector.extract_strided_slice %90 {offsets = [5, 0], sizes = [1, 25], strides = [1, 1]} : vector<16x25xf32> to vector<1x25xf32>
    %c0_22 = arith.constant 0 : index
    %c125 = arith.constant 125 : index
    %102 = vector.load %arg14[%c0_22, %c125] : memref<1x400xf32, #tpu.memory_space<vmem>>, vector<1x25xf32>
    tpu.vector_store %arg14[%c0_22, %c125], %101 {strides = array<i32>} : memref<1x400xf32, #tpu.memory_space<vmem>>, vector<1x25xf32>,
    %103 = vector.extract_strided_slice %90 {offsets = [6, 0], sizes = [1, 25], strides = [1, 1]} : vector<16x25xf32> to vector<1x25xf32>
    %c0_23 = arith.constant 0 : index
    %c150 = arith.constant 150 : index
    %104 = vector.load %arg14[%c0_23, %c150] : memref<1x400xf32, #tpu.memory_space<vmem>>, vector<1x25xf32>
    tpu.vector_store %arg14[%c0_23, %c150], %103 {strides = array<i32>} : memref<1x400xf32, #tpu.memory_space<vmem>>, vector<1x25xf32>,
    %105 = vector.extract_strided_slice %90 {offsets = [7, 0], sizes = [1, 25], strides = [1, 1]} : vector<16x25xf32> to vector<1x25xf32>
    %c0_24 = arith.constant 0 : index
    %c175 = arith.constant 175 : index
    %106 = vector.load %arg14[%c0_24, %c175] : memref<1x400xf32, #tpu.memory_space<vmem>>, vector<1x25xf32>
    tpu.vector_store %arg14[%c0_24, %c175], %105 {strides = array<i32>} : memref<1x400xf32, #tpu.memory_space<vmem>>, vector<1x25xf32>,
    %107 = vector.extract_strided_slice %90 {offsets = [8, 0], sizes = [1, 25], strides = [1, 1]} : vector<16x25xf32> to vector<1x25xf32>
    %c0_25 = arith.constant 0 : index
    %c200 = arith.constant 200 : index
    %108 = vector.load %arg14[%c0_25, %c200] : memref<1x400xf32, #tpu.memory_space<vmem>>, vector<1x25xf32>
    tpu.vector_store %arg14[%c0_25, %c200], %107 {strides = array<i32>} : memref<1x400xf32, #tpu.memory_space<vmem>>, vector<1x25xf32>,
    %109 = vector.extract_strided_slice %90 {offsets = [9, 0], sizes = [1, 25], strides = [1, 1]} : vector<16x25xf32> to vector<1x25xf32>
    %c0_26 = arith.constant 0 : index
    %c225 = arith.constant 225 : index
    %110 = vector.load %arg14[%c0_26, %c225] : memref<1x400xf32, #tpu.memory_space<vmem>>, vector<1x25xf32>
    tpu.vector_store %arg14[%c0_26, %c225], %109 {strides = array<i32>} : memref<1x400xf32, #tpu.memory_space<vmem>>, vector<1x25xf32>,
    %111 = vector.extract_strided_slice %90 {offsets = [10, 0], sizes = [1, 25], strides = [1, 1]} : vector<16x25xf32> to vector<1x25xf32>
    %c0_27 = arith.constant 0 : index
    %c250 = arith.constant 250 : index
    %112 = vector.load %arg14[%c0_27, %c250] : memref<1x400xf32, #tpu.memory_space<vmem>>, vector<1x25xf32>
    tpu.vector_store %arg14[%c0_27, %c250], %111 {strides = array<i32>} : memref<1x400xf32, #tpu.memory_space<vmem>>, vector<1x25xf32>,
    %113 = vector.extract_strided_slice %90 {offsets = [11, 0], sizes = [1, 25], strides = [1, 1]} : vector<16x25xf32> to vector<1x25xf32>
    %c0_28 = arith.constant 0 : index
    %c275 = arith.constant 275 : index
    %114 = vector.load %arg14[%c0_28, %c275] : memref<1x400xf32, #tpu.memory_space<vmem>>, vector<1x25xf32>
    tpu.vector_store %arg14[%c0_28, %c275], %113 {strides = array<i32>} : memref<1x400xf32, #tpu.memory_space<vmem>>, vector<1x25xf32>,
    %115 = vector.extract_strided_slice %90 {offsets = [12, 0], sizes = [1, 25], strides = [1, 1]} : vector<16x25xf32> to vector<1x25xf32>
    %c0_29 = arith.constant 0 : index
    %c300 = arith.constant 300 : index
    %116 = vector.load %arg14[%c0_29, %c300] : memref<1x400xf32, #tpu.memory_space<vmem>>, vector<1x25xf32>
    tpu.vector_store %arg14[%c0_29, %c300], %115 {strides = array<i32>} : memref<1x400xf32, #tpu.memory_space<vmem>>, vector<1x25xf32>,
    %117 = vector.extract_strided_slice %90 {offsets = [13, 0], sizes = [1, 25], strides = [1, 1]} : vector<16x25xf32> to vector<1x25xf32>
    %c0_30 = arith.constant 0 : index
    %c325 = arith.constant 325 : index
    %118 = vector.load %arg14[%c0_30, %c325] : memref<1x400xf32, #tpu.memory_space<vmem>>, vector<1x25xf32>
    tpu.vector_store %arg14[%c0_30, %c325], %117 {strides = array<i32>} : memref<1x400xf32, #tpu.memory_space<vmem>>, vector<1x25xf32>,
    %119 = vector.extract_strided_slice %90 {offsets = [14, 0], sizes = [1, 25], strides = [1, 1]} : vector<16x25xf32> to vector<1x25xf32>
    %c0_31 = arith.constant 0 : index
    %c350 = arith.constant 350 : index
    %120 = vector.load %arg14[%c0_31, %c350] : memref<1x400xf32, #tpu.memory_space<vmem>>, vector<1x25xf32>
    tpu.vector_store %arg14[%c0_31, %c350], %119 {strides = array<i32>} : memref<1x400xf32, #tpu.memory_space<vmem>>, vector<1x25xf32>,
    %121 = vector.extract_strided_slice %90 {offsets = [15, 0], sizes = [1, 25], strides = [1, 1]} : vector<16x25xf32> to vector<1x25xf32>
    %c0_32 = arith.constant 0 : index
    %c375 = arith.constant 375 : index
    %122 = vector.load %arg14[%c0_32, %c375] : memref<1x400xf32, #tpu.memory_space<vmem>>, vector<1x25xf32>
    tpu.vector_store %arg14[%c0_32, %c375], %121 {strides = array<i32>} : memref<1x400xf32, #tpu.memory_space<vmem>>, vector<1x25xf32>,
    %c0_33 = arith.constant 0 : index
    %c0_34 = arith.constant 0 : index
    %123 = vector.load %arg14[%c0_33, %c0_34] : memref<1x400xf32, #tpu.memory_space<vmem>>, vector<1x400xf32>
    %124 = arith.truncf %123 : vector<1x400xf32> to vector<1x400xbf16>
    %c0_35 = arith.constant 0 : index
    %c0_36 = arith.constant 0 : index
    %125 = vector.load %arg7[%c0_35, %c0_36] : memref<400x120xbf16, #tpu.memory_space<vmem>>, vector<400x120xbf16>
    %cst_37 = arith.constant dense<0.000000e+00> : vector<1x120xf32>
    %126 = tpu.matmul %124, %125, %cst_37 {dimension_numbers = #tpu.dot_dimension_numbers<[1], [0], [0], [1], [0, 0, 1, 1], [], []>} : vector<1x400xbf16>, vector<400x120xbf16>, vector<1x120xf32> -> vector<1x120xf32>
    %c0_38 = arith.constant 0 : index
    %c0_39 = arith.constant 0 : index
    %127 = vector.load %arg8[%c0_38, %c0_39] : memref<1x120xf32, #tpu.memory_space<vmem>>, vector<1x120xf32>
    %128 = arith.addf %126, %127 : vector<1x120xf32>
    %cst_40 = arith.constant 0.000000e+00 : f32
    %129 = vector.broadcast %cst_40 : f32 to vector<1x120xf32>
    %130 = arith.maximumf %128, %129 : vector<1x120xf32>
    %131 = arith.truncf %130 : vector<1x120xf32> to vector<1x120xbf16>
    %c0_41 = arith.constant 0 : index
    %c0_42 = arith.constant 0 : index
    %132 = vector.load %arg9[%c0_41, %c0_42] : memref<120x84xbf16, #tpu.memory_space<vmem>>, vector<120x84xbf16>
    %cst_43 = arith.constant dense<0.000000e+00> : vector<1x84xf32>
    %133 = tpu.matmul %131, %132, %cst_43 {dimension_numbers = #tpu.dot_dimension_numbers<[1], [0], [0], [1], [0, 0, 1, 1], [], []>} : vector<1x120xbf16>, vector<120x84xbf16>, vector<1x84xf32> -> vector<1x84xf32>
    %c0_44 = arith.constant 0 : index
    %c0_45 = arith.constant 0 : index
    %134 = vector.load %arg10[%c0_44, %c0_45] : memref<1x84xf32, #tpu.memory_space<vmem>>, vector<1x84xf32>
    %135 = arith.addf %133, %134 : vector<1x84xf32>
    %cst_46 = arith.constant 0.000000e+00 : f32
    %136 = vector.broadcast %cst_46 : f32 to vector<1x84xf32>
    %137 = arith.maximumf %135, %136 : vector<1x84xf32>
    %138 = arith.truncf %137 : vector<1x84xf32> to vector<1x84xbf16>
    %c0_47 = arith.constant 0 : index
    %c0_48 = arith.constant 0 : index
    %139 = vector.load %arg11[%c0_47, %c0_48] : memref<84x128xbf16, #tpu.memory_space<vmem>>, vector<84x128xbf16>
    %cst_49 = arith.constant dense<0.000000e+00> : vector<1x128xf32>
    %140 = tpu.matmul %138, %139, %cst_49 {dimension_numbers = #tpu.dot_dimension_numbers<[1], [0], [0], [1], [0, 0, 1, 1], [], []>} : vector<1x84xbf16>, vector<84x128xbf16>, vector<1x128xf32> -> vector<1x128xf32>
    %c0_50 = arith.constant 0 : index
    %c0_51 = arith.constant 0 : index
    %141 = vector.load %arg12[%c0_50, %c0_51] : memref<1x128xf32, #tpu.memory_space<vmem>>, vector<1x128xf32>
    %142 = arith.addf %140, %141 : vector<1x128xf32>
    %cst_52 = arith.constant dense<0xFF800000> : vector<1xf32>
    %143 = vector.multi_reduction <maximumf>, %142, %cst_52 [1] : vector<1x128xf32> to vector<1xf32>
    %144 = vector.shape_cast %143 : vector<1xf32> to vector<1x1xf32>
    %145 = vector.broadcast %144 : vector<1x1xf32> to vector<1x128xf32>
    %146 = arith.subf %142, %145 : vector<1x128xf32>
    %147 = math.exp %146 : vector<1x128xf32>
    %cst_53 = arith.constant dense<0.000000e+00> : vector<1xf32>
    %148 = vector.multi_reduction <add>, %147, %cst_53 [1] : vector<1x128xf32> to vector<1xf32>
    %149 = vector.shape_cast %148 : vector<1xf32> to vector<1x1xf32>
    %150 = vector.broadcast %149 : vector<1x1xf32> to vector<1x128xf32>
    %151 = arith.divf %147, %150 : vector<1x128xf32>
    %c0_54 = arith.constant 0 : index
    %c0_55 = arith.constant 0 : index
    %c0_56 = arith.constant 0 : index
    %152 = vector.load %arg13[%c0_54, %c0_55, %c0_56] : memref<1x1x128xf32, #tpu.memory_space<vmem>>, vector<1x1x128xf32>
    %153 = vector.shape_cast %152 : vector<1x1x128xf32> to vector<1x128xf32>
    %154 = vector.shape_cast %151 : vector<1x128xf32> to vector<1x1x128xf32>
    tpu.vector_store %arg13[%c0_54, %c0_55, %c0_56], %154 {strides = array<i32>} : memref<1x1x128xf32, #tpu.memory_space<vmem>>, vector<1x1x128xf32>,
    return
  }
  func.func @transform_0(%arg0: i32) -> (i32, i32, i32) {
    %c0_i32 = arith.constant 0 : i32
    %c0_i32_0 = arith.constant 0 : i32
    %c0_i32_1 = arith.constant 0 : i32
    return %arg0, %c0_i32, %c0_i32_0 : i32, i32, i32
  }
  func.func @transform_1(%arg0: i32) -> (i32, i32) {
    %c0_i32 = arith.constant 0 : i32
    %c0_i32_0 = arith.constant 0 : i32
    %c0_i32_1 = arith.constant 0 : i32
    return %c0_i32, %c0_i32_0 : i32, i32
  }
  func.func @transform_2(%arg0: i32) -> (i32, i32) {
    %c0_i32 = arith.constant 0 : i32
    %c0_i32_0 = arith.constant 0 : i32
    %c0_i32_1 = arith.constant 0 : i32
    return %c0_i32, %c0_i32_0 : i32, i32
  }
  func.func @transform_3(%arg0: i32) -> (i32, i32) {
    %c0_i32 = arith.constant 0 : i32
    %c0_i32_0 = arith.constant 0 : i32
    %c0_i32_1 = arith.constant 0 : i32
    return %c0_i32, %c0_i32_0 : i32, i32
  }
  func.func @transform_4(%arg0: i32) -> (i32, i32) {
    %c0_i32 = arith.constant 0 : i32
    %c0_i32_0 = arith.constant 0 : i32
    %c0_i32_1 = arith.constant 0 : i32
    return %c0_i32, %c0_i32_0 : i32, i32
  }
  func.func @transform_5(%arg0: i32) -> (i32, i32) {
    %c0_i32 = arith.constant 0 : i32
    %c0_i32_0 = arith.constant 0 : i32
    %c0_i32_1 = arith.constant 0 : i32
    return %c0_i32, %c0_i32_0 : i32, i32
  }
  func.func @transform_6(%arg0: i32) -> (i32, i32) {
    %c0_i32 = arith.constant 0 : i32
    %c0_i32_0 = arith.constant 0 : i32
    %c0_i32_1 = arith.constant 0 : i32
    return %c0_i32, %c0_i32_0 : i32, i32
  }
  func.func @transform_7(%arg0: i32) -> (i32, i32) {
    %c0_i32 = arith.constant 0 : i32
    %c0_i32_0 = arith.constant 0 : i32
    %c0_i32_1 = arith.constant 0 : i32
    return %c0_i32, %c0_i32_0 : i32, i32
  }
  func.func @transform_8(%arg0: i32) -> (i32, i32) {
    %c0_i32 = arith.constant 0 : i32
    %c0_i32_0 = arith.constant 0 : i32
    %c0_i32_1 = arith.constant 0 : i32
    return %c0_i32, %c0_i32_0 : i32, i32
  }
  func.func @transform_9(%arg0: i32) -> (i32, i32) {
    %c0_i32 = arith.constant 0 : i32
    %c0_i32_0 = arith.constant 0 : i32
    %c0_i32_1 = arith.constant 0 : i32
    return %c0_i32, %c0_i32_0 : i32, i32
  }
  func.func @transform_10(%arg0: i32) -> (i32, i32) {
    %c0_i32 = arith.constant 0 : i32
    %c0_i32_0 = arith.constant 0 : i32
    %c0_i32_1 = arith.constant 0 : i32
    return %c0_i32, %c0_i32_0 : i32, i32
  }
  func.func @transform_11(%arg0: i32) -> (i32, i32) {
    %c0_i32 = arith.constant 0 : i32
    %c0_i32_0 = arith.constant 0 : i32
    %c0_i32_1 = arith.constant 0 : i32
    return %c0_i32, %c0_i32_0 : i32, i32
  }
  func.func @transform_12(%arg0: i32) -> (i32, i32, i32) {
    %c0_i32 = arith.constant 0 : i32
    %c0_i32_0 = arith.constant 0 : i32
    %c0_i32_1 = arith.constant 0 : i32
    return %arg0, %c0_i32, %c0_i32_0 : i32, i32, i32
  }
}

</mosaic_0001>

<bundles_post_ra>
// kernel: lenet_forward.1
= control target key start
LH: loop header
LB: loop body
LE: loop exit
PB: predicated region body
PF: predicated region fallthrough
CT: control target
= control target key end

     0   :  { %s7146_s0 = inlined_call_operand.vmem [shape: f32[2,8,1024], index: 0, kind: input, shape index: {}]   ;;  %s7147_s1 = inlined_call_operand.vmem [shape: bf16[8,200], index: 1, kind: input, shape index: {}]   ;;  %s7148_s2 = inlined_call_operand.vmem [shape: f32[8,1], index: 2, kind: input, shape index: {}]   ;;  %s7149_s3 = inlined_call_operand.vmem [shape: bf16[16,200], index: 3, kind: input, shape index: {}]   ;;  %s7150_s4 = inlined_call_operand.vmem [shape: f32[16,1], index: 4, kind: input, shape index: {}]   ;;  %s7151_s5 = inlined_call_operand.vmem [shape: bf16[529,25], index: 5, kind: input, shape index: {}]   ;;  %s7152_s6 = inlined_call_operand.vmem [shape: bf16[400,120], index: 6, kind: input, shape index: {}]   ;;  %s7153_s7 = inlined_call_operand.vmem [shape: f32[1,120], index: 7, kind: input, shape index: {}]   ;;  %s7154_s8 = inlined_call_operand.vmem [shape: bf16[120,84], index: 8, kind: input, shape index: {}]   ;;  %s7155_s9 = inlined_call_operand.vmem [shape: f32[1,84], index: 9, kind: input, shape index: {}]   ;;  %s7156_s10 = inlined_call_operand.vmem [shape: bf16[84,128], index: 10, kind: input, shape index: {}]   ;;  %s7157_s11 = inlined_call_operand.vmem [shape: f32[1,128], index: 11, kind: input, shape index: {}]   ;;  %s7158_s12 = inlined_call_operand.hbm [shape: f32[2,1,128], index: 12, kind: output, shape index: {}]  }
   0x1   :  { %7235 = sst [smem:[#allocation16_spill]] %s7146_s0 }
   0x2   :  { %7236 = sst [smem:[#allocation17_spill]] %s7147_s1 }
   0x3   :  { %17 = vsyncpa [#allocation4], 0 }
   0x4   :  { %19 = vsyncpa [#allocation4 + $0x1], 0  ;;  %s4918_s21 = smov 0   ;;  %s4920_s22 = smov 0  }
   0x5   :  { %s4922_s23 = smov 0   ;;  %s4924_s24 = smov 0  }
   0x6 LB: > { %7237 = sst [smem:[#allocation6_spill]] %s4809_s23  ;;  %s4939_s25 = sadd.s32 4294967295, %s4813_s24   ;;  %s4813_s24 = sphi %s4924_s24, %s7369_s24   ;;  %s4809_s23 = sphi %s4922_s23, %s7366_s23   ;;  %s4805_s22 = sphi %s4920_s22, %s7368_s22   ;;  %s4801_s21 = sphi %s4918_s21, %s7367_s21  }
   0x7   : > { %s3563_s26 = sadd.s32 4294967294, %s4813_s24   ;;  %s4943_s27 = sadd.s32 1, %s4813_s24  }
   0x8   : > { %s289_s28 = sadd.s32 1, %s4809_s23  ;;  %s286_s29 = ssub.s32 %s4813_s24, %s4943_s27 }
   0x9   : > { %p299_p0 = scmp.ne.s32.totalorder %s4809_s23, %s4805_s22  ;;  %p287_p1 = scmp.eq.s32.totalorder %s286_s29, 0 }
   0xa   : > { %p300_p2 = scmp.eq.s32.totalorder %s4939_s25, 1  ;;  %p305_p3 = scmp.ne.s32.totalorder %s4805_s22, %s4801_s21 }
   0xb   : > { %p306_p4 = scmp.eq.s32.totalorder %s3563_s26, 1  ;;  %p3566_p7 = scmp.ge.s32.totalorder %s4813_s24, 1 }
   0xc   : > { %s4954_s30 = scalar_select %p287_p1, %s4809_s23, %s289_s28  }
   0xd   : > { %p4956_p5 = por %p300_p2, %p299_p0  ;;  %p4960_p6 = por %p306_p4, %p305_p3 }
   0xe   : > { %7238 = sst [smem:[#allocation7_spill]] %s4954_s30  ;;  %p365_p8 = scmp.lt.s32.totalorder %s4813_s24, 3 }
  0x10   : > { %p366_p9 = pnand %p3566_p7, %p365_p8 }
  0x12   : > { %369 = sbr.rel (%p366_p9) target bundleno = 2960 (0xb90), region = 68 }
  0x17   : > { %p406_p10 = scmp.lt.s32.totalorder %s4939_s25, 1  ;;  %s7241_s0 = sld [smem:[#allocation16_spill]]  ;;  %vm649_vm0 = vcmask 760832   ;;  %vm587_vm1 = vcmask 777216   ;;  %vm618_vm2 = vcmask 769024   ;;  %vm904_vm3 = vcmask 793600  }
  0x18   : > { %s4815_s20 = smov 93   ;;  %s4816_s26 = smov 95   ;;  %vm556_vm4 = vcmask 785408   ;;  %vm469_vm5 = vcmask 1031168   ;;  %vm497_vm6 = vcmask 1022976   ;;  %vm441_vm7 = vcmask 1039360  }
  0x19   : > { %s407_s15 = scalar_select %p406_p10, %s4939_s25, 1  ;;  %vm835_vm8 = vcmask 490496   ;;  %vm866_vm9 = vcmask 261120   ;;  %vm773_vm10 = vcmask 506880   ;;  %vm804_vm11 = vcmask 498688  }
  0x1a   : > { %s7190_s28 = smov 94   ;;  %s7161_s29 = smov 96   ;;  %vm711_vm12 = vcmask 523264   ;;  %vm742_vm13 = vcmask 515072   ;;  %vm680_vm14 = vcmask 752640   ;;  %vm7198_vm15 = vcmask 1014784  }
  0x1b   : > { %s3665_s16 = sshll.u32 %s407_s15, 6  ;;  %s7159_s15 = smov 97  }
  0x1c   : > { %s7191_s17 = smov 125   ;;  %s7163_s18 = smov 127  }
  0x1d   : > { %s4971_s19 = scalar_lea.vmem %s7241_s0, %s3665_s16  ;;  %s7165_s16 = smov 126  }
  0x1e   : > { %v4974_v0 = vld [vmem:[%s4971_s19 + $0x8] sm:$0xff]  ;;  %v4977_v1 = vld [vmem:[%s4971_s19 + $0x10] sm:$0xff]  ;;  %v4980_v2 = vld [vmem:[%s4971_s19] sm:$0xff]  ;;  %s7254_s0 = smov 124   ;;  %s7259_s1 = sld [smem:[#allocation17_spill]] }
  0x1f   : > { %v4984_v3 = vpack.i.bf16 %v4977_v1, %v4974_v0  ;;  %v417_v4 = vld [vmem:[%s4971_s19 + $0x28] sm:$0xff]  ;;  %v4988_v5 = vld [vmem:[%s4971_s19 + $0x18] sm:$0xff]  ;;  %v4991_v6 = vld [vmem:[%s4971_s19 + $0x20] sm:$0xff]  ;;  %s7263_s23 = smov 31   ;;  %s7266_s30 = smov 32  }
  0x20   : > { %v3881_v7 = vpack.i.bf16 %v4980_v2, %v417_v4  ;;  %v3876_v8 = vpack.i.bf16 %v4991_v6, %v4988_v5  ;;  %v5014_v9 = vld [vmem:[%s4971_s19 + $0x30] sm:$0xff]  ;;  %v3951_v11 = vpack.i.bf16 %v4980_v2, %v4988_v5  ;;  %v3966_v12 = vpack.i.bf16 %v417_v4, %v4991_v6  ;;  %v5078_v14 = vld [vmem:[%s4971_s19 + $0x38] sm:$0xff] }
  0x21   : > { %3872 = vrot.lane.b32.xlu0 %v4984_v3, %s4815_s20  ;;  %v5018_v10 = vpack.i.bf16 %v5014_v9, %v417_v4  ;;  %v4001_v13 = vpack.i.bf16 %v4988_v5, %v4980_v2  ;;  %v5083_v15 = vpack.i.bf16 %v5078_v14, %v5014_v9 }
  0x22   : > { %3882 = vrot.lane.b32.xlu1 %v3881_v7, %s4815_s20 }
  0x25   : > { %3877 = vrot.lane.b32.xlu0 %v3876_v8, %s4815_s20 }
  0x26   : > { %3887 = vrot.lane.b32.xlu1 %v4984_v3, %s4816_s26 }
  0x29   : > { %3892 = vrot.lane.b32.xlu0 %v3876_v8, %s4816_s26 }
  0x2a   : > { %3897 = vrot.lane.b32.xlu1 %v4984_v3, %s7190_s28 }
  0x2d   : > { %3902 = vrot.lane.b32.xlu0 %v3876_v8, %s7190_s28 }
  0x2e   : > { %3907 = vrot.lane.b32.xlu1 %v3881_v7, %s4816_s26 }
  0x31   : > { %3912 = vrot.lane.b32.xlu0 %v3881_v7, %s7190_s28 }
  0x32   : > { %3917 = vrot.lane.b32.xlu1 %v4984_v3, %s7161_s29 }
  0x35   : > { %3922 = vrot.lane.b32.xlu0 %v3876_v8, %s7161_s29 }
  0x36   : > { %3927 = vrot.lane.b32.xlu1 %v4984_v3, %s7159_s15 }
  0x39   : > { %3932 = vrot.lane.b32.xlu0 %v3876_v8, %s7159_s15 }
  0x3a   : > { %3937 = vrot.lane.b32.xlu1 %v3881_v7, %s7161_s29  ;;  %s7167_s29 = smov 32  }
  0x3d   : > { %3942 = vrot.lane.b32.xlu0 %v5018_v10, %s7159_s15  ;;  %s7169_s15 = smov 60  }
  0x3e   : > { %3947 = vrot.lane.b32.xlu1 %v4984_v3, %s7165_s16 }
  0x41   : > { %3952 = vrot.lane.b32.xlu0 %v3951_v11, %s7165_s16 }
  0x42   : > { %3957 = vrot.lane.b32.xlu1 %v4984_v3, %s7191_s17 }
  0x45   : > { %3962 = vrot.lane.b32.xlu0 %v3951_v11, %s7191_s17 }
  0x46   : > { %3967 = vrot.lane.b32.xlu1 %v3966_v12, %s7165_s16  ;;  %s7173_s16 = smov 61  }
  0x49   : > { %3972 = vrot.lane.b32.xlu0 %v3966_v12, %s7191_s17 }
  0x4a   : > { %3977 = vrot.lane.b32.xlu1 %v4984_v3, %s7163_s18 }
  0x4d   : > { %3982 = vrot.lane.b32.xlu0 %v3951_v11, %s7163_s18 }
  0x4e   : > { %3987 = vrot.lane.b32.xlu1 %v3966_v12, %s7163_s18  ;;  %s7171_s18 = smov 62  }
  0x51   : > { %3992 = vrot.lane.b32.xlu0 %v4984_v3, %s7169_s15 }
  0x52   : > { %3997 = vrot.lane.b32.xlu1 %v4984_v3, %s7167_s29 }
  0x55   : > { %4002 = vrot.lane.b32.xlu0 %v4001_v13, %s7169_s15 }
  0x56   : > { %4007 = vrot.lane.b32.xlu1 %v4001_v13, %s7167_s29 }
  0x59   : > { %827 = vrot.lane.b32.xlu0 %v4991_v6, %s7169_s15  ;;  %s7175_s15 = smov 63  }
  0x5a   : > { %858 = vrot.lane.b32.xlu1 %v4991_v6, %s7167_s29  ;;  %s7179_s29 = smov 64  }
  0x5d   : > { %4012 = vrot.lane.b32.xlu0 %v4984_v3, %s7171_s18 }
  0x5e   : > { %4017 = vrot.lane.b32.xlu1 %v4984_v3, %s7173_s16 }
  0x61   : > { %4022 = vrot.lane.b32.xlu0 %v4001_v13, %s7171_s18 }
  0x62   : > { %4027 = vrot.lane.b32.xlu1 %v4001_v13, %s7173_s16 }
  0x65   : > { %765 = vrot.lane.b32.xlu0 %v4991_v6, %s7171_s18  ;;  %s7177_s18 = smov 92  }
  0x66   : > { %796 = vrot.lane.b32.xlu1 %v4991_v6, %s7173_s16  ;;  %s7195_s16 = smov 124  }
  0x69   : > { %4032 = vrot.lane.b32.xlu0 %v4984_v3, %s7179_s29 }
  0x6a   : > { %4037 = vrot.lane.b32.xlu1 %v4984_v3, %s7175_s15 }
  0x6d   : > { %4042 = vrot.lane.b32.xlu0 %v4001_v13, %s7179_s29 }
  0x6e   : > { %4047 = vrot.lane.b32.xlu1 %v4001_v13, %s7175_s15 }
  0x71   : > { %703 = vrot.lane.b32.xlu0 %v4991_v6, %s7179_s29  ;;  %s7244_s29 = smov 126  }
  0x72   : > { %734 = vrot.lane.b32.xlu1 %v4991_v6, %s7175_s15  ;;  %s7242_s15 = smov 96  }
  0x75   : > { %4052 = vrot.lane.b32.xlu0 %v4984_v3, %s7177_s18 }
  0x76   : > { %4057 = vrot.lane.b32.xlu1 %v4001_v13, %s7177_s18 }
  0x79   : > { %672 = vrot.lane.b32.xlu0 %v4991_v6, %s7177_s18  ;;  %s7243_s18 = smov 97  }
  0x7a   : > { %4062 = vrot.lane.b32.xlu1 %v4984_v3, %s7195_s16 }
  0x7d   : > { %4067 = vrot.lane.b32.xlu0 %v4001_v13, %s7195_s16 }
  0x7e   : > { %519 = vrot.lane.b32.xlu1 %v4991_v6, %s7195_s16  ;;  %s7253_s16 = smov 92  }
  0x81   : > { %4072 = vrot.lane.b32.xlu0 %v5083_v15, %s4815_s20  ;;  %s7192_s20 = smov 31  }
  0x82   : > { %4077 = vrot.lane.b32.xlu1 %v5083_v15, %s4816_s26  ;;  %s7245_s26 = smov 127  }
  0x85   : > { %4082 = vrot.lane.b32.xlu0 %v5083_v15, %s7190_s28  ;;  %s7250_s28 = smov 60  }
  0x86   : > { %4087 = vrot.lane.b32.xlu1 %v5083_v15, %s7242_s15 }
  0x89   : > { %902 = vrot.lane.b32.xlu0 %v5078_v14, %s7243_s18 }
  0x8a   : > { %4097 = vrot.lane.b32.xlu1 %v5083_v15, %s7191_s17  ;;  %s7251_s17 = smov 62  }
  0x8d   : > { %4092 = vrot.lane.b32.xlu0 %v5083_v15, %s7244_s29 }
  0x93   : > { %v3873_v16 = vpop.permute.xlu0 %3872 }
  0x94   : > { %v3875_v17 = vunpack.i.h.bf16 %v3873_v16  ;;  %v5101_v18 = vunpack.i.l.bf16 %v3873_v16  ;;  %v5103_v19 = vpop.permute.xlu1 %3882 }
  0x95   : > { %v7187_v20 = vunpack.i.l.bf16 %v5103_v19 }
  0x96   : > { %v5108_v21 = vsel %vm649_vm0, %v5101_v18, %v3875_v17 }
  0x97   : > { %v3878_v22 = vpop.permute.xlu0 %3877  ;;  %v4101_v23 = vpack.i.bf16 %v5108_v21, %v5101_v18 }
  0x98   : > { %v3880_v24 = vunpack.i.h.bf16 %v3878_v22  ;;  %v3879_v25 = vunpack.i.l.bf16 %v3878_v22  ;;  %v3888_v26 = vpop.permute.xlu1 %3887 }
  0x99   : > { %v3890_v27 = vunpack.i.h.bf16 %v3888_v26  ;;  %v3889_v28 = vunpack.i.l.bf16 %v3888_v26  ;;  %4102 = vrot.lane.b32.xlu1 %v4101_v23, %s7192_s20 }
  0x9a   : > { %v5114_v29 = vsel %vm649_vm0, %v3875_v17, %v3879_v25  ;;  %v5117_v30 = vsel %vm649_vm0, %v3879_v25, %v3880_v24  ;;  %v5122_v31 = vsel %vm649_vm0, %v3880_v24, %v7187_v20 }
  0x9b   : > { %v3893_v32 = vpop.permute.xlu0 %3892  ;;  %v4106_v33 = vpack.i.bf16 %v5117_v30, %v5114_v29  ;;  %v5127_v34 = vsel %vm587_vm1, %v3889_v28, %v3890_v27 }
  0x9c   : > { %v3895_v35 = vunpack.i.h.bf16 %v3893_v32  ;;  %v3894_v36 = vunpack.i.l.bf16 %v3893_v32  ;;  %v3898_v37 = vpop.permute.xlu1 %3897  ;;  %v4111_v38 = vpack.i.bf16 %v5127_v34, %v5122_v31 }
  0x9d   : > { %v3900_v39 = vunpack.i.h.bf16 %v3898_v37  ;;  %v3899_v40 = vunpack.i.l.bf16 %v3898_v37  ;;  %4107 = vrot.lane.b32.xlu0 %v4106_v33, %s7192_s20 }
  0x9e   : > { %4112 = vrot.lane.b32.xlu1 %v4111_v38, %s7192_s20  ;;  %v5134_v41 = vsel %vm587_vm1, %v3890_v27, %v3894_v36  ;;  %v5140_v44 = vsel %vm587_vm1, %v3894_v36, %v3895_v35 }
  0x9f   : > { %v3903_v42 = vpop.permute.xlu0 %3902  ;;  %v5137_v43 = vsel %vm618_vm2, %v3899_v40, %v3900_v39  ;;  %v4126_v55 = vpack.i.bf16 %v5140_v44, %v3899_v40 }
  0xa0   : > { %v3905_v45 = vunpack.i.h.bf16 %v3903_v42  ;;  %v3904_v46 = vunpack.i.l.bf16 %v3903_v42  ;;  %v5142_v47 = vpop.permute.xlu1 %3907  ;;  %v4116_v48 = vpack.i.bf16 %v5137_v43, %v5134_v41 }
  0xa1   : > { %v3910_v50 = vunpack.i.h.bf16 %v5142_v47  ;;  %v7186_v51 = vunpack.i.l.bf16 %v5142_v47 }
  0xa2   : > { %4117 = vrot.lane.b32.xlu0 %v4116_v48, %s7192_s20  ;;  %v5152_v52 = vsel %vm618_vm2, %v3900_v39, %v3904_v46  ;;  %v5155_v53 = vsel %vm618_vm2, %v3904_v46, %v3905_v45 }
  0xa3   : > { %v5157_v54 = vpop.permute.xlu0 %3912  ;;  %v4121_v56 = vpack.i.bf16 %v3889_v28, %v5152_v52  ;;  %v5164_v57 = vsel %vm587_vm1, %v3895_v35, %v7186_v51  ;;  %v5171_v62 = vsel %vm587_vm1, %v3910_v50, %v3889_v28 }
  0xa4   : > { %v3915_v59 = vunpack.i.h.bf16 %v5157_v54  ;;  %v7185_v60 = vunpack.i.l.bf16 %v5157_v54  ;;  %v3918_v61 = vpop.permute.xlu1 %3917  ;;  %v4131_v8 = vpack.i.bf16 %v5155_v53, %v5164_v57 }
  0xa5   : > { %4122 = vrot.lane.b32.xlu1 %v4121_v56, %s7192_s20  ;;  %v5191_v13 = vunpack.i.l.bf16 %v3918_v61  ;;  %v3920_v17 = vunpack.i.h.bf16 %v3918_v61 }
  0xa6   : > { %4127 = vrot.lane.b32.xlu0 %v4126_v55, %s7192_s20  ;;  %v5180_v3 = vsel %vm618_vm2, %v3905_v45, %v7185_v60  ;;  %v5183_v4 = vsel %vm618_vm2, %v3915_v59, %v3899_v40 }
  0xa7   : > { %v3923_v7 = vpop.permute.xlu0 %3922  ;;  %v5200_v33 = vsel %vm556_vm4, %v5191_v13, %v3920_v17 }
  0xa8   : > { %v3928_v16 = vpop.permute.xlu1 %3927  ;;  %v3924_v22 = vunpack.i.l.bf16 %v3923_v7  ;;  %v3925_v55 = vunpack.i.h.bf16 %v3923_v7 }
  0xa9   : > { %v3930_v23 = vunpack.i.h.bf16 %v3928_v16  ;;  %v3929_v24 = vunpack.i.l.bf16 %v3928_v16  ;;  %4132 = vrot.lane.b32.xlu1 %v4131_v8, %s7192_s20 }
  0xaa   : > { %v5203_v36 = vsel %vm556_vm4, %v3920_v17, %v3924_v22 }
  0xab   : > { %v3933_v25 = vpop.permute.xlu0 %3932  ;;  %v905_v26 = vsel %vm904_vm3, %v3929_v24, %v3930_v23  ;;  %v4146_v45 = vpack.i.bf16 %v3929_v24, %v5203_v36 }
  0xac   : > { %v3934_v27 = vunpack.i.l.bf16 %v3933_v25  ;;  %v5195_v28 = vpop.permute.xlu1 %3937  ;;  %v4136_v32 = vpack.i.bf16 %v905_v26, %v5180_v3  ;;  %v3935_v35 = vunpack.i.h.bf16 %v3933_v25 }
  0xad   : > { %v7182_v56 = vunpack.i.l.bf16 %v5195_v28 }
  0xae   : > { %4137 = vrot.lane.b32.xlu0 %v4136_v32, %s7192_s20  ;;  %v906_v37 = vsel %vm904_vm3, %v3930_v23, %v3934_v27  ;;  %v907_v50 = vsel %vm904_vm3, %v3934_v27, %v3935_v35  ;;  %v5232_v27 = vsel %vm556_vm4, %v3924_v22, %v3925_v55 }
  0xaf   : > { %v5207_v38 = vpop.permute.xlu0 %3942  ;;  %v4141_v39 = vpack.i.bf16 %v5200_v33, %v906_v37  ;;  %v4156_v16 = vpack.i.bf16 %v907_v50, %v5191_v13  ;;  %v5229_v26 = vsel %vm556_vm4, %v3925_v55, %v7182_v56 }
  0xb0   : > { %v7181_v40 = vunpack.i.l.bf16 %v5207_v38  ;;  %v3948_v42 = vpop.permute.xlu1 %3947  ;;  %7246 = vst [vmem:[#allocation8_spill] sm:$0xff] %v5229_v26 }
  0xb1   : > { %v3950_v46 = vunpack.i.h.bf16 %v3948_v42  ;;  %v3949_v48 = vunpack.i.l.bf16 %v3948_v42  ;;  %4142 = vrot.lane.b32.xlu1 %v4141_v39, %s7192_s20 }
  0xb2   : > { %4147 = vrot.lane.b32.xlu0 %v4146_v45, %s7192_s20  ;;  %v908_v23 = vsel %vm904_vm3, %v3935_v35, %v7181_v40 }
  0xb3   : > { %v3953_v59 = vpop.permute.xlu0 %3952  ;;  %v5218_v17 = vsel %vm469_vm5, %v3949_v48, %v3950_v46  ;;  %v4161_v37 = vpack.i.bf16 %v5232_v27, %v908_v23 }
  0xb4   : > { %v3954_v61 = vunpack.i.l.bf16 %v3953_v59  ;;  %v3958_v8 = vpop.permute.xlu1 %3957  ;;  %v3955_v7 = vunpack.i.h.bf16 %v3953_v59  ;;  %v4166_v35 = vpack.i.bf16 %v5218_v17, %v5229_v26 }
  0xb5   : > { %v3960_v24 = vunpack.i.h.bf16 %v3958_v8  ;;  %v3959_v25 = vunpack.i.l.bf16 %v3958_v8  ;;  %4152 = vrot.lane.b32.xlu1 %v5083_v15, %s7245_s26 }
  0xb6   : > { %4157 = vrot.lane.b32.xlu0 %v4156_v16, %s7192_s20  ;;  %v5240_v45 = vsel %vm469_vm5, %v3950_v46, %v3954_v61  ;;  %v5250_v55 = vsel %vm469_vm5, %v3955_v7, %v3949_v48 }
  0xb7   : > { %v3963_v32 = vpop.permute.xlu0 %3962  ;;  %v5243_v50 = vsel %vm497_vm6, %v3959_v25, %v3960_v24 }
  0xb8   : > { %v3965_v39 = vunpack.i.h.bf16 %v3963_v32  ;;  %v3964_v15 = vunpack.i.l.bf16 %v3963_v32  ;;  %v5237_v42 = vpop.permute.xlu1 %3967  ;;  %v4171_v23 = vpack.i.bf16 %v5243_v50, %v5240_v45 }
  0xb9   : > { %v7183_v59 = vunpack.i.h.bf16 %v5237_v42  ;;  %v3969_v22 = vunpack.i.l.bf16 %v5237_v42  ;;  %4162 = vrot.lane.b32.xlu1 %v4161_v37, %s7192_s20 }
  0xba   : > { %4167 = vrot.lane.b32.xlu0 %v4166_v35, %s7192_s20  ;;  %v5253_v8 = vsel %vm497_vm6, %v3960_v24, %v3964_v15  ;;  %v5262_v32 = vsel %vm497_vm6, %v3965_v39, %v3959_v25 }
  0xbb   : > { %v5255_v16 = vpop.permute.xlu0 %3972  ;;  %v4176_v46 = vpack.i.bf16 %v5250_v55, %v5253_v8  ;;  %v5269_v24 = vsel %vm469_vm5, %v3969_v22, %v7183_v59  ;;  %v5272_v37 = vsel %vm469_vm5, %v3954_v61, %v3969_v22 }
  0xbc   : > { %v7184_v35 = vunpack.i.h.bf16 %v5255_v16  ;;  %v3974_v48 = vunpack.i.l.bf16 %v5255_v16  ;;  %v3978_v7 = vpop.permute.xlu1 %3977  ;;  %7247 = vst [vmem:[#allocation9_spill] sm:$0xff] %v5269_v24  ;;  %v4181_v61 = vpack.i.bf16 %v5272_v37, %v5262_v32 }
  0xbd   : > { %v3980_v11 = vunpack.i.h.bf16 %v3978_v7  ;;  %v3979_v40 = vunpack.i.l.bf16 %v3978_v7  ;;  %4172 = vrot.lane.b32.xlu1 %v4171_v23, %s7192_s20 }
  0xbe   : > { %4177 = vrot.lane.b32.xlu0 %v4176_v46, %s7192_s20  ;;  %v5277_v25 = vsel %vm497_vm6, %v3964_v15, %v3974_v48  ;;  %v5282_v39 = vsel %vm497_vm6, %v3974_v48, %v7184_v35 }
  0xbf   : > { %7248 = vst [vmem:[#allocation10_spill] sm:$0xff] %v5282_v39  ;;  %v3983_v56 = vpop.permute.xlu0 %3982  ;;  %v4186_v59 = vpack.i.bf16 %v5277_v25, %v5269_v24  ;;  %v5289_v22 = vsel %vm441_vm7, %v3979_v40, %v3980_v11  ;;  %v4191_v51 = vpack.i.bf16 %v4974_v0, %v5282_v39 }
  0xc0   : > { %v3985_v15 = vunpack.i.h.bf16 %v3983_v56  ;;  %v3984_v23 = vunpack.i.l.bf16 %v3983_v56  ;;  %v5293_v7 = vpop.permute.xlu1 %3987  ;;  %v4196_v48 = vpack.i.bf16 %v5289_v22, %v4977_v1 }
  0xc1   : > { %4182 = vrot.lane.b32.xlu1 %v4181_v61, %s7192_s20 }
  0xc2   : > { %4187 = vrot.lane.b32.xlu0 %v4186_v59, %s7192_s20  ;;  %v5303_v63 = vsel %vm441_vm7, %v3985_v15, %v3979_v40  ;;  %v5306_v61 = vsel %vm441_vm7, %v3980_v11, %v3984_v23 }
  0xc3   : > { %v3993_v60 = vpop.permute.xlu0 %3992  ;;  %v4201_v40 = vpack.i.bf16 %v4980_v2, %v5306_v61 }
  0xc4   : > { %v3995_v46 = vunpack.i.h.bf16 %v3993_v60  ;;  %v3994_v20 = vunpack.i.l.bf16 %v3993_v60  ;;  %v3998_v56 = vpop.permute.xlu1 %3997  ;;  %v4206_v60 = vpack.i.bf16 %v4988_v5, %v5303_v63 }
  0xc5   : > { %v4000_v59 = vunpack.i.h.bf16 %v3998_v56  ;;  %v3999_v12 = vunpack.i.l.bf16 %v3998_v56  ;;  %4192 = vrot.lane.b32.xlu1 %v4191_v51, %s7192_s20  ;;  %v7249_v56 = vunpack.i.l.bf16 %v5293_v7 }
  0xc6   : > { %4197 = vrot.lane.b32.xlu0 %v4196_v48, %s7192_s20  ;;  %v837_v1 = vsel %vm835_vm8, %v3994_v20, %v3995_v46 }
  0xc7   : > { %v4003_v0 = vpop.permute.xlu0 %4002  ;;  %v868_v58 = vsel %vm866_vm9, %v3999_v12, %v4000_v59  ;;  %v5319_v51 = vsel %vm441_vm7, %v3984_v23, %v7249_v56 }
  0xc8   : > { %v4005_v15 = vunpack.i.h.bf16 %v4003_v0  ;;  %v4004_v11 = vunpack.i.l.bf16 %v4003_v0  ;;  %v4008_v49 = vpop.permute.xlu1 %4007  ;;  %v1233_v35 = vpack.c.bf16 %v868_v58, %v837_v1  ;;  %v4211_v58 = vpack.i.bf16 %v5319_v51, %v4991_v6 }
  0xc9   : > { %v4010_v48 = vunpack.i.h.bf16 %v4008_v49  ;;  %v4009_v24 = vunpack.i.l.bf16 %v4008_v49  ;;  %4202 = vrot.lane.b32.xlu1 %v4201_v40, %s7192_s20 }
  0xca   : > { %1312 = vmatprep.subr.bf16.mxu0 %v1233_v35  ;;  %4207 = vrot.lane.b32.xlu0 %v4206_v60, %s7192_s20  ;;  %v836_v5 = vsel %vm835_vm8, %v4004_v11, %v3994_v20  ;;  %v838_v0 = vsel %vm835_vm8, %v3995_v46, %v4005_v15 }
  0xcb   : > { %v5324_v39 = vpop.permute.xlu0 %827  ;;  %v867_v2 = vsel %vm866_vm9, %v4009_v24, %v3999_v12  ;;  %v869_v35 = vsel %vm866_vm9, %v4000_v59, %v4010_v48 }
  0xcc   : > { %v5329_v1 = vpop.permute.xlu1 %858  ;;  %v1232_v23 = vpack.c.bf16 %v867_v2, %v836_v5  ;;  %v839_v49 = vsel %vm835_vm8, %v4005_v15, %v5324_v39  ;;  %v1234_v60 = vpack.c.bf16 %v869_v35, %v838_v0 }
  0xcd   : > { %4212 = vrot.lane.b32.xlu1 %v4211_v58, %s7192_s20  ;;  %v870_v20 = vsel %vm866_vm9, %v4010_v48, %v5329_v1  ;;  %s7252_s20 = smov 64  }
  0xce   : > { %1313 = vmatpush1.bf16.msra.mxu0 %v1232_v23  ;;  %v1235_v12 = vpack.c.bf16 %v870_v20, %v839_v49 }
  0xcf   : > { %v4013_v24 = vpop.permute.xlu0 %4012 }
  0xd0   : > { %v4015_v6 = vunpack.i.h.bf16 %v4013_v24  ;;  %v4014_v40 = vunpack.i.l.bf16 %v4013_v24  ;;  %v4018_v11 = vpop.permute.xlu1 %4017  ;;  %1353 = vmatprep.subr.bf16.mxu1 %v1235_v12 }
  0xd1   : > { %v4020_v56 = vunpack.i.h.bf16 %v4018_v11  ;;  %v4019_v5 = vunpack.i.l.bf16 %v4018_v11  ;;  %1354 = vmatpush1.bf16.msra.mxu1 %v1234_v60  ;;  %4222 = vrot.lane.b32.xlu1 %v5018_v10, %s7250_s28 }
  0xd2   : > { %v775_v46 = vsel %vm773_vm10, %v4014_v40, %v4015_v6 }
  0xd3   : > { %v4023_v59 = vpop.permute.xlu0 %4022  ;;  %v806_v15 = vsel %vm804_vm11, %v4019_v5, %v4020_v56 }
  0xd4   : > { %v4025_v48 = vunpack.i.h.bf16 %v4023_v59  ;;  %v4024_v2 = vunpack.i.l.bf16 %v4023_v59  ;;  %v4028_v58 = vpop.permute.xlu1 %4027  ;;  %v1226_v23 = vpack.c.bf16 %v806_v15, %v775_v46 }
  0xd5   : > { %v4030_v49 = vunpack.i.h.bf16 %v4028_v58  ;;  %v4029_v0 = vunpack.i.l.bf16 %v4028_v58  ;;  %833 = vrot.lane.b32.xlu1 %v5078_v14, %s7250_s28 }
  0xd6   : > { %1314 = vmatprep.subr.bf16.mxu0 %v1226_v23  ;;  %v774_v35 = vsel %vm773_vm10, %v4024_v2, %v4014_v40  ;;  %v776_v46 = vsel %vm773_vm10, %v4015_v6, %v4025_v48 }
  0xd7   : > { %v5345_v20 = vpop.permute.xlu0 %765  ;;  %v805_v12 = vsel %vm804_vm11, %v4029_v0, %v4019_v5  ;;  %v807_v59 = vsel %vm804_vm11, %v4020_v56, %v4030_v49 }
  0xd8   : > { %v777_v24 = vsel %vm773_vm10, %v4025_v48, %v5345_v20  ;;  %v5350_v60 = vpop.permute.xlu1 %796  ;;  %v1225_v11 = vpack.c.bf16 %v805_v12, %v774_v35  ;;  %v1227_v5 = vpack.c.bf16 %v807_v59, %v776_v46 }
  0xd9   : > { %v808_v15 = vsel %vm804_vm11, %v4030_v49, %v5350_v60  ;;  %4232 = vrot.lane.b32.xlu1 %v5018_v10, %s7251_s17 }
  0xda   : > { %1315 = vmatpush1.bf16.msra.mxu0 %v1225_v11  ;;  %v1228_v40 = vpack.c.bf16 %v808_v15, %v777_v24 }
  0xdb   : > { %v4033_v2 = vpop.permute.xlu0 %4032 }
  0xdc   : > { %v4035_v58 = vunpack.i.h.bf16 %v4033_v2  ;;  %v4034_v23 = vunpack.i.l.bf16 %v4033_v2  ;;  %v4038_v0 = vpop.permute.xlu1 %4037  ;;  %1355 = vmatprep.subr.bf16.mxu1 %v1228_v40 }
  0xdd   : > { %v4040_v35 = vunpack.i.h.bf16 %v4038_v0  ;;  %v4039_v6 = vunpack.i.l.bf16 %v4038_v0  ;;  %1356 = vmatpush1.bf16.msra.mxu1 %v1227_v5  ;;  %771 = vrot.lane.b32.xlu1 %v5078_v14, %s7251_s17 }
  0xde   : > { %v713_v56 = vsel %vm711_vm12, %v4034_v23, %v4035_v58 }
  0xdf   : > { %v4043_v48 = vpop.permute.xlu0 %4042  ;;  %v744_v49 = vsel %vm742_vm13, %v4039_v6, %v4040_v35 }
  0xe0   : > { %v4045_v12 = vunpack.i.h.bf16 %v4043_v48  ;;  %v4044_v24 = vunpack.i.l.bf16 %v4043_v48  ;;  %v4048_v11 = vpop.permute.xlu1 %4047  ;;  %v1219_v46 = vpack.c.bf16 %v744_v49, %v713_v56 }
  0xe1   : > { %v4050_v59 = vunpack.i.h.bf16 %v4048_v11  ;;  %v4049_v15 = vunpack.i.l.bf16 %v4048_v11  ;;  %4242 = vrot.lane.b32.xlu1 %v5018_v10, %s7252_s20  ;;  %v3885_v11 = vunpack.i.h.bf16 %v5103_v19 }
  0xe2   : > { %1316 = vmatprep.subr.bf16.mxu0 %v1219_v46  ;;  %v712_v40 = vsel %vm711_vm12, %v4044_v24, %v4034_v23  ;;  %v714_v56 = vsel %vm711_vm12, %v4035_v58, %v4045_v12  ;;  %v5379_v23 = vld [vmem:[%s4971_s19 + $0x28] sm:$0xff] }
  0xe3   : > { %v5365_v2 = vpop.permute.xlu0 %703  ;;  %v743_v5 = vsel %vm742_vm13, %v4049_v15, %v4039_v6  ;;  %v745_v49 = vsel %vm742_vm13, %v4040_v35, %v4050_v59  ;;  %v5383_v6 = vpack.i.bf16 %v5014_v9, %v5379_v23 }
  0xe4   : > { %v715_v0 = vsel %vm711_vm12, %v4045_v12, %v5365_v2  ;;  %v5370_v26 = vpop.permute.xlu1 %734  ;;  %v1218_v48 = vpack.c.bf16 %v743_v5, %v712_v40  ;;  %v1220_v58 = vpack.c.bf16 %v745_v49, %v714_v56 }
  0xe5   : > { %v746_v10 = vsel %vm742_vm13, %v4050_v59, %v5370_v26  ;;  %709 = vrot.lane.b32.xlu1 %v5078_v14, %s7252_s20 }
  0xe6   : > { %1317 = vmatpush1.bf16.msra.mxu0 %v1218_v48  ;;  %v1221_v24 = vpack.c.bf16 %v746_v10, %v715_v0  ;;  %v650_v48 = vsel %vm649_vm0, %v3885_v11, %v5101_v18  ;;  %v3940_v18 = vunpack.i.h.bf16 %v5195_v28 }
  0xe7   : > { %v4053_v46 = vpop.permute.xlu0 %4052 }
  0xe8   : > { %v4055_v35 = vunpack.i.h.bf16 %v4053_v46  ;;  %v4054_v12 = vunpack.i.l.bf16 %v4053_v46  ;;  %v4058_v15 = vpop.permute.xlu1 %4057  ;;  %1357 = vmatprep.subr.bf16.mxu1 %v1221_v24 }
  0xe9   : > { %v4060_v59 = vunpack.i.h.bf16 %v4058_v15  ;;  %v4059_v40 = vunpack.i.l.bf16 %v4058_v15  ;;  %1358 = vmatpush1.bf16.msra.mxu1 %v1220_v58  ;;  %4252 = vrot.lane.b32.xlu1 %v5383_v6, %s7253_s16 }
  0xea   : > { %v682_v9 = vsel %vm680_vm14, %v4054_v12, %v4055_v35 }
  0xeb   : > { %v5389_v5 = vpop.permute.xlu0 %672  ;;  %v1212_v0 = vpack.c.bf16 %v682_v9, %v5108_v21  ;;  %v681_v56 = vsel %vm680_vm14, %v4059_v40, %v4054_v12  ;;  %v683_v49 = vsel %vm680_vm14, %v4055_v35, %v4060_v59  ;;  %v7255_v12 = vpack.c.bf16 %v5137_v43, %v5127_v34 }
  0xec   : > { %v684_v10 = vsel %vm680_vm14, %v4060_v59, %v5389_v5  ;;  %v4063_v24 = vpop.permute.xlu1 %4062  ;;  %v1211_v46 = vpack.c.bf16 %v681_v56, %v650_v48  ;;  %v1213_v11 = vpack.c.bf16 %v683_v49, %v5114_v29  ;;  %v3990_v29 = vunpack.i.h.bf16 %v5293_v7 }
  0xed   : > { %v4065_v58 = vunpack.i.h.bf16 %v4063_v24  ;;  %v4064_v15 = vunpack.i.l.bf16 %v4063_v24  ;;  %1318 = vmatprep.subr.bf16.mxu0 %v1212_v0  ;;  %4257 = vrot.lane.b32.xlu1 %v5383_v6, %s7254_s0  ;;  %v1214_v21 = vpack.c.bf16 %v684_v10, %v5117_v30  ;;  %v7256_v30 = vpack.c.bf16 %v5155_v53, %v5140_v44 }
  0xee   : > { %1319 = vmatpush1.bf16.msra.mxu0 %v1211_v46  ;;  %v7257_v43 = vpack.c.bf16 %v5183_v4, %v5171_v62  ;;  %v557_v49 = vsel %vm556_vm4, %v3940_v18, %v5191_v13  ;;  %v7258_v62 = vpack.c.bf16 %v5152_v52, %v5134_v41  ;;  %v5433_v4 = vld [vmem:[%s7259_s1] sm:$0xff]  ;;  %v7260_v41 = vunpack.i.l.bf16 %v5293_v7  ;;  %s7270_s1 = smov 63  }
  0xef   : > { %v4068_v35 = vpop.permute.xlu0 %4067  ;;  %1320 = vmatprep.subr.bf16.mxu0 %v7255_v12  ;;  %1359 = vmatprep.subr.bf16.mxu1 %v1214_v21  ;;  %v527_v59 = vsel %vm7198_vm15, %v4064_v15, %v4065_v58  ;;  %v7261_v18 = vunpack.i.l.bf16 %v5103_v19 }
  0xf0   : > { %v4070_v40 = vunpack.i.h.bf16 %v4068_v35  ;;  %v4069_v9 = vunpack.i.l.bf16 %v4068_v35  ;;  %v5407_v0 = vpop.permute.xlu1 %519  ;;  %1360 = vmatpush1.bf16.msra.mxu1 %v1213_v11  ;;  %v1198_v48 = vpack.c.bf16 %v5200_v33, %v527_v59  ;;  %v5447_v52 = vsel %vm441_vm7, %v7260_v41, %v3990_v29 }
  0xf1   : > { %1361 = vmatprep.subr.bf16.mxu1 %v7256_v30  ;;  %v7262_v35 = vunpack.i.l.bf16 %v5142_v47 }
  0xf2   : > { %v529_v34 = vsel %vm7198_vm15, %v4070_v40, %v5407_v0  ;;  %1321 = vmatpush1.bf16.msra.mxu0 %v7257_v43  ;;  %v526_v56 = vsel %vm7198_vm15, %v4069_v9, %v4064_v15  ;;  %v528_v33 = vsel %vm7198_vm15, %v4065_v58, %v4070_v40  ;;  %v5439_v58 = vcombine.high %v5433_v4, %v5433_v4 }
  0xf3   : > { %v5422_v10 = vpop.permute.xlu0 %4072  ;;  %1322 = vmatprep.subr.bf16.mxu0 %v1198_v48  ;;  %v1200_v44 = vpack.c.bf16 %v5232_v27, %v529_v34  ;;  %v1197_v53 = vpack.c.bf16 %v557_v49, %v526_v56  ;;  %v1191_v27 = vpack.c.bf16 %v5243_v50, %v5218_v17  ;;  %v1199_v21 = vpack.c.bf16 %v5203_v36, %v528_v33  ;;  %v4746_v48 = vld [vmem:[%s4971_s19 + $0x8] sm:$0xff] }
  0xf4   : > { %v4074_v24 = vunpack.i.l.bf16 %v5422_v10  ;;  %v4078_v46 = vpop.permute.xlu1 %4077  ;;  %1362 = vmatpush1.bf16.msra.mxu1 %v7258_v62  ;;  %vm1286_vm15 = vcmask 588800   ;;  %v1193_v36 = vpack.c.bf16 %v5277_v25, %v5272_v37  ;;  %v1190_v37 = vpack.c.bf16 %v5262_v32, %v5250_v55 }
  0xf5   : > { %v4080_v13 = vunpack.i.h.bf16 %v4078_v46  ;;  %v4079_v15 = vunpack.i.l.bf16 %v4078_v46  ;;  %1363 = vmatprep.subr.bf16.mxu1 %v1200_v44  ;;  %3574 = vmatprep.mubr.msk.bf16.mxu1 %vm1286_vm15, %v5439_v58  ;;  %v1184_v34 = vpack.c.bf16 %v5289_v22, %v4746_v48  ;;  %v1192_v43 = vpack.c.bf16 %v5253_v8, %v5240_v45 }
  0xf6   : > { %1323 = vmatpush1.bf16.msra.mxu0 %v1197_v53  ;;  %v5454_v17 = vsel %vm649_vm0, %v7261_v18, %v4074_v24  ;;  %v7264_v32 = vunpack.i.l.bf16 %v5157_v54  ;;  %v4747_v53 = vld [vmem:[%s4971_s19 + $0x18] sm:$0xff]  ;;  %v4748_v54 = vld [vmem:[%s4971_s19] sm:$0xff]  ;;  %3572 = vmatprep.mubr.msk.bf16.mxu0 %vm1286_vm15, %v5439_v58  ;;  %v7265_v46 = vunpack.i.l.bf16 %v5195_v28  ;;  %v4749_v28 = vld [vmem:[%s4971_s19 + $0x10] sm:$0xff] }
  0xf7   : > { %v4083_v50 = vpop.permute.xlu0 %4082  ;;  %1324 = vmatprep.subr.bf16.mxu0 %v1191_v27  ;;  %v4216_v11 = vpack.i.bf16 %v5454_v17, %v5447_v52  ;;  %v5463_v12 = vsel %vm587_vm1, %v7262_v35, %v4079_v15  ;;  %v5466_v19 = vsel %vm587_vm1, %v4079_v15, %v4080_v13  ;;  %v1186_v22 = vpack.c.bf16 %v5319_v51, %v4747_v53 }
  0xf8   : > { %v4085_v59 = vunpack.i.h.bf16 %v4083_v50  ;;  %v4084_v40 = vunpack.i.l.bf16 %v4083_v50  ;;  %v5468_v9 = vpop.permute.xlu1 %4087  ;;  %1364 = vmatpush1.bf16.msra.mxu1 %v1199_v21  ;;  %v4266_v30 = vpack.i.bf16 %v5466_v19, %v5463_v12  ;;  %v1183_v33 = vpack.c.bf16 %v5303_v63, %v4748_v54  ;;  %v5533_v50 = vld [vmem:[%s4971_s19 + $0x30] sm:$0xff] }
  0xf9   : > { %v4090_v47 = vunpack.i.h.bf16 %v5468_v9  ;;  %v4089_v25 = vunpack.i.l.bf16 %v5468_v9  ;;  %1365 = vmatprep.subr.bf16.mxu1 %v1193_v36  ;;  %4217 = vrot.lane.b32.xlu0 %v4216_v11, %s7263_s23  ;;  %v1185_v15 = vpack.c.bf16 %v5306_v61, %v4749_v28  ;;  %v7208_v21 = vmov 0  }
  0xfa   : > { %4267 = vrot.lane.b32.xlu1 %v4266_v30, %s7263_s23  ;;  %1325 = vmatpush1.bf16.msra.mxu0 %v1190_v37  ;;  %v4276_v55 = vpack.i.bf16 %v4085_v59, %v4080_v13  ;;  %v5487_v56 = vsel %vm618_vm2, %v7264_v32, %v4084_v40  ;;  %v5490_v49 = vsel %vm618_vm2, %v4084_v40, %v4085_v59  ;;  %v7267_v36 = vunpack.i.h.bf16 %v5255_v16 }
  0xfb   : > { %v5492_v44 = vpop.permute.xlu0 %902  ;;  %1326 = vmatprep.subr.bf16.mxu0 %v1184_v34  ;;  %v5507_v62 = vsel %vm556_vm4, %v7265_v46, %v4089_v25  ;;  %v5512_v51 = vsel %vm556_vm4, %v4089_v25, %v4090_v47  ;;  %v1209_v63 = vpack.c.bf16 %v5487_v56, %v5463_v12  ;;  %4326 = vset.pattern.permute.xlu1 %v7208_v21  ;;  %v7268_v59 = vunpack.i.h.bf16 %v5237_v42 }
  0xfc   : > { %v5498_v8 = vpop.permute.xlu1 %4097  ;;  %1366 = vmatpush1.bf16.msra.mxu1 %v1192_v43  ;;  %4612 = vset.pattern.permute.xlu0 %v7208_v21  ;;  %v4286_v18 = vpack.i.bf16 %v5512_v51, %v5507_v62  ;;  %v5537_v61 = vpack.i.bf16 %v5533_v50, %v5379_v23  ;;  %vm1055_vm1 = vcmask 252928   ;;  %v4075_v53 = vunpack.i.h.bf16 %v5422_v10 }
  0xfd   : > { %1367 = vmatprep.subr.bf16.mxu1 %v1186_v22  ;;  %4227 = vrot.lane.b32.xlu0 %v5383_v6, %s7266_s30  ;;  %v5519_v13 = vunpack.i.l.bf16 %v5498_v8  ;;  %v4100_v25 = vunpack.i.h.bf16 %v5498_v8  ;;  %vm1290_vm2 = vcmask 1043456   ;;  %v7275_v12 = vpack.c.bf16 %v5490_v49, %v5466_v19 }
  0xfe   : > { %4277 = vrot.lane.b32.xlu1 %v4276_v55, %s7263_s23  ;;  %1327 = vmatpush1.bf16.msra.mxu0 %v1183_v33 }
  0xff   : > { %v4093_v27 = vpop.permute.xlu0 %4092  ;;  %v5543_v11 = vsel %vm497_vm6, %v7267_v36, %v5519_v13 }
 0x100   : > { %v4095_v6 = vunpack.i.h.bf16 %v4093_v27  ;;  %v5526_v41 = vunpack.i.l.bf16 %v4093_v27  ;;  %1368 = vmatpush1.bf16.msra.mxu1 %v1185_v15 }
 0x101   : > { %864 = vrot.lane.b32.xlu0 %v5078_v14, %s7266_s30  ;;  %s7269_s30 = smov 61  }
 0x102   : > { %v886_v35 = vsel %vm469_vm5, %v5526_v41, %v4095_v6  ;;  %v5551_v40 = vsel %vm469_vm5, %v7268_v59, %v5526_v41  ;;  %4287 = vrot.lane.b32.xlu1 %v4286_v18, %s7263_s23  ;;  %v4306_v42 = vpack.i.bf16 %v4100_v25, %v4095_v6 }
 0x103   : > { %v4296_v37 = vpack.i.bf16 %v886_v35, %v5551_v40 }
 0x105   : > { %4237 = vrot.lane.b32.xlu0 %v5537_v61, %s7269_s30 }
 0x106   : > { %4297 = vrot.lane.b32.xlu1 %v4296_v37, %s7263_s23  ;;  %v5585_v37 = vsel %vm649_vm0, %v4074_v24, %v4075_v53  ;;  %vm7272_vm0 = vcmask 1014784  }
 0x107   : > { %v4261_v10 = vpack.i.bf16 %v4075_v53, %v5585_v37  ;;  %v4271_v53 = vpack.i.bf16 %v5490_v49, %v5487_v56  ;;  %v7276_v56 = vld [vmem:[#allocation8_spill] sm:$0xff] }
 0x109   : > { %802 = vrot.lane.b32.xlu0 %v5078_v14, %s7269_s30  ;;  %s4837_s30 = smov 56  }
 0x10a   : > { %4307 = vrot.lane.b32.xlu1 %v4306_v42, %s7263_s23 }
 0x10b   : > { %v4103_v48 = vpop.permute.xlu1 %4102 }
 0x10c   : > { %v4105_v34 = vunpack.i.h.bf16 %v4103_v48  ;;  %v4104_v43 = vunpack.i.l.bf16 %v4103_v48 }
 0x10d   : > { %4247 = vrot.lane.b32.xlu0 %v5537_v61, %s7270_s1 }
 0x10e   : > { %v1112_v55 = vsel %vm1055_vm1, %v4104_v43, %v4105_v34 }
 0x10f   : > { %v4108_v32 = vpop.permute.xlu0 %4107  ;;  %v1267_v28 = vpack.c.bf16 %v1112_v55, %v1112_v55 }
 0x110   : > { %v4110_v22 = vunpack.i.h.bf16 %v4108_v32  ;;  %v4109_v54 = vunpack.i.l.bf16 %v4108_v32  ;;  %v5572_v33 = vpop.permute.xlu1 %4112 }
 0x111   : > { %v7205_v46 = vunpack.i.l.bf16 %v5572_v33  ;;  %740 = vrot.lane.b32.xlu0 %v5078_v14, %s7270_s1  ;;  %v1292_v42 = vsel %vm1290_vm2, %v1267_v28, 0  ;;  %v4115_v24 = vunpack.i.h.bf16 %v5572_v33  ;;  %s4841_s1 = smov 50  }
 0x112   : > { %v1113_v15 = vsel %vm1055_vm1, %v4105_v34, %v4109_v54  ;;  %v1114_v27 = vsel %vm1055_vm1, %v4109_v54, %v4110_v22 }
 0x113   : > { %v1268_v6 = vpack.c.bf16 %v1113_v15, %v1113_v15  ;;  %v1115_v18 = vsel %vm1055_vm1, %v4110_v22, %v7205_v46  ;;  %v1269_v36 = vpack.c.bf16 %v1114_v27, %v1114_v27 }
 0x114   : > { %v4118_v35 = vpop.permute.xlu0 %4117  ;;  %v1270_v59 = vpack.c.bf16 %v1115_v18, %v1115_v18 }
 0x115   : > { %3571 = vmatprep.subr.msk.bf16.mxu0 %vm1290_vm2, %v1268_v6  ;;  %678 = vrot.lane.b32.xlu0 %v5078_v14, %s7253_s16  ;;  %v1298_v48 = vsel %vm1290_vm2, %v1269_v36, 0  ;;  %v4119_v34 = vunpack.i.l.bf16 %v4118_v35  ;;  %v4120_v55 = vunpack.i.h.bf16 %v4118_v35  ;;  %v3945_v14 = vunpack.i.h.bf16 %v5207_v38  ;;  %s4842_s16 = smov 25  }
 0x116   : > { %3573 = vmatprep.subr.msk.bf16.mxu1 %vm1290_vm2, %v1270_v59  ;;  %1335 = vmatpush2.bf16.msra.mxu0 %v1292_v42 }
 0x117   : > { %1376 = vmatpush2.bf16.msra.mxu1 %v1298_v48  ;;  %v4123_v43 = vpop.permute.xlu1 %4122  ;;  %v1099_v28 = vsel %vm1055_vm1, %v4115_v24, %v4119_v34  ;;  %v910_v59 = vsel %vm904_vm3, %v3945_v14, %v5492_v44  ;;  %v7271_v48 = vunpack.i.l.bf16 %v5207_v38 }
 0x118   : > { %v4128_v32 = vpop.permute.xlu0 %4127  ;;  %v4125_v22 = vunpack.i.h.bf16 %v4123_v43  ;;  %v4124_v54 = vunpack.i.l.bf16 %v4123_v43 }
 0x119   : > { %v4129_v15 = vunpack.i.l.bf16 %v4128_v32  ;;  %4262 = vrot.lane.b32.xlu0 %v4261_v10, %s7263_s23  ;;  %v909_v43 = vsel %vm904_vm3, %v7271_v48, %v3945_v14  ;;  %v889_v14 = vsel %vm497_vm6, %v5519_v13, %v4100_v25  ;;  %vm7273_vm3 = vmmov %vm7272_vm0 }
 0x11a   : > { %v1106_v27 = vsel %vm1055_vm1, %v4120_v55, %v4124_v54  ;;  %v1098_v6 = vsel %vm1055_vm1, %v4125_v22, %v4115_v24  ;;  %v4281_v24 = vpack.i.bf16 %v910_v59, %v909_v43  ;;  %v4130_v22 = vunpack.i.h.bf16 %v4128_v32 }
 0x11b   : > { %v5600_v18 = vpop.permute.xlu1 %4132  ;;  %v1261_v36 = vpack.c.bf16 %v1106_v27, %v1099_v28  ;;  %v1105_v35 = vsel %vm1055_vm1, %v4129_v15, %v4120_v55  ;;  %v4291_v15 = vpack.i.bf16 %v4090_v47, %v5492_v44  ;;  %v4301_v43 = vpack.i.bf16 %v889_v14, %v5543_v11 }
 0x11c   : > { %v1260_v42 = vpack.c.bf16 %v1105_v35, %v1098_v6  ;;  %v4135_v10 = vunpack.i.h.bf16 %v5600_v18  ;;  %v7201_v28 = vunpack.i.l.bf16 %v5600_v18 }
 0x11d   : > { %4272 = vrot.lane.b32.xlu0 %v4271_v53, %s7263_s23  ;;  %1336 = vmatprep.subr.bf16.mxu0 %v1261_v36  ;;  %v1100_v36 = vsel %vm1055_vm1, %v4119_v34, %v4130_v22 }
 0x11e   : > { %1337 = vmatpush2.bf16.msra.mxu0 %v1260_v42  ;;  %v1107_v38 = vsel %vm1055_vm1, %v4124_v54, %v4135_v10  ;;  %v1101_v6 = vsel %vm1055_vm1, %v4130_v22, %v7201_v28 }
 0x11f   : > { %v1262_v25 = vpack.c.bf16 %v1107_v38, %v1100_v36 }
 0x120   : > { %v5613_v27 = vpop.permute.xlu0 %4137 }
 0x121   : > { %v7202_v55 = vunpack.i.l.bf16 %v5613_v27  ;;  %4282 = vrot.lane.b32.xlu0 %v4281_v24, %s7263_s23  ;;  %v4140_v9 = vunpack.i.h.bf16 %v5613_v27 }
 0x123   : > { %v4143_v32 = vpop.permute.xlu1 %4142  ;;  %v1108_v53 = vsel %vm1055_vm1, %v4135_v10, %v7202_v55 }
 0x124   : > { %v4148_v47 = vpop.permute.xlu0 %4147  ;;  %v4145_v44 = vunpack.i.h.bf16 %v4143_v32  ;;  %v4144_v54 = vunpack.i.l.bf16 %v4143_v32  ;;  %v1263_v8 = vpack.c.bf16 %v1108_v53, %v1101_v6 }
 0x125   : > { %v4149_v35 = vunpack.i.l.bf16 %v4148_v47  ;;  %4292 = vrot.lane.b32.xlu0 %v4291_v15, %s7263_s23  ;;  %v4150_v42 = vunpack.i.h.bf16 %v4148_v47 }
 0x126   : > { %1377 = vmatprep.subr.bf16.mxu1 %v1263_v8  ;;  %v1085_v59 = vsel %vm1055_vm1, %v4140_v9, %v4144_v54 }
 0x127   : > { %1378 = vmatpush2.bf16.msra.mxu1 %v1262_v25  ;;  %v4153_v48 = vpop.permute.xlu1 %4152  ;;  %v1092_v34 = vsel %vm1055_vm1, %v4145_v44, %v4149_v35  ;;  %v1084_v47 = vsel %vm1055_vm1, %v4150_v42, %v4140_v9 }
 0x128   : > { %v4158_v10 = vpop.permute.xlu0 %4157  ;;  %v4155_v24 = vunpack.i.h.bf16 %v4153_v48  ;;  %v5637_v22 = vunpack.i.l.bf16 %v4153_v48  ;;  %v1254_v32 = vpack.c.bf16 %v1092_v34, %v1085_v59  ;;  %v4751_v48 = vld [vmem:[%s4971_s19 + $0x38] sm:$0xff] }
 0x129   : > { %v4159_v6 = vunpack.i.l.bf16 %v4158_v10  ;;  %4302 = vrot.lane.b32.xlu0 %v4301_v43, %s7263_s23  ;;  %v4160_v15 = vunpack.i.h.bf16 %v4158_v10 }
 0x12a   : > { %v5644_v38 = vsel %vm441_vm7, %v3990_v29, %v5637_v22  ;;  %v883_v14 = vsel %vm441_vm7, %v5637_v22, %v4155_v24  ;;  %1338 = vmatprep.subr.bf16.mxu0 %v1254_v32  ;;  %v4321_v43 = vpack.i.bf16 %v4155_v24, %v4751_v48 }
 0x12b   : > { %v5648_v53 = vpop.permute.xlu1 %4162  ;;  %v4316_v36 = vpack.i.bf16 %v883_v14, %v5644_v38  ;;  %v1091_v8 = vsel %vm1055_vm1, %v4159_v6, %v4145_v44  ;;  %v1086_v44 = vsel %vm1055_vm1, %v4144_v54, %v4160_v15 }
 0x12c   : > { %v5653_v25 = vpop.permute.xlu0 %4167  ;;  %v4165_v59 = vunpack.i.h.bf16 %v5648_v53  ;;  %v7200_v7 = vunpack.i.l.bf16 %v5648_v53  ;;  %v1253_v29 = vpack.c.bf16 %v1091_v8, %v1084_v47 }
 0x12d   : > { %v7199_v34 = vunpack.i.l.bf16 %v5653_v25  ;;  %4312 = vrot.lane.b32.xlu0 %v5537_v61, %s7263_s23  ;;  %4317 = vrot.lane.b32.xlu1 %v4316_v36, %s7263_s23  ;;  %v4170_v6 = vunpack.i.h.bf16 %v5653_v25 }
 0x12e   : > { %1339 = vmatpush2.bf16.msra.mxu0 %v1253_v29  ;;  %v1087_v9 = vsel %vm1055_vm1, %v4160_v15, %v7200_v7  ;;  %v1093_v42 = vsel %vm1055_vm1, %v4149_v35, %v4165_v59  ;;  %v1274_v35 = vld [vmem:[%s7148_s2] sm:$0xff] }
 0x12f   : > { %v4173_v10 = vpop.permute.xlu1 %4172  ;;  %v1094_v24 = vsel %vm1055_vm1, %v4165_v59, %v7199_v34  ;;  %v1255_v32 = vpack.c.bf16 %v1093_v42, %v1086_v44 }
 0x130   : > { %v4178_v61 = vpop.permute.xlu0 %4177  ;;  %v4175_v14 = vunpack.i.h.bf16 %v4173_v10  ;;  %v4174_v36 = vunpack.i.l.bf16 %v4173_v10  ;;  %v1256_v47 = vpack.c.bf16 %v1094_v24, %v1087_v9 }
 0x131   : > { %v4179_v8 = vunpack.i.l.bf16 %v4178_v61  ;;  %4322 = vrot.lane.b32.xlu0 %v4321_v43, %s7263_s23  ;;  %v4180_v29 = vunpack.i.h.bf16 %v4178_v61  ;;  %1277 = vperm.xlu1 %4326, %v1274_v35   ;;  %s4836_s23 = smov 120  }
 0x132   : > { %1379 = vmatprep.subr.bf16.mxu1 %v1256_v47  ;;  %v1071_v54 = vsel %vm1055_vm1, %v4170_v6, %v4174_v36 }
 0x133   : > { %1380 = vmatpush2.bf16.msra.mxu1 %v1255_v32  ;;  %v4183_v15 = vpop.permute.xlu1 %4182  ;;  %v1078_v59 = vsel %vm1055_vm1, %v4175_v14, %v4179_v8  ;;  %v1070_v24 = vsel %vm1055_vm1, %v4180_v29, %v4170_v6 }
 0x134   : > { %v5677_v48 = vpop.permute.xlu0 %4187  ;;  %v4184_v44 = vunpack.i.l.bf16 %v4183_v15  ;;  %v1247_v9 = vpack.c.bf16 %v1078_v59, %v1071_v54  ;;  %v4185_v10 = vunpack.i.h.bf16 %v4183_v15 }
 0x135   : > { %v4190_v42 = vunpack.i.h.bf16 %v5677_v48  ;;  %v7203_v43 = vunpack.i.l.bf16 %v5677_v48 }
 0x136   : > { %1340 = vmatprep.subr.bf16.mxu0 %v1247_v9  ;;  %v1077_v61 = vsel %vm1055_vm1, %v4184_v44, %v4175_v14  ;;  %v1072_v59 = vsel %vm1055_vm1, %v4174_v36, %v4185_v10 }
 0x137   : > { %v5683_v47 = vpop.permute.xlu1 %4192  ;;  %v1246_v32 = vpack.c.bf16 %v1077_v61, %v1070_v24  ;;  %v1073_v54 = vsel %vm1055_vm1, %v4185_v10, %v7203_v43  ;;  %v1079_v15 = vsel %vm1055_vm1, %v4179_v8, %v4190_v42 }
 0x138   : > { %v4198_v34 = vpop.permute.xlu0 %4197  ;;  %v7204_v35 = vunpack.i.l.bf16 %v5683_v47  ;;  %v4195_v6 = vunpack.i.h.bf16 %v5683_v47  ;;  %v1248_v28 = vpack.c.bf16 %v1079_v15, %v1072_v59 }
 0x139   : > { %1341 = vmatpush2.bf16.msra.mxu0 %v1246_v32  ;;  %v4200_v9 = vunpack.i.h.bf16 %v4198_v34  ;;  %v4199_v7 = vunpack.i.l.bf16 %v4198_v34 }
 0x13a   : > { %v1080_v14 = vsel %vm1055_vm1, %v4190_v42, %v7204_v35  ;;  %v5701_v42 = vcombine.low %v5433_v4, %v5433_v4 }
 0x13b   : > { %v4203_v29 = vpop.permute.xlu1 %4202  ;;  %v1249_v44 = vpack.c.bf16 %v1080_v14, %v1073_v54  ;;  %v1057_v36 = vsel %vm1055_vm1, %v4195_v6, %v4199_v7 }
 0x13c   : > { %v4208_v24 = vpop.permute.xlu0 %4207  ;;  %v4205_v61 = vunpack.i.h.bf16 %v4203_v29  ;;  %v4204_v32 = vunpack.i.l.bf16 %v4203_v29 }
 0x13d   : > { %v4209_v55 = vunpack.i.l.bf16 %v4208_v24  ;;  %1381 = vmatprep.subr.bf16.mxu1 %v1249_v44 }
 0x13e   : > { %1382 = vmatpush2.bf16.msra.mxu1 %v1248_v28  ;;  %v1064_v8 = vsel %vm1055_vm1, %v4200_v9, %v4204_v32  ;;  %v1056_v34 = vsel %vm1055_vm1, %v4205_v61, %v4195_v6 }
 0x13f   : > { %v1240_v10 = vpack.c.bf16 %v1064_v8, %v1057_v36  ;;  %v1063_v43 = vsel %vm1055_vm1, %v4209_v55, %v4200_v9  ;;  %v5706_v28 = vpop.permute.xlu1 %4212  ;;  %v4210_v9 = vunpack.i.h.bf16 %v4208_v24 }
 0x140   : > { %v1239_v30 = vpack.c.bf16 %v1063_v43, %v1056_v34  ;;  %v4215_v55 = vunpack.i.h.bf16 %v5706_v28  ;;  %v7206_v43 = vunpack.i.l.bf16 %v5706_v28 }
 0x141   : > { %1342 = vmatprep.subr.bf16.mxu0 %v1240_v10  ;;  %v1058_v10 = vsel %vm1055_vm1, %v4199_v7, %v4210_v9 }
 0x142   : > { %1343 = vmatpush2.bf16.msra.mxu0 %v1239_v30  ;;  %v1065_v29 = vsel %vm1055_vm1, %v4204_v32, %v4215_v55  ;;  %v1059_v36 = vsel %vm1055_vm1, %v4210_v9, %v7206_v43 }
 0x143   : > { %v4223_v54 = vpop.permute.xlu1 %4222  ;;  %v1241_v16 = vpack.c.bf16 %v1065_v29, %v1058_v10 }
 0x144   : > { %v4225_v44 = vunpack.i.h.bf16 %v4223_v54  ;;  %v4224_v61 = vunpack.i.l.bf16 %v4223_v54 }
 0x145   : > { %1345 = vmatmul.mubr.bf16.vlgmr.msra.gmra.mxu0 %v5701_v42 }
 0x146   : > { %3576 = vmatprep.mubr.msk.bf16.mxu0 %vm1286_vm15, %v5439_v58  ;;  %v840_v32 = vsel %vm835_vm8, %v5324_v39, %v4224_v61  ;;  %v841_v43 = vsel %vm835_vm8, %v4224_v61, %v4225_v44 }
 0x147   : > { %v834_v59 = vpop.permute.xlu1 %833 }
 0x148   : > { %v842_v7 = vsel %vm835_vm8, %v4225_v44, %v834_v59 }
 0x14b   : > { %v4233_v15 = vpop.permute.xlu1 %4232 }
 0x14c   : > { %v4235_v39 = vunpack.i.h.bf16 %v4233_v15 }
 0x14f   : > { %v772_v6 = vpop.permute.xlu1 %771 }
 0x153   : > { %v5713_v30 = vpop.permute.xlu1 %4242 }
 0x154   : > { %v4244_v10 = vunpack.i.l.bf16 %v5713_v30 }
 0x16b   : > { %v5710_v14 = vpop.permute.xlu0 %4217 }
 0x16c   : > { %v7207_v4 = vunpack.i.l.bf16 %v5710_v14 }
 0x16e   : > { %v1066_v8 = vsel %vm1055_vm1, %v4215_v55, %v7207_v4  ;;  %v710_v55 = vpop.permute.xlu1 %709 }
 0x16f   : > { %v4228_v34 = vpop.permute.xlu0 %4227  ;;  %v1242_v24 = vpack.c.bf16 %v1066_v8, %v1059_v36 }
 0x170   : > { %v4230_v35 = vunpack.i.h.bf16 %v4228_v34  ;;  %v4229_v46 = vunpack.i.l.bf16 %v4228_v34  ;;  %v780_v34 = vsel %vm773_vm10, %v4235_v39, %v772_v6  ;;  %v716_v6 = vsel %vm711_vm12, %v5365_v2, %v4244_v10 }
 0x171   : > { %1383 = vmatprep.subr.bf16.mxu1 %v1242_v24 }
 0x172   : > { %v871_v54 = vsel %vm866_vm9, %v5329_v1, %v4229_v46  ;;  %1384 = vmatpush2.bf16.msra.mxu1 %v1241_v16  ;;  %v872_v45 = vsel %vm866_vm9, %v4229_v46, %v4230_v35  ;;  %v4234_v1 = vunpack.i.l.bf16 %v4233_v15 }
 0x173   : > { %v865_v4 = vpop.permute.xlu0 %864  ;;  %v1237_v36 = vpack.c.bf16 %v872_v45, %v841_v43  ;;  %v1236_v8 = vpack.c.bf16 %v871_v54, %v840_v32  ;;  %1435 = vmatprep.subr.bf16.mxu1 %v7208_v21  ;;  %v4253_v43 = vpop.permute.xlu1 %4252 }
 0x174   : > { %v873_v9 = vsel %vm866_vm9, %v4230_v35, %v865_v4  ;;  %v778_v35 = vsel %vm773_vm10, %v5345_v20, %v4234_v1  ;;  %v779_v4 = vsel %vm773_vm10, %v4234_v1, %v4235_v39  ;;  %v4245_v20 = vunpack.i.h.bf16 %v5713_v30  ;;  %vm7294_vm9 = vmmov %vm7272_vm0 }
 0x175   : > { %v1238_v29 = vpack.c.bf16 %v873_v9, %v842_v7  ;;  %1386 = vmatmul.mubr.bf16.vlgmr.msra.gmra.mxu1 %v5701_v42  ;;  %1394 = vmatprep.subr.bf16.mxu0 %v1237_v36  ;;  %v4255_v54 = vunpack.i.h.bf16 %v4253_v43  ;;  %v4254_v36 = vunpack.i.l.bf16 %v4253_v43 }
 0x176   : > { %1395 = vmatpush1.bf16.msra.mxu0 %v1236_v8  ;;  %3577 = vmatprep.mubr.msk.bf16.mxu1 %vm1286_vm15, %v5439_v58  ;;  %v717_v39 = vsel %vm711_vm12, %v4244_v10, %v4245_v20 }
 0x177   : > { %v4238_v16 = vpop.permute.xlu0 %4237  ;;  %1436 = vmatpush1.bf16.msra.mxu1 %v1238_v29  ;;  %v686_v1 = vsel %vm680_vm14, %v4254_v36, %v4255_v54  ;;  %v685_v2 = vsel %vm680_vm14, %v5389_v5, %v4254_v36  ;;  %v7277_v36 = vpack.c.bf16 %v5543_v11, %v5551_v40 }
 0x178   : > { %v4240_v45 = vunpack.i.h.bf16 %v4238_v16  ;;  %v4239_v46 = vunpack.i.l.bf16 %v4238_v16  ;;  %1437 = vmatprep.subr.bf16.mxu1 %v7208_v21 }
 0x17a   : > { %v809_v59 = vsel %vm804_vm11, %v5350_v60, %v4239_v46  ;;  %v810_v15 = vsel %vm804_vm11, %v4239_v46, %v4240_v45  ;;  %v4258_v60 = vpop.permute.xlu1 %4257 }
 0x17b   : > { %v803_v44 = vpop.permute.xlu0 %802  ;;  %v1230_v61 = vpack.c.bf16 %v810_v15, %v779_v4  ;;  %v1229_v58 = vpack.c.bf16 %v809_v59, %v778_v35  ;;  %v718_v35 = vsel %vm711_vm12, %v4245_v20, %v710_v55  ;;  %v4260_v15 = vunpack.i.h.bf16 %v4258_v60 }
 0x17c   : > { %v811_v24 = vsel %vm804_vm11, %v4240_v45, %v803_v44  ;;  %v4259_v44 = vunpack.i.l.bf16 %v4258_v60  ;;  %vm7295_vm11 = vmmov %vm7272_vm0 }
 0x17d   : > { %v1231_v32 = vpack.c.bf16 %v811_v24, %v780_v34  ;;  %1396 = vmatprep.subr.bf16.mxu0 %v1230_v61  ;;  %v1215_v34 = vpack.c.bf16 %v685_v2, %v5122_v31 }
 0x17e   : > { %1397 = vmatpush1.bf16.msra.mxu0 %v1229_v58  ;;  %v5754_v16 = vpop.permute.xlu1 %4267  ;;  %v531_v24 = vsel %vm7272_vm0, %v4259_v44, %v4260_v15  ;;  %v530_v31 = vsel %vm7273_vm3, %v5407_v0, %v4259_v44  ;;  %v1203_v0 = vpack.c.bf16 %v5512_v51, %v4260_v15  ;;  %v1188_v51 = vpack.c.bf16 %v5644_v38, %v5379_v23 }
 0x17f   : > { %v4248_v8 = vpop.permute.xlu0 %4247  ;;  %1438 = vmatpush1.bf16.msra.mxu1 %v1231_v32  ;;  %v1202_v10 = vpack.c.bf16 %v5507_v62, %v531_v24  ;;  %v7274_v32 = vpack.c.bf16 %v5180_v3, %v5164_v57  ;;  %v4220_v62 = vunpack.i.h.bf16 %v5710_v14  ;;  %v4270_v40 = vunpack.i.h.bf16 %v5754_v16 }
 0x180   : > { %v4250_v7 = vunpack.i.h.bf16 %v4248_v8  ;;  %v4249_v9 = vunpack.i.l.bf16 %v4248_v8  ;;  %1439 = vmatprep.subr.bf16.mxu1 %v7208_v21  ;;  %v7278_v8 = vunpack.i.l.bf16 %v5572_v33  ;;  %v4752_v33 = vld [vmem:[%s4971_s19 + $0x20] sm:$0xff]  ;;  %s4833_s19 = smov 58   ;;  %vm1749_vm3 = vcmask 457728  }
 0x181   : > { %v1187_v38 = vpack.c.bf16 %v5447_v52, %v4752_v33 }
 0x182   : > { %v747_v29 = vsel %vm742_vm13, %v5370_v26, %v4249_v9  ;;  %v748_v30 = vsel %vm742_vm13, %v4249_v9, %v4250_v7  ;;  %v1216_v26 = vpack.c.bf16 %v686_v1, %v5454_v17  ;;  %v5764_v55 = vpop.permute.xlu1 %4277  ;;  %v7279_v9 = vld [vmem:[#allocation10_spill] sm:$0xff]  ;;  %v7282_v1 = vpack.c.bf16 %v5519_v13, %v5526_v41 }
 0x183   : > { %v741_v45 = vpop.permute.xlu0 %740  ;;  %v1223_v46 = vpack.c.bf16 %v748_v30, %v717_v39  ;;  %v1222_v43 = vpack.c.bf16 %v747_v29, %v716_v6  ;;  %v7280_v6 = vld [vmem:[#allocation9_spill] sm:$0xff]  ;;  %v4269_v39 = vunpack.i.l.bf16 %v5754_v16  ;;  %v4279_v2 = vunpack.i.l.bf16 %v5764_v55 }
 0x184   : > { %v749_v59 = vsel %vm742_vm13, %v4250_v7, %v741_v45  ;;  %v1116_v7 = vsel %vm1055_vm1, %v7278_v8, %v4220_v62  ;;  %v7281_v29 = vpack.c.bf16 %v7279_v9, %v7280_v6  ;;  %vm1804_vm13 = vcmask 539648  }
 0x185   : > { %v1224_v4 = vpack.c.bf16 %v749_v59, %v718_v35  ;;  %1398 = vmatprep.subr.bf16.mxu0 %v1223_v46  ;;  %v1271_v45 = vpack.c.bf16 %v1116_v7, %v1116_v7  ;;  %v4280_v35 = vunpack.i.h.bf16 %v5764_v55 }
 0x186   : > { %1399 = vmatpush1.bf16.msra.mxu0 %v1222_v43  ;;  %v1189_v43 = vpack.c.bf16 %v5637_v22, %v5533_v50  ;;  %v1103_v50 = vsel %vm1055_vm1, %v4269_v39, %v4270_v40  ;;  %v7283_v22 = vunpack.i.l.bf16 %v5613_v27  ;;  %v7284_v27 = vunpack.i.l.bf16 %v5600_v18 }
 0x187   : > { %v679_v61 = vpop.permute.xlu0 %678  ;;  %1400 = vmatprep.subr.bf16.mxu0 %v1216_v26  ;;  %1440 = vmatpush1.bf16.msra.mxu1 %v1224_v4 }
 0x188   : > { %v687_v58 = vsel %vm680_vm14, %v4255_v54, %v679_v61  ;;  %1441 = vmatprep.subr.bf16.mxu1 %v7208_v21  ;;  %vm7296_vm14 = vmmov %vm7272_vm0 }
 0x189   : > { %v1217_v5 = vpack.c.bf16 %v687_v58, %v5585_v37  ;;  %v5778_v37 = vpop.permute.xlu1 %4287  ;;  %v1304_v58 = vsel %vm1290_vm2, %v1271_v45, 0 }
 0x18a   : > { %1401 = vmatpush1.bf16.msra.mxu0 %v1215_v34  ;;  %v4290_v52 = vunpack.i.h.bf16 %v5778_v37  ;;  %v4289_v4 = vunpack.i.l.bf16 %v5778_v37  ;;  %v1104_v37 = vsel %vm1055_vm1, %v4270_v40, %v4279_v2  ;;  %v7290_v2 = vunpack.i.l.bf16 %v5710_v14 }
 0x18b   : > { %v4263_v17 = vpop.permute.xlu0 %4262  ;;  %1402 = vmatprep.subr.bf16.mxu0 %v1209_v63  ;;  %1442 = vmatpush1.bf16.msra.mxu1 %v1217_v5  ;;  %v1201_v63 = vpack.c.bf16 %v7276_v56, %v530_v31 }
 0x18c   : > { %1443 = vmatprep.subr.bf16.mxu1 %v7208_v21  ;;  %v4264_v54 = vunpack.i.l.bf16 %v4263_v17  ;;  %v4265_v57 = vunpack.i.h.bf16 %v4263_v17 }
 0x18d   : > { %v5793_v19 = vpop.permute.xlu1 %4297 }
 0x18e   : > { %1403 = vmatpush1.bf16.msra.mxu0 %v7274_v32  ;;  %v1117_v11 = vsel %vm1055_vm1, %v4220_v62, %v4264_v54  ;;  %v1118_v23 = vsel %vm1055_vm1, %v4264_v54, %v4265_v57  ;;  %v1102_v32 = vsel %vm1055_vm1, %v7284_v27, %v4269_v39  ;;  %v7285_v62 = vunpack.i.l.bf16 %v5648_v53 }
 0x18f   : > { %v4273_v20 = vpop.permute.xlu0 %4272  ;;  %1404 = vmatprep.subr.bf16.mxu0 %v1202_v10  ;;  %1444 = vmatpush1.bf16.msra.mxu1 %v7275_v12  ;;  %v1272_v46 = vpack.c.bf16 %v1117_v11, %v1117_v11  ;;  %v1273_v41 = vpack.c.bf16 %v1118_v23, %v1118_v23  ;;  %v7286_v53 = vunpack.i.l.bf16 %v5653_v25 }
 0x190   : > { %1445 = vmatprep.subr.bf16.mxu1 %v7208_v21  ;;  %v4275_v49 = vunpack.i.h.bf16 %v4273_v20  ;;  %v4274_v60 = vunpack.i.l.bf16 %v4273_v20  ;;  %v4300_v20 = vunpack.i.h.bf16 %v5793_v19 }
 0x191   : > { %v4308_v26 = vpop.permute.xlu1 %4307  ;;  %v1310_v31 = vsel %vm1290_vm2, %v1273_v41, 0 }
 0x192   : > { %1405 = vmatpush1.bf16.msra.mxu0 %v1201_v63  ;;  %v1110_v16 = vsel %vm1055_vm1, %v4274_v60, %v4275_v49  ;;  %v1109_v44 = vsel %vm1055_vm1, %v7283_v22, %v4274_v60  ;;  %v1111_v61 = vsel %vm1055_vm1, %v4275_v49, %v4280_v35  ;;  %v1096_v63 = vsel %vm1055_vm1, %v4289_v4, %v4290_v52 }
 0x193   : > { %v5787_v3 = vpop.permute.xlu0 %4282  ;;  %1406 = vmatprep.subr.bf16.mxu0 %v7277_v36  ;;  %1446 = vmatpush1.bf16.msra.mxu1 %v1203_v0  ;;  %v1265_v34 = vpack.c.bf16 %v1110_v16, %v1103_v50  ;;  %v4299_v0 = vunpack.i.l.bf16 %v5793_v19  ;;  %v1264_v57 = vpack.c.bf16 %v1109_v44, %v1102_v32  ;;  %v1266_v18 = vpack.c.bf16 %v1111_v61, %v1104_v37 }
 0x194   : > { %1447 = vmatprep.subr.bf16.mxu1 %v7208_v21  ;;  %v4285_v59 = vunpack.i.h.bf16 %v5787_v3  ;;  %v4284_v13 = vunpack.i.l.bf16 %v5787_v3  ;;  %v1095_v19 = vsel %vm1055_vm1, %v7286_v53, %v4289_v4  ;;  %v4310_v6 = vunpack.i.h.bf16 %v4308_v26 }
 0x195   : > { %v4309_v11 = vunpack.i.l.bf16 %v4308_v26  ;;  %v1075_v39 = vsel %vm1055_vm1, %v4299_v0, %v4300_v20  ;;  %v7288_v16 = vunpack.i.l.bf16 %v5677_v48 }
 0x196   : > { %1407 = vmatpush1.bf16.msra.mxu0 %v7281_v29  ;;  %v1089_v10 = vsel %vm1055_vm1, %v4284_v13, %v4285_v59  ;;  %v1088_v54 = vsel %vm1055_vm1, %v7285_v62, %v4284_v13  ;;  %v7289_v13 = vunpack.i.l.bf16 %v5706_v28 }
 0x197   : > { %v4293_v30 = vpop.permute.xlu0 %4292  ;;  %1408 = vmatprep.subr.bf16.mxu0 %v1188_v51  ;;  %1448 = vmatpush1.bf16.msra.mxu1 %v7282_v1  ;;  %v1258_v49 = vpack.c.bf16 %v1096_v63, %v1089_v10  ;;  %v1257_v40 = vpack.c.bf16 %v1095_v19, %v1088_v54  ;;  %v1074_v35 = vsel %vm1055_vm1, %v7288_v16, %v4299_v0 }
 0x198   : > { %1449 = vmatprep.subr.bf16.mxu1 %v7208_v21  ;;  %v4295_v55 = vunpack.i.h.bf16 %v4293_v30  ;;  %v4294_v5 = vunpack.i.l.bf16 %v4293_v30  ;;  %v7287_v30 = vunpack.i.l.bf16 %v5683_v47  ;;  %v1076_v47 = vsel %vm1055_vm1, %v4300_v20, %v4309_v11 }
 0x19a   : > { %1409 = vmatpush1.bf16.msra.mxu0 %v1187_v38  ;;  %v1090_v3 = vsel %vm1055_vm1, %v4285_v59, %v4294_v5  ;;  %v1097_v36 = vsel %vm1055_vm1, %v4290_v52, %v4295_v55 }
 0x19b   : > { %v4303_v15 = vpop.permute.xlu0 %4302  ;;  %3575 = vmatprep.subr.msk.bf16.mxu0 %vm1290_vm2, %v1272_v46  ;;  %1450 = vmatpush1.bf16.msra.mxu1 %v1189_v43  ;;  %v1259_v25 = vpack.c.bf16 %v1097_v36, %v1090_v3 }
 0x19c   : > { %1457 = vmatprep.subr.bf16.mxu1 %v7208_v21  ;;  %v4305_v24 = vunpack.i.h.bf16 %v4303_v15  ;;  %v4304_v17 = vunpack.i.l.bf16 %v4303_v15 }
 0x19e   : > { %1417 = vmatpush2.bf16.msra.mxu0 %v1304_v58  ;;  %v1082_v60 = vsel %vm1055_vm1, %v4304_v17, %v4305_v24  ;;  %v1081_v1 = vsel %vm1055_vm1, %v7287_v30, %v4304_v17  ;;  %v1083_v23 = vsel %vm1055_vm1, %v4305_v24, %v4310_v6 }
 0x19f   : > { %v4313_v12 = vpop.permute.xlu0 %4312  ;;  %v4318_v56 = vpop.permute.xlu1 %4317  ;;  %1418 = vmatprep.subr.bf16.mxu0 %v1265_v34  ;;  %1458 = vmatpush2.bf16.msra.mxu1 %v1310_v31  ;;  %v1251_v33 = vpack.c.bf16 %v1082_v60, %v1075_v39  ;;  %v1250_v59 = vpack.c.bf16 %v1081_v1, %v1074_v35  ;;  %v1252_v26 = vpack.c.bf16 %v1083_v23, %v1076_v47 }
 0x1a0   : > { %1459 = vmatprep.subr.bf16.mxu1 %v7208_v21  ;;  %v4315_v51 = vunpack.i.h.bf16 %v4313_v12  ;;  %v4314_v8 = vunpack.i.l.bf16 %v4313_v12  ;;  %v4320_v7 = vunpack.i.h.bf16 %v4318_v56  ;;  %v4319_v9 = vunpack.i.l.bf16 %v4318_v56 }
 0x1a2   : > { %1419 = vmatpush2.bf16.msra.mxu0 %v1264_v57  ;;  %v1061_v46 = vsel %vm1055_vm1, %v4314_v8, %v4315_v51  ;;  %v1068_v43 = vsel %vm1055_vm1, %v4319_v9, %v4320_v7  ;;  %v1060_v41 = vsel %vm1055_vm1, %v7289_v13, %v4314_v8  ;;  %v1067_v52 = vsel %vm1055_vm1, %v7290_v2, %v4319_v9 }
 0x1a3   : > { %v4323_v29 = vpop.permute.xlu0 %4322  ;;  %1420 = vmatprep.subr.bf16.mxu0 %v1258_v49  ;;  %1460 = vmatpush2.bf16.msra.mxu1 %v1266_v18  ;;  %v1244_v4 = vpack.c.bf16 %v1068_v43, %v1061_v46  ;;  %v1243_v50 = vpack.c.bf16 %v1067_v52, %v1060_v41 }
 0x1a4   : > { %1461 = vmatprep.subr.bf16.mxu1 %v7208_v21  ;;  %v4325_v38 = vunpack.i.h.bf16 %v4323_v29  ;;  %v4324_v45 = vunpack.i.l.bf16 %v4323_v29 }
 0x1a6   : > { %1421 = vmatpush2.bf16.msra.mxu0 %v1257_v40  ;;  %v1062_v48 = vsel %vm1055_vm1, %v4315_v51, %v4324_v45  ;;  %v1069_v15 = vsel %vm1055_vm1, %v4320_v7, %v4325_v38  ;;  %vm7234_vm1 = vcmask 982016  }
 0x1a7   : > { %1422 = vmatprep.subr.bf16.mxu0 %v1251_v33  ;;  %1462 = vmatpush2.bf16.msra.mxu1 %v1259_v25  ;;  %v1245_v22 = vpack.c.bf16 %v1069_v15, %v1062_v48 }
 0x1a8   : > { %1463 = vmatprep.subr.bf16.mxu1 %v7208_v21 }
 0x1aa   : > { %1423 = vmatpush2.bf16.msra.mxu0 %v1250_v59 }
 0x1ab   : > { %1424 = vmatprep.subr.bf16.mxu0 %v1244_v4  ;;  %1464 = vmatpush2.bf16.msra.mxu1 %v1252_v26 }
 0x1ac   : > { %1465 = vmatprep.subr.bf16.mxu1 %v7208_v21  ;;  %v1278_v58 = vpop.permute.xlu1 %1277 }
 0x1ae   : > { %1425 = vmatpush2.bf16.msra.mxu0 %v1243_v50 }
 0x1af   : > { %1466 = vmatpush2.bf16.msra.mxu1 %v1245_v22 }
 0x1b1   : > { %1427 = vmatmul.mubr.bf16.vlgmr.msra.gmra.mxu0 %v5701_v42 }
 0x1b2   : > { %1468 = vmatmul.mubr.bf16.vlgmr.msra.gmra.mxu1 %v5701_v42 }
 0x205   : > { %v1346_v28 = vpop.f32.mrf.mxu0 }
 0x206   : > { %v1347_v8 = vadd.f32 %v1346_v28, %v1278_v58 }
 0x207   : > { %v1348_v14 = vpop.f32.mrf.mxu0 }
 0x208   : > { %v1349_v37 = vadd.f32 %v1348_v14, %v1278_v58  ;;  %v1475_v53 = vmax.f32 %v1347_v8, 0.0 }
 0x209   : > { %v1350_v44 = vpop.f32.mrf.mxu0 }
 0x20a   : > { %v1476_v54 = vmax.f32 %v1349_v37, 0.0 }
 0x20b   : > { %v1351_v61 = vpop.f32.mrf.mxu0 }
 0x235   : > { %v1387_v34 = vpop.f32.mrf.mxu1 }
 0x236   : > { %v1388_v55 = vadd.f32 %v1387_v34, %v1278_v58 }
 0x237   : > { %v1389_v5 = vpop.f32.mrf.mxu1 }
 0x238   : > { %v1390_v24 = vadd.f32 %v1389_v5, %v1278_v58  ;;  %v1477_v17 = vmax.f32 %v1388_v55, 0.0 }
 0x239   : > { %v1391_v31 = vpop.f32.mrf.mxu1 }
 0x23a   : > { %v1478_v10 = vmax.f32 %v1390_v24, 0.0 }
 0x23b   : > { %v1392_v27 = vpop.f32.mrf.mxu1 }
 0x23c   : > { %v4327_v32 = vpack.i.bf16 %v1478_v10, %v1477_v17 }
 0x23e   : > { %4328 = vrot.lane.b32.xlu0 %v4327_v32, %s7245_s26 }
 0x271   : > { %v1428_v20 = vpop.f32.mrf.mxu0 }
 0x272   : > { %v1429_v12 = vadd.f32 %v1428_v20, %v1278_v58  ;;  %v1469_v42 = vpop.f32.mrf.mxu1 }
 0x273   : > { %v1470_v56 = vadd.f32 %v1469_v42, %v1278_v58  ;;  %v1430_v63 = vpop.f32.mrf.mxu0 }
 0x274   : > { %v1431_v0 = vadd.f32 %v1430_v63, %v1278_v58  ;;  %v1471_v62 = vpop.f32.mrf.mxu1  ;;  %v1479_v3 = vmax.f32 %v1429_v12, 0.0 }
 0x275   : > { %v1481_v57 = vmax.f32 %v1470_v56, 0.0  ;;  %v1432_v18 = vpop.f32.mrf.mxu0 }
 0x276   : > { %v1480_v36 = vmax.f32 %v1431_v0, 0.0  ;;  %v1472_v49 = vpop.f32.mrf.mxu1 }
 0x277   : > { %v4337_v60 = vpack.i.bf16 %v1476_v54, %v1481_v57  ;;  %v1433_v51 = vpop.f32.mrf.mxu0 }
 0x278   : > { %v4332_v7 = vpack.i.bf16 %v1480_v36, %v1479_v3  ;;  %v1473_v9 = vpop.f32.mrf.mxu1 }
 0x279   : > { %4338 = vrot.lane.b32.xlu0 %v4337_v60, %s7245_s26 }
 0x27a   : > { %4333 = vrot.lane.b32.xlu1 %v4332_v7, %s7245_s26 }
 0x27e   : > { %1489 = vrot.lane.b32.xlu1 %v1475_v53, %s7245_s26  ;;  %s4835_s26 = smov 122  }
 0x2b0   : > { %v4329_v19 = vpop.permute.xlu0 %4328 }
 0x2b1   : > { %v4331_v6 = vunpack.i.h.bf16 %v4329_v19  ;;  %v4330_v29 = vunpack.i.l.bf16 %v4329_v19 }
 0x2b3   : > { %v1505_v1 = vsel %vm441_vm7, %v4330_v29, %v4331_v6 }
 0x2b4   : > { %v1518_v43 = vmax.f32 %v1477_v17, %v1505_v1 }
 0x2eb   : > { %v4339_v11 = vpop.permute.xlu0 %4338 }
 0x2ec   : > { %v4341_v40 = vunpack.i.h.bf16 %v4339_v11  ;;  %v4340_v39 = vunpack.i.l.bf16 %v4339_v11  ;;  %v4334_v30 = vpop.permute.xlu1 %4333 }
 0x2ed   : > { %v4336_v23 = vunpack.i.h.bf16 %v4334_v30  ;;  %v4335_v33 = vunpack.i.l.bf16 %v4334_v30 }
 0x2ee   : > { %v1504_v25 = vsel %vm441_vm7, %v4341_v40, %v4330_v29  ;;  %v1522_v41 = vmax.f32 %v1481_v57, %v4340_v39 }
 0x2ef   : > { %v1506_v38 = vsel %vm441_vm7, %v4331_v6, %v4335_v33  ;;  %v1507_v45 = vsel %vm441_vm7, %v4335_v33, %v4336_v23  ;;  %v1508_v46 = vsel %vm441_vm7, %v4336_v23, %v4340_v39  ;;  %v1517_v13 = vmax.f32 %v1476_v54, %v1504_v25 }
 0x2f0   : > { %v1519_v16 = vmax.f32 %v1478_v10, %v1506_v38  ;;  %v1520_v35 = vmax.f32 %v1479_v3, %v1507_v45  ;;  %v1521_v47 = vmax.f32 %v1480_v36, %v1508_v46  ;;  %v1490_v59 = vpop.permute.xlu1 %1489 }
 0x2f1   : > { %v1503_v4 = vsel %vm441_vm7, %v1490_v59, %v4341_v40  ;;  %v4352_v26 = vpack.i.bf16 %v1522_v41, %v1517_v13  ;;  %vm1617_vm7 = vcmask 998400  }
 0x2f2   : > { %v4347_v2 = vpack.i.bf16 %v1521_v47, %v1520_v35  ;;  %v4342_v52 = vpack.i.bf16 %v1519_v16, %v1518_v43  ;;  %v1516_v48 = vmax.f32 %v1475_v53, %v1503_v4 }
 0x2f4   : > { %4348 = vrot.lane.b32.xlu1 %v4347_v2, %s7242_s15  ;;  %4343 = vrot.lane.b32.xlu0 %v4342_v52, %s7242_s15 }
 0x2f8   : > { %1530 = vrot.lane.b32.xlu1 %v1516_v48, %s7242_s15  ;;  %4353 = vrot.lane.b32.xlu0 %v4352_v26, %s7242_s15  ;;  %s4834_s15 = smov 66  }
 0x366   : > { %v4344_v15 = vpop.permute.xlu0 %4343  ;;  %v4349_v50 = vpop.permute.xlu1 %4348 }
 0x367   : > { %v4351_v22 = vunpack.i.h.bf16 %v4349_v50  ;;  %v4350_v14 = vunpack.i.l.bf16 %v4349_v50  ;;  %v4345_v44 = vunpack.i.l.bf16 %v4344_v15  ;;  %v4346_v34 = vunpack.i.h.bf16 %v4344_v15 }
 0x369   : > { %v1548_v31 = vsel %vm556_vm4, %v4350_v14, %v4351_v22  ;;  %v1547_v32 = vsel %vm556_vm4, %v4346_v34, %v4350_v14  ;;  %v1546_v37 = vsel %vm556_vm4, %v4345_v44, %v4346_v34 }
 0x36a   : > { %v4354_v28 = vpop.permute.xlu0 %4353  ;;  %v5897_v20 = vmax.f32 %v1520_v35, %v1548_v31  ;;  %v5901_v12 = vmax.f32 %v1519_v16, %v1547_v32  ;;  %v5903_v42 = vmax.f32 %v1518_v43, %v1546_v37  ;;  %v1531_v62 = vpop.permute.xlu1 %1530 }
 0x36b   : > { %v4356_v61 = vunpack.i.h.bf16 %v4354_v28  ;;  %v4355_v58 = vunpack.i.l.bf16 %v4354_v28 }
 0x36c   : > { %v4372_v63 = vpack.i.bf16 %v5901_v12, %v5903_v42 }
 0x36d   : > { %v1549_v55 = vsel %vm556_vm4, %v4351_v22, %v4356_v61  ;;  %v1563_v5 = vmax.f32 %v1522_v41, %v4356_v61  ;;  %v1545_v24 = vsel %vm556_vm4, %v4355_v58, %v4345_v44  ;;  %v1544_v18 = vsel %vm556_vm4, %v1531_v62, %v4355_v58 }
 0x36e   : > { %v5889_v17 = vmax.f32 %v1517_v13, %v1545_v24  ;;  %v5892_v10 = vmax.f32 %v1521_v47, %v1549_v55  ;;  %v5932_v3 = vmax.f32 %v1516_v48, %v1544_v18  ;;  %vm1726_vm4 = vcmask 474112  }
 0x370   : > { %7291 = vst [vmem:[#allocation8_spill] sm:$0xff] %v5892_v10  ;;  %v4362_v27 = vpack.i.bf16 %v5889_v17, %v1563_v5  ;;  %v4377_v56 = vpack.i.bf16 %v5892_v10, %v5897_v20  ;;  %v4427_v0 = vpack.i.bf16 %v5889_v17, %v5897_v20  ;;  %v4467_v54 = vpack.i.bf16 %v1563_v5, %v5892_v10 }
 0x371   : > { %v4462_v57 = vpack.i.bf16 %v5897_v20, %v5889_v17  ;;  %v4477_v36 = vpack.i.bf16 %v5903_v42, %v5889_v17  ;;  %v4492_v49 = vpack.i.bf16 %v5932_v3, %v5892_v10  ;;  %v4487_v60 = vpack.i.bf16 %v5901_v12, %v5932_v3 }
 0x372   : > { %4363 = vrot.lane.b32.xlu1 %v4362_v27, %s7251_s17  ;;  %4358 = vrot.lane.b32.xlu0 %v4362_v27, %s4833_s19 }
 0x376   : > { %4378 = vrot.lane.b32.xlu1 %v4377_v56, %s4833_s19  ;;  %4368 = vrot.lane.b32.xlu0 %v4362_v27, %s7250_s28 }
 0x37a   : > { %4388 = vrot.lane.b32.xlu1 %v4377_v56, %s7251_s17  ;;  %4373 = vrot.lane.b32.xlu0 %v4372_v63, %s4833_s19 }
 0x37e   : > { %4398 = vrot.lane.b32.xlu1 %v4377_v56, %s7250_s28  ;;  %4383 = vrot.lane.b32.xlu0 %v4372_v63, %s7251_s17 }
 0x382   : > { %4408 = vrot.lane.b32.xlu1 %v4377_v56, %s7252_s20  ;;  %4393 = vrot.lane.b32.xlu0 %v4372_v63, %s7250_s28 }
 0x386   : > { %4418 = vrot.lane.b32.xlu1 %v4377_v56, %s4834_s15  ;;  %4403 = vrot.lane.b32.xlu0 %v4372_v63, %s7252_s20 }
 0x38a   : > { %4428 = vrot.lane.b32.xlu1 %v4427_v0, %s7254_s0  ;;  %4413 = vrot.lane.b32.xlu0 %v4372_v63, %s4834_s15 }
 0x38e   : > { %4438 = vrot.lane.b32.xlu1 %v4427_v0, %s4835_s26  ;;  %4423 = vrot.lane.b32.xlu0 %v4372_v63, %s7254_s0 }
 0x392   : > { %4453 = vrot.lane.b32.xlu1 %v4427_v0, %s7244_s29  ;;  %4433 = vrot.lane.b32.xlu0 %v4372_v63, %s4835_s26 }
 0x396   : > { %1802 = vrot.lane.b32.xlu1 %v1563_v5, %s4834_s15  ;;  %4443 = vrot.lane.b32.xlu0 %v4372_v63, %s7244_s29 }
 0x39a   : > { %4458 = vrot.lane.b32.xlu1 %v4372_v63, %s4836_s23  ;;  %4448 = vrot.lane.b32.xlu0 %v4362_v27, %s7252_s20 }
 0x39e   : > { %4468 = vrot.lane.b32.xlu1 %v4467_v54, %s7254_s0  ;;  %4463 = vrot.lane.b32.xlu0 %v4462_v57, %s4836_s23 }
 0x3a2   : > { %4473 = vrot.lane.b32.xlu0 %v4467_v54, %s4835_s26  ;;  %1714 = vrot.lane.b32.xlu1 %v5932_v3, %s4833_s19  ;;  %s404_s19 = sand.u32 1, %s4805_s22  }
 0x3a3   : > { %s405_s15 = scalar_lea.vmem [#allocation3], %s404_s19 }
 0x3a6   : > { %4478 = vrot.lane.b32.xlu0 %v4477_v36, %s4837_s30  ;;  %4483 = vrot.lane.b32.xlu1 %v4467_v54, %s7244_s29 }
 0x3aa   : > { %1692 = vrot.lane.b32.xlu0 %v5932_v3, %s7250_s28  ;;  %4493 = vrot.lane.b32.xlu1 %v4492_v49, %s4836_s23  ;;  %s7334_s23 = smov 125   ;;  %s4852_s28 = smov [#allocation3]  }
 0x3ae   : > { %4488 = vrot.lane.b32.xlu0 %v4487_v60, %s4837_s30 }
 0x3b2   : > { %1648 = vrot.lane.b32.xlu0 %v5932_v3, %s7252_s20 }
 0x3b6   : > { %1607 = vrot.lane.b32.xlu0 %v5932_v3, %s4835_s26 }
 0x3ba   : > { %1745 = vrot.lane.b32.xlu0 %v5897_v20, %s4837_s30 }
 0x3e4   : > { %v5954_v51 = vpop.permute.xlu1 %4363  ;;  %v5956_v8 = vpop.permute.xlu0 %4358 }
 0x3e8   : > { %v5958_v7 = vpop.permute.xlu1 %4378  ;;  %v5960_v9 = vpop.permute.xlu0 %4368 }
 0x3e9   : > { %v4380_v15 = vunpack.i.l.bf16 %v5958_v7 }
 0x3ec   : > { %v5962_v53 = vpop.permute.xlu1 %4388  ;;  %v4374_v19 = vpop.permute.xlu0 %4373 }
 0x3ed   : > { %v5964_v6 = vunpack.i.l.bf16 %v4374_v19  ;;  %v4390_v25 = vunpack.i.l.bf16 %v5962_v53  ;;  %v4376_v41 = vunpack.i.h.bf16 %v4374_v19  ;;  %v7216_v19 = vunpack.i.h.bf16 %v5958_v7 }
 0x3ef   : > { %v4497_v29 = vpack.i.bf16 %v5964_v6, %v5932_v3  ;;  %v6018_v28 = vsel %vm1726_vm4, %v4376_v41, %v4380_v15  ;;  %v6022_v14 = vsel %vm1726_vm4, %v5964_v6, %v4376_v41 }
 0x3f0   : > { %v5968_v11 = vpop.permute.xlu1 %4398  ;;  %v4384_v40 = vpop.permute.xlu0 %4383  ;;  %v4512_v27 = vpack.i.bf16 %v6018_v28, %v6022_v14 }
 0x3f1   : > { %4498 = vrot.lane.b32.xlu1 %v4497_v29, %s7251_s17  ;;  %v4386_v39 = vunpack.i.h.bf16 %v4384_v40  ;;  %v5971_v30 = vunpack.i.l.bf16 %v4384_v40  ;;  %v4400_v31 = vunpack.i.l.bf16 %v5968_v11  ;;  %v7214_v40 = vunpack.i.h.bf16 %v5968_v11 }
 0x3f3   : > { %v5985_v45 = vsel %vm773_vm10, %v4386_v39, %v4390_v25  ;;  %v5989_v46 = vsel %vm773_vm10, %v5971_v30, %v4386_v39 }
 0x3f4   : > { %v5973_v1 = vpop.permute.xlu1 %4408  ;;  %v4394_v23 = vpop.permute.xlu0 %4393  ;;  %v4517_v13 = vpack.i.bf16 %v5985_v45, %v5989_v46 }
 0x3f5   : > { %v5975_v33 = vunpack.i.l.bf16 %v4394_v23  ;;  %1588 = vrot.lane.b32.xlu1 %v5932_v3, %s7254_s0  ;;  %v7218_v59 = vunpack.i.l.bf16 %v5973_v1  ;;  %v4396_v44 = vunpack.i.h.bf16 %v4394_v23  ;;  %s4844_s0 = smov 75  }
 0x3f7   : > { %v4502_v38 = vpack.i.bf16 %v5975_v33, %v5971_v30  ;;  %v6047_v63 = vsel %vm835_vm8, %v4396_v44, %v4400_v31  ;;  %v6051_v0 = vsel %vm835_vm8, %v5975_v33, %v4396_v44 }
 0x3f8   : > { %v5991_v43 = vpop.permute.xlu1 %4418  ;;  %v4404_v16 = vpop.permute.xlu0 %4403  ;;  %v4522_v39 = vpack.i.bf16 %v6047_v63, %v6051_v0 }
 0x3f9   : > { %v4406_v35 = vunpack.i.h.bf16 %v4404_v16  ;;  %v5993_v47 = vunpack.i.l.bf16 %v4404_v16  ;;  %4503 = vrot.lane.b32.xlu0 %v4502_v38, %s7251_s17  ;;  %1569 = vrot.lane.b32.xlu1 %v5932_v3, %s7244_s29  ;;  %v7215_v29 = vunpack.i.l.bf16 %v5991_v43 }
 0x3fb   : > { %v6004_v2 = vsel %vm711_vm12, %v4406_v35, %v7218_v59  ;;  %v6008_v52 = vsel %vm711_vm12, %v5993_v47, %v4406_v35 }
 0x3fc   : > { %v6010_v4 = vpop.permute.xlu1 %4428  ;;  %v4414_v26 = vpop.permute.xlu0 %4413  ;;  %v4532_v50 = vpack.i.bf16 %v6004_v2, %v6008_v52 }
 0x3fd   : > { %v4415_v48 = vunpack.i.l.bf16 %v4414_v26  ;;  %4518 = vrot.lane.b32.xlu0 %v4517_v13, %s7251_s17  ;;  %v6027_v34 = vunpack.i.l.bf16 %v6010_v4  ;;  %v4416_v62 = vunpack.i.h.bf16 %v4414_v26  ;;  %v7211_v36 = vunpack.i.h.bf16 %v6010_v4 }
 0x3ff   : > { %v4507_v22 = vpack.i.bf16 %v5993_v47, %v4415_v48  ;;  %7292 = vst [vmem:[#allocation10_spill] sm:$0xff] %v6027_v34  ;;  %v1805_v26 = vsel %vm1804_vm13, %v4415_v48, %v4416_v62  ;;  %v6092_v48 = vsel %vm1726_vm4, %v4380_v15, %v7216_v19 }
 0x400   : > { %v6024_v61 = vpop.permute.xlu1 %4438  ;;  %v4424_v58 = vpop.permute.xlu0 %4423  ;;  %7297 = vst [vmem:[#allocation11_spill] sm:$0xff] %v6092_v48 }
 0x401   : > { %v6030_v55 = vunpack.i.l.bf16 %v6024_v61  ;;  %v4426_v5 = vunpack.i.h.bf16 %v4424_v58  ;;  %v4425_v24 = vunpack.i.l.bf16 %v4424_v58  ;;  %4533 = vrot.lane.b32.xlu0 %v4532_v50, %s7251_s17  ;;  %4508 = vrot.lane.b32.xlu1 %v4507_v22, %s7251_s17  ;;  %v7213_v49 = vunpack.i.h.bf16 %v6024_v61 }
 0x402   : > { %v1806_v50 = vsel %vm1804_vm13, %v4416_v62, %v7215_v29  ;;  %v7212_v58 = vunpack.i.l.bf16 %v5954_v51 }
 0x403   : > { %7293 = vst [vmem:[#allocation9_spill] sm:$0xff] %v6030_v55  ;;  %v6041_v37 = vsel %vm7294_vm9, %v4426_v5, %v6027_v34  ;;  %v6044_v56 = vsel %vm7295_vm11, %v4425_v24, %v4426_v5  ;;  %v6069_v23 = vsel %vm7296_vm14, %v7211_v36, %v4425_v24  ;;  %v4391_v5 = vunpack.i.h.bf16 %v5962_v53  ;;  %vm7308_vm9 = vmmov %vm7272_vm0 }
 0x404   : > { %v4537_v54 = vpack.i.bf16 %v6041_v37, %v6044_v56  ;;  %v6055_v57 = vpop.permute.xlu1 %4453  ;;  %v4434_v18 = vpop.permute.xlu0 %4433  ;;  %v6097_v24 = vsel %vm835_vm8, %v4400_v31, %v7214_v40  ;;  %v4527_v62 = vpack.i.bf16 %v1806_v50, %v1805_v26  ;;  %v4421_v50 = vunpack.i.h.bf16 %v5991_v43 }
 0x405   : > { %v4435_v60 = vunpack.i.l.bf16 %v4434_v18  ;;  %4513 = vrot.lane.b32.xlu1 %v4512_v27, %s7251_s17  ;;  %v4436_v16 = vunpack.i.h.bf16 %v4434_v18  ;;  %v7210_v22 = vunpack.i.h.bf16 %v6055_v57  ;;  %7298 = vst [vmem:[#allocation12_spill] sm:$0xff] %v6097_v24  ;;  %v6121_v26 = vsel %vm773_vm10, %v4391_v5, %v7212_v58 }
 0x406   : > { %4538 = vrot.lane.b32.xlu0 %v4537_v54, %s7251_s17  ;;  %7299 = vst [vmem:[#allocation13_spill] sm:$0xff] %v6121_v26 }
 0x407   : > { %v6074_v38 = vsel %vm1617_vm7, %v7213_v49, %v4435_v60  ;;  %v6106_v54 = vsel %vm1617_vm7, %v4436_v16, %v6030_v55  ;;  %v1620_v18 = vsel %vm1617_vm7, %v4435_v60, %v4436_v16  ;;  %v7219_v60 = vunpack.i.h.bf16 %v5973_v1 }
 0x408   : > { %v4542_v35 = vpack.i.bf16 %v6074_v38, %v6069_v23  ;;  %v6078_v13 = vpop.permute.xlu1 %1802  ;;  %v4444_v41 = vpop.permute.xlu0 %4443  ;;  %v6125_v16 = vunpack.i.l.bf16 %v6055_v57 }
 0x409   : > { %v4445_v44 = vunpack.i.l.bf16 %v4444_v41  ;;  %4523 = vrot.lane.b32.xlu1 %v4522_v39, %s7251_s17  ;;  %v4446_v39 = vunpack.i.h.bf16 %v4444_v41  ;;  %v4567_v41 = vpack.i.bf16 %v6097_v24, %v6121_v26  ;;  %v1808_v19 = vsel %vm1804_vm13, %v4421_v50, %v6078_v13 }
 0x40a   : > { %4543 = vrot.lane.b32.xlu0 %v4542_v35, %s7251_s17 }
 0x40b   : > { %v6102_v27 = vsel %vm469_vm5, %v7210_v22, %v4445_v44  ;;  %v4547_v22 = vpack.i.bf16 %v6106_v54, %v1620_v18  ;;  %v6137_v36 = vsel %vm469_vm5, %v4446_v39, %v6125_v16  ;;  %v1581_v58 = vsel %vm469_vm5, %v4445_v44, %v4446_v39 }
 0x40c   : > { %v4557_v15 = vpack.i.bf16 %v6092_v48, %v6102_v27  ;;  %v6111_v35 = vpop.permute.xlu1 %4458  ;;  %v6113_v31 = vpop.permute.xlu0 %4448  ;;  %v6158_v44 = vsel %vm773_vm10, %v4390_v25, %v4391_v5  ;;  %v4552_v53 = vpack.i.bf16 %v6137_v36, %v1581_v58 }
 0x40d   : > { %v7217_v32 = vunpack.i.h.bf16 %v6111_v35  ;;  %v4460_v21 = vunpack.i.l.bf16 %v6111_v35  ;;  %4528 = vrot.lane.b32.xlu1 %v4527_v62, %s7251_s17  ;;  %v7222_v49 = vunpack.i.h.bf16 %v6113_v31  ;;  %7300 = vst [vmem:[#allocation14_spill] sm:$0xff] %v6158_v44 }
 0x40e   : > { %4558 = vrot.lane.b32.xlu0 %v4557_v15, %s7251_s17 }
 0x40f   : > { %v1640_v62 = vsel %vm7234_vm1, %v4460_v21, %v7217_v32 }
 0x410   : > { %v6141_v15 = vpop.permute.xlu1 %4468  ;;  %v6143_v40 = vpop.permute.xlu0 %4463  ;;  %v6146_v29 = vpack.c.bf16 %v6008_v52, %v1640_v62  ;;  %v7301_v52 = vunpack.i.l.bf16 %v5973_v1 }
 0x411   : > { %v6151_v32 = vunpack.i.h.bf16 %v6143_v40  ;;  %v7223_v59 = vunpack.i.l.bf16 %v6143_v40  ;;  %4548 = vrot.lane.b32.xlu1 %v4547_v22, %s7251_s17  ;;  %v6172_v22 = vld [vmem:[%s7149_s3 + $0x4] ss:$8 sps:$4 sm:$0xff]   ;;  %v6177_v5 = vunpack.i.l.bf16 %v6141_v15 }
 0x412   : > { %v6165_v39 = vsel %vm711_vm12, %v7301_v52, %v7219_v60  ;;  %2092 = vmatprep.subr.bf16.mxu0 %v6146_v29  ;;  %4568 = vrot.lane.b32.xlu0 %v4567_v41, %s7251_s17  ;;  %v7224_v52 = vunpack.i.l.bf16 %v5956_v8  ;;  %v1661_v41 = vsel %vm711_vm12, %v7222_v49, %v5993_v47  ;;  %v6211_v49 = vpack.c.bf16 %v1620_v18, %v6044_v56 }
 0x413   : > { %7302 = vst [vmem:[#allocation15_spill] sm:$0xff] %v6177_v5  ;;  %v4577_v60 = vpack.i.bf16 %v6165_v39, %v1808_v19  ;;  %v1639_v26 = vsel %vm7234_vm1, %v7223_v59, %v4460_v21  ;;  %3581 = vmatprep.mubr.msk.bf16.mxu0 %vm1286_vm15, %v6172_v22  ;;  %3583 = vmatprep.mubr.msk.bf16.mxu1 %vm1286_vm15, %v6172_v22  ;;  %v7303_v21 = vunpack.i.h.bf16 %v5958_v7  ;;  %v7304_v59 = vunpack.i.h.bf16 %v6141_v15 }
 0x414   : > { %v6190_v25 = vpop.permute.xlu0 %4473  ;;  %v6192_v24 = vpop.permute.xlu1 %1714  ;;  %v6198_v19 = vpack.c.bf16 %v1661_v41, %v1639_v26  ;;  %v4361_v7 = vunpack.i.h.bf16 %v5956_v8 }
 0x415   : > { %v6201_v62 = vunpack.i.l.bf16 %v6190_v25  ;;  %4553 = vrot.lane.b32.xlu1 %v4552_v53, %s7251_s17  ;;  %v1817_v47 = vsel %vm1726_vm4, %v7303_v21, %v7224_v52  ;;  %v1790_v26 = vsel %vm7272_vm0, %v6177_v5, %v7304_v59  ;;  %v7305_v21 = vunpack.i.l.bf16 %v5991_v43 }
 0x416   : > { %4578 = vrot.lane.b32.xlu0 %v4577_v60, %s7251_s17  ;;  %2093 = vmatpush1.bf16.msra.mxu0 %v6198_v19  ;;  %v4562_v60 = vpack.i.bf16 %v6158_v44, %v1817_v47  ;;  %v6239_v47 = vpack.c.bf16 %v6074_v38, %v6069_v23  ;;  %v7307_v44 = vunpack.i.h.bf16 %v5968_v11  ;;  %v4371_v23 = vunpack.i.h.bf16 %v5960_v9 }
 0x417   : > { %v6220_v53 = vsel %vm1617_vm7, %v6030_v55, %v6201_v62  ;;  %2094 = vmatprep.subr.bf16.mxu0 %v6211_v49  ;;  %v1807_v52 = vsel %vm1804_vm13, %v7305_v21, %v4421_v50  ;;  %v7306_v55 = vunpack.i.l.bf16 %v5960_v9  ;;  %v4450_v50 = vunpack.i.l.bf16 %v6113_v31 }
 0x418   : > { %v4587_v18 = vpack.i.bf16 %v6220_v53, %v1790_v26  ;;  %v6229_v41 = vpop.permute.xlu0 %4478  ;;  %v6231_v59 = vpop.permute.xlu1 %4483  ;;  %v6252_v21 = vpack.c.bf16 %v1581_v58, %v5903_v42 }
 0x419   : > { %v7228_v56 = vunpack.i.h.bf16 %v6229_v41  ;;  %v4480_v26 = vunpack.i.l.bf16 %v6229_v41  ;;  %4563 = vrot.lane.b32.xlu1 %v4562_v60, %s7251_s17  ;;  %v1814_v43 = vsel %vm835_vm8, %v7307_v44, %v7306_v55  ;;  %v1728_v60 = vsel %vm1726_vm4, %v4361_v7, %v5964_v6 }
 0x41a   : > { %4588 = vrot.lane.b32.xlu0 %v4587_v18, %s7251_s17  ;;  %2095 = vmatpush1.bf16.msra.mxu0 %v6239_v47  ;;  %v4572_v38 = vpack.i.bf16 %v1807_v52, %v1814_v43  ;;  %v1767_v55 = vsel %vm7308_vm9, %v6027_v34, %v6177_v5  ;;  %v6267_v18 = vpack.c.bf16 %v6102_v27, %v5889_v17  ;;  %v7309_v43 = vunpack.i.h.bf16 %v6111_v35 }
 0x41b   : > { %v1751_v11 = vsel %vm1749_vm3, %v4480_v26, %v7228_v56  ;;  %2096 = vmatprep.subr.bf16.mxu0 %v6252_v21  ;;  %v7310_v34 = vunpack.i.h.bf16 %v5973_v1  ;;  %v6283_v17 = vunpack.i.l.bf16 %v6231_v59  ;;  %v4486_v1 = vunpack.i.h.bf16 %v6231_v59 }
 0x41c   : > { %v1693_v42 = vpop.permute.xlu0 %1692  ;;  %v4494_v58 = vpop.permute.xlu1 %4493  ;;  %v2018_v44 = vpack.c.bf16 %v1751_v11, %v1728_v60  ;;  %v1641_v56 = vsel %vm7234_vm1, %v7309_v43, %v6151_v32  ;;  %v7311_v5 = vunpack.i.l.bf16 %v5956_v8  ;;  %v1705_v59 = vsel %vm835_vm8, %v4371_v23, %v5975_v33 }
 0x41d   : > { %v6270_v52 = vsel %vm835_vm8, %v1693_v42, %v4371_v23  ;;  %v4495_v6 = vunpack.i.l.bf16 %v4494_v58  ;;  %4573 = vrot.lane.b32.xlu1 %v4572_v38, %s7251_s17  ;;  %v1783_v48 = vsel %vm711_vm12, %v7310_v34, %v4450_v50  ;;  %v4476_v38 = vunpack.i.h.bf16 %v6190_v25  ;;  %vm7320_vm8 = vmmov %vm7272_vm0 }
 0x41e   : > { %1747 = vrot.lane.b32.xlu0 %v5892_v10, %s4837_s30  ;;  %v4582_v27 = vpack.i.bf16 %v1767_v55, %v1783_v48  ;;  %2097 = vmatpush1.bf16.msra.mxu0 %v6267_v18  ;;  %v4366_v42 = vunpack.i.h.bf16 %v5954_v51  ;;  %v2010_v43 = vpack.c.bf16 %v6004_v2, %v1641_v56  ;;  %v4496_v10 = vunpack.i.h.bf16 %v4494_v58  ;;  %s4843_s30 = smov 100  }
 0x41f   : > { %v6285_v60 = vpack.c.bf16 %v1783_v48, %v4495_v6  ;;  %v1777_v35 = vsel %vm7234_vm1, %v6151_v32, %v4495_v6  ;;  %2098 = vmatprep.subr.bf16.mxu0 %v2018_v44  ;;  %v2024_v25 = vpack.c.bf16 %v6220_v53, %v1767_v55  ;;  %v1727_v44 = vsel %vm1726_vm4, %v6192_v24, %v4361_v7 }
 0x420   : > { %v4489_v34 = vpop.permute.xlu0 %4488  ;;  %v2026_v11 = vpack.c.bf16 %v6165_v39, %v1777_v35  ;;  %v6309_v2 = vsel %vm773_vm10, %v4366_v42, %v5971_v30  ;;  %v1762_v8 = vsel %vm469_vm5, %v6125_v16, %v6283_v17  ;;  %v1787_v33 = vsel %vm469_vm5, %v6283_v17, %v4486_v1 }
 0x421   : > { %v4490_v48 = vunpack.i.l.bf16 %v4489_v34  ;;  %4583 = vrot.lane.b32.xlu1 %v4582_v27, %s7251_s17  ;;  %v1793_v7 = vsel %vm1617_vm7, %v6201_v62, %v4476_v38  ;;  %v2005_v56 = vpack.c.bf16 %v6106_v54, %v6041_v37  ;;  %v7312_v30 = vunpack.i.l.bf16 %v6143_v40 }
 0x422   : > { %1912 = vrot.lane.b32.xlu0 %v7311_v5, %s7251_s17  ;;  %2135 = vmatprep.subr.bf16.mxu1 %v2026_v11  ;;  %v4602_v5 = vpack.i.bf16 %v4450_v50, %v6078_v13  ;;  %v7313_v23 = vunpack.i.h.bf16 %v6113_v31  ;;  %v2013_v50 = vpack.c.bf16 %v1705_v59, %v6309_v2  ;;  %v2022_v58 = vpack.c.bf16 %v1762_v8, %v5897_v20 }
 0x423   : > { %v1750_v6 = vsel %vm1749_vm3, %v4490_v48, %v4480_v26  ;;  %2136 = vmatpush1.bf16.msra.mxu1 %v2010_v43  ;;  %v1638_v26 = vsel %vm7234_vm1, %v4496_v10, %v7312_v30  ;;  %v4592_v37 = vpack.i.bf16 %v1787_v33, %v1762_v8  ;;  %v4491_v40 = vunpack.i.h.bf16 %v4489_v34 }
 0x424   : > { %v2017_v53 = vpack.c.bf16 %v1750_v6, %v1727_v44  ;;  %v1649_v24 = vpop.permute.xlu0 %1648  ;;  %2137 = vmatprep.subr.bf16.mxu1 %v2024_v25  ;;  %v2000_v10 = vpack.c.bf16 %v6137_v36, %v5901_v12  ;;  %v7314_v31 = vunpack.i.h.bf16 %v6024_v61  ;;  %v7315_v35 = vunpack.i.l.bf16 %v5954_v51  ;;  %v2053_v44 = vld [vmem:[%s7150_s4] sm:$0xff] }
 0x425   : > { %v1660_v13 = vsel %vm711_vm12, %v1649_v24, %v7313_v23  ;;  %1850 = vrot.lane.b32.xlu1 %v1793_v7, %s7251_s17  ;;  %v7316_v11 = vunpack.i.l.bf16 %v5960_v9  ;;  %v7317_v34 = vunpack.i.h.bf16 %v6229_v41  ;;  %v7318_v36 = vunpack.i.h.bf16 %v6141_v15 }
 0x426   : > { %v2007_v55 = vpack.c.bf16 %v1660_v13, %v1638_v26  ;;  %4603 = vrot.lane.b32.xlu0 %v4602_v5, %s7251_s17  ;;  %2099 = vmatpush1.bf16.msra.mxu0 %v2017_v53  ;;  %v2015_v41 = vpack.c.bf16 %v6047_v63, %v5985_v45 }
 0x427   : > { %2100 = vmatprep.subr.bf16.mxu0 %v2013_v50  ;;  %2138 = vmatpush1.bf16.msra.mxu1 %v2005_v56  ;;  %v4597_v48 = vpack.i.bf16 %v7316_v11, %v7315_v35  ;;  %v1752_v25 = vsel %vm1749_vm3, %v7317_v34, %v4491_v40 }
 0x428   : > { %v1608_v54 = vpop.permute.xlu0 %1607  ;;  %2139 = vmatprep.subr.bf16.mxu1 %v2022_v58  ;;  %v2019_v9 = vpack.c.bf16 %v1752_v25, %v6022_v14  ;;  %v2054_v14 = vld [vmem:[%s7150_s4 + $0x8] sm:$0xff] }
 0x429   : > { %v1618_v27 = vsel %vm1617_vm7, %v1608_v54, %v7314_v31  ;;  %4593 = vrot.lane.b32.xlu1 %v4592_v37, %s7251_s17 }
 0x42a   : > { %1828 = vrot.lane.b32.xlu0 %v4486_v1, %s7251_s17  ;;  %v4607_v1 = vpack.i.bf16 %v4476_v38, %v7318_v36 }
 0x42b   : > { %2140 = vmatpush1.bf16.msra.mxu1 %v2000_v10 }
 0x42c   : > { %v6345_v59 = vpop.permute.xlu0 %1745 }
 0x42d   : > { %v1753_v12 = vsel %vm1749_vm3, %v4491_v40, %v6345_v59  ;;  %4598 = vrot.lane.b32.xlu1 %v4597_v48, %s7251_s17 }
 0x42e   : > { %v2020_v61 = vpack.c.bf16 %v1753_v12, %v6018_v28  ;;  %v2014_v28 = vpack.c.bf16 %v6051_v0, %v5989_v46  ;;  %2062 = vperm.xlu0 %4612, %v2054_v14  }
 0x430   : > { %2141 = vmatprep.subr.bf16.mxu1 %v2020_v61 }
 0x431   : > { %4608 = vrot.lane.b32.xlu1 %v4607_v1, %s7251_s17  ;;  %2142 = vmatpush1.bf16.msra.mxu1 %v2019_v9  ;;  %s4846_s17 = smov 72  }
 0x432   : > { %2143 = vmatprep.subr.bf16.mxu1 %v2015_v41 }
 0x435   : > { %2057 = vperm.xlu1 %4326, %v2053_v44   ;;  %2144 = vmatpush1.bf16.msra.mxu1 %v2014_v28 }
 0x436   : > { %2145 = vmatprep.subr.bf16.mxu1 %v2010_v43 }
 0x439   : > { %2146 = vmatpush1.bf16.msra.mxu1 %v6146_v29 }
 0x43a   : > { %2147 = vmatprep.subr.bf16.mxu1 %v2005_v56 }
 0x43d   : > { %2148 = vmatpush1.bf16.msra.mxu1 %v6211_v49 }
 0x43e   : > { %2149 = vmatprep.subr.bf16.mxu1 %v2000_v10 }
 0x441   : > { %2150 = vmatpush1.bf16.msra.mxu1 %v6252_v21  ;;  %v7319_v21 = vunpack.i.h.bf16 %v6010_v4 }
 0x463   : > { %v4499_v63 = vpop.permute.xlu1 %4498 }
 0x464   : > { %v4500_v15 = vunpack.i.l.bf16 %v4499_v63  ;;  %v4501_v53 = vunpack.i.h.bf16 %v4499_v63 }
 0x466   : > { %v1682_v0 = vsel %vm773_vm10, %v4500_v15, %v4366_v42  ;;  %v7321_v42 = vunpack.i.h.bf16 %v6055_v57 }
 0x467   : > { %v2012_v38 = vpack.c.bf16 %v6270_v52, %v1682_v0  ;;  %v1589_v29 = vpop.permute.xlu1 %1588 }
 0x468   : > { %v1598_v43 = vsel %vm7320_vm8, %v1589_v29, %v7319_v21 }
 0x469   : > { %2101 = vmatpush1.bf16.msra.mxu0 %v2012_v38  ;;  %v2002_v51 = vpack.c.bf16 %v1618_v27, %v1598_v43 }
 0x46a   : > { %2102 = vmatprep.subr.bf16.mxu0 %v6198_v19 }
 0x46b   : > { %v4504_v49 = vpop.permute.xlu0 %4503  ;;  %v1570_v6 = vpop.permute.xlu1 %1569 }
 0x46c   : > { %v1579_v52 = vsel %vm469_vm5, %v1570_v6, %v7321_v42  ;;  %v4505_v30 = vunpack.i.l.bf16 %v4504_v49  ;;  %v4506_v50 = vunpack.i.h.bf16 %v4504_v49 }
 0x46d   : > { %2103 = vmatpush1.bf16.msra.mxu0 %v2007_v55  ;;  %v1997_v4 = vpack.c.bf16 %v1579_v52, %v5932_v3 }
 0x46e   : > { %2104 = vmatprep.subr.bf16.mxu0 %v6239_v47 }
 0x46f   : > { %v6377_v8 = vpop.permute.xlu0 %4518 }
 0x470   : > { %v4520_v57 = vunpack.i.l.bf16 %v6377_v8  ;;  %v4521_v56 = vunpack.i.h.bf16 %v6377_v8 }
 0x471   : > { %2105 = vmatpush1.bf16.msra.mxu0 %v2002_v51 }
 0x472   : > { %2106 = vmatprep.subr.bf16.mxu0 %v6267_v18  ;;  %v1939_v40 = vsel %vm773_vm10, %v4505_v30, %v4520_v57  ;;  %v1940_v11 = vsel %vm773_vm10, %v4520_v57, %v4521_v56 }
 0x473   : > { %v6383_v19 = vpop.permute.xlu0 %4533  ;;  %v4509_v5 = vpop.permute.xlu1 %4508 }
 0x474   : > { %v4535_v54 = vunpack.i.l.bf16 %v6383_v19  ;;  %v4511_v10 = vunpack.i.h.bf16 %v4509_v5  ;;  %v4536_v27 = vunpack.i.h.bf16 %v6383_v19  ;;  %v4510_v61 = vunpack.i.l.bf16 %v4509_v5 }
 0x475   : > { %2107 = vmatpush1.bf16.msra.mxu0 %v1997_v4 }
 0x476   : > { %v1934_v41 = vsel %vm773_vm10, %v4511_v10, %v4535_v54  ;;  %v1935_v0 = vsel %vm773_vm10, %v4535_v54, %v4536_v27 }
 0x477   : > { %v6386_v33 = vpop.permute.xlu1 %4513 }
 0x478   : > { %v4516_v47 = vunpack.i.h.bf16 %v6386_v33  ;;  %v4515_v24 = vunpack.i.l.bf16 %v6386_v33  ;;  %v6390_v7 = vpop.permute.xlu0 %4538 }
 0x479   : > { %v4541_v44 = vunpack.i.h.bf16 %v6390_v7  ;;  %v4540_v28 = vunpack.i.l.bf16 %v6390_v7 }
 0x47a   : > { %v1950_v18 = vsel %vm773_vm10, %v4515_v24, %v4516_v47  ;;  %v1949_v3 = vsel %vm773_vm10, %v4501_v53, %v4515_v24 }
 0x47b   : > { %v2049_v26 = vpack.c.bf16 %v1950_v18, %v1950_v18  ;;  %v6398_v23 = vpop.permute.xlu1 %4523  ;;  %v2048_v13 = vpack.c.bf16 %v1949_v3, %v1949_v3  ;;  %v1920_v42 = vsel %vm773_vm10, %v4540_v28, %v4541_v44 }
 0x47c   : > { %v4526_v55 = vunpack.i.h.bf16 %v6398_v23  ;;  %v4525_v58 = vunpack.i.l.bf16 %v6398_v23  ;;  %v4544_v37 = vpop.permute.xlu0 %4543 }
 0x47d   : > { %3580 = vmatprep.subr.msk.bf16.mxu0 %vm1290_vm2, %v2049_v26  ;;  %v2078_v31 = vsel %vm1290_vm2, %v2048_v13, 0  ;;  %v4545_v14 = vunpack.i.l.bf16 %v4544_v37  ;;  %v4546_v21 = vunpack.i.h.bf16 %v4544_v37 }
 0x47e   : > { %v1944_v35 = vsel %vm773_vm10, %v4506_v50, %v4525_v58  ;;  %2115 = vmatpush2.bf16.msra.mxu0 %v2078_v31  ;;  %v1945_v48 = vsel %vm773_vm10, %v4525_v58, %v4526_v55 }
 0x47f   : > { %v2043_v34 = vpack.c.bf16 %v1944_v35, %v1939_v40  ;;  %v6414_v25 = vpop.permute.xlu1 %4528  ;;  %v2044_v12 = vpack.c.bf16 %v1945_v48, %v1940_v11  ;;  %v1919_v52 = vsel %vm773_vm10, %v4545_v14, %v4540_v28  ;;  %v6464_v11 = vld [vmem:[%s7149_s3] ss:$8 sps:$4 sm:$0xff]  }
 0x480   : > { %v4531_v36 = vunpack.i.h.bf16 %v6414_v25  ;;  %v4530_v1 = vunpack.i.l.bf16 %v6414_v25  ;;  %v4559_v9 = vpop.permute.xlu0 %4558 }
 0x481   : > { %2116 = vmatprep.subr.bf16.mxu0 %v2044_v12  ;;  %v4561_v5 = vunpack.i.h.bf16 %v4559_v9  ;;  %v4560_v3 = vunpack.i.l.bf16 %v4559_v9 }
 0x482   : > { %v1929_v63 = vsel %vm773_vm10, %v4510_v61, %v4530_v1  ;;  %2117 = vmatpush2.bf16.msra.mxu0 %v2043_v34  ;;  %v1930_v15 = vsel %vm773_vm10, %v4530_v1, %v4531_v36  ;;  %v7322_v34 = vmov 0  }
 0x483   : > { %v2038_v38 = vpack.c.bf16 %v1934_v41, %v1929_v63  ;;  %v6428_v29 = vpop.permute.xlu1 %4548  ;;  %v2039_v49 = vpack.c.bf16 %v1935_v0, %v1930_v15  ;;  %v1951_v37 = vsel %vm773_vm10, %v4516_v47, %v4561_v5 }
 0x484   : > { %v4551_v43 = vunpack.i.h.bf16 %v6428_v29  ;;  %v4550_v6 = vunpack.i.l.bf16 %v6428_v29  ;;  %v6432_v51 = vpop.permute.xlu0 %4568  ;;  %v2050_v48 = vpack.c.bf16 %v1951_v37, %v1951_v37  ;;  %v7326_v37 = vld [vmem:[#allocation11_spill] sm:$0xff] }
 0x485   : > { %2118 = vmatprep.subr.bf16.mxu0 %v2039_v49  ;;  %v4570_v12 = vunpack.i.l.bf16 %v6432_v51 }
 0x486   : > { %v1924_v4 = vsel %vm773_vm10, %v4546_v21, %v4550_v6  ;;  %2119 = vmatpush2.bf16.msra.mxu0 %v2038_v38  ;;  %v1925_v53 = vsel %vm773_vm10, %v4550_v6, %v4551_v43  ;;  %v2084_v41 = vsel %vm1290_vm2, %v2050_v48, 0 }
 0x487   : > { %v2033_v24 = vpack.c.bf16 %v1924_v4, %v1919_v52  ;;  %v6442_v57 = vpop.permute.xlu1 %4553  ;;  %v2034_v18 = vpack.c.bf16 %v1925_v53, %v1920_v42 }
 0x488   : > { %v4556_v30 = vunpack.i.h.bf16 %v6442_v57  ;;  %v4555_v26 = vunpack.i.l.bf16 %v6442_v57  ;;  %v6447_v50 = vpop.permute.xlu0 %4578 }
 0x489   : > { %2120 = vmatprep.subr.bf16.mxu0 %v2034_v18  ;;  %v4580_v21 = vunpack.i.l.bf16 %v6447_v50 }
 0x48a   : > { %v1914_v13 = vsel %vm773_vm10, %v4560_v3, %v4555_v26  ;;  %2121 = vmatpush2.bf16.msra.mxu0 %v2033_v24  ;;  %v1915_v58 = vsel %vm773_vm10, %v4555_v26, %v4556_v30 }
 0x48b   : > { %v2028_v40 = vpack.c.bf16 %v1914_v13, %v6309_v2  ;;  %v6456_v54 = vpop.permute.xlu1 %4563  ;;  %v2029_v10 = vpack.c.bf16 %v1915_v58, %v5989_v46  ;;  %v4571_v2 = vunpack.i.h.bf16 %v6432_v51 }
 0x48c   : > { %v4565_v31 = vunpack.i.l.bf16 %v6456_v54  ;;  %v4566_v35 = vunpack.i.h.bf16 %v6456_v54  ;;  %v6474_v61 = vpop.permute.xlu0 %4588 }
 0x48d   : > { %2122 = vmatprep.subr.bf16.mxu0 %v2029_v10  ;;  %v4591_v23 = vunpack.i.h.bf16 %v6474_v61 }
 0x48e   : > { %v1952_v33 = vsel %vm773_vm10, %v4561_v5, %v4565_v31  ;;  %2123 = vmatpush2.bf16.msra.mxu0 %v2028_v40  ;;  %v1941_v9 = vsel %vm773_vm10, %v4521_v56, %v4566_v35  ;;  %v1942_v14 = vsel %vm773_vm10, %v4566_v35, %v4570_v12  ;;  %v1946_v56 = vsel %vm773_vm10, %v4526_v55, %v4571_v2  ;;  %v7325_v5 = vld [vmem:[#allocation8_spill] sm:$0xff] }
 0x48f   : > { %v2051_v47 = vpack.c.bf16 %v1952_v33, %v1952_v33  ;;  %v6470_v46 = vpop.permute.xlu1 %4573  ;;  %2178 = vmatprep.subr.bf16.mxu0 %v7322_v34  ;;  %v2045_v0 = vpack.c.bf16 %v1946_v56, %v1941_v9  ;;  %v4590_v55 = vunpack.i.l.bf16 %v6474_v61  ;;  %v2023_v4 = vpack.c.bf16 %v6283_v17, %v7325_v5  ;;  %v7327_v33 = vld [vmem:[#allocation14_spill] sm:$0xff]  ;;  %v7330_v9 = vld [vmem:[#allocation9_spill] sm:$0xff] }
 0x490   : > { %v4575_v1 = vunpack.i.l.bf16 %v6470_v46  ;;  %v4576_v28 = vunpack.i.h.bf16 %v6470_v46  ;;  %v1748_v42 = vpop.permute.xlu0 %1747 }
 0x491   : > { %2125 = vmatmul.mubr.bf16.vlgmr.msra.gmra.mxu0 %v6464_v11  ;;  %3582 = vmatprep.subr.msk.bf16.mxu1 %vm1290_vm2, %v2051_v47  ;;  %v1754_v26 = vsel %vm1749_vm3, %v6345_v59, %v1748_v42 }
 0x492   : > { %2158 = vmatpush2.bf16.msra.mxu1 %v2084_v41  ;;  %2179 = vmatpush1.bf16.msra.mxu0 %v6285_v60  ;;  %v1947_v8 = vsel %vm773_vm10, %v4571_v2, %v4575_v1  ;;  %v4581_v60 = vunpack.i.h.bf16 %v6447_v50  ;;  %v1931_v6 = vsel %vm773_vm10, %v4531_v36, %v4576_v28  ;;  %v1932_v24 = vsel %vm773_vm10, %v4576_v28, %v4580_v21  ;;  %v7331_v41 = vld [vmem:[#allocation10_spill] sm:$0xff] }
 0x493   : > { %v6494_v63 = vpop.permute.xlu1 %4583  ;;  %v2046_v15 = vpack.c.bf16 %v1947_v8, %v1942_v14  ;;  %2180 = vmatprep.subr.bf16.mxu0 %v7322_v34  ;;  %3584 = vmatprep.mubr.msk.bf16.mxu0 %vm1286_vm15, %v6172_v22  ;;  %v7323_v22 = vld [vmem:[#allocation15_spill] sm:$0xff]  ;;  %v2021_v40 = vpack.c.bf16 %v1754_v26, %v7326_v37  ;;  %v7332_v28 = vpack.c.bf16 %v7330_v9, %v7331_v41  ;;  %v4670_v41 = vld [vmem:[%s7151_s5 + $0x70] sm:$0xff]   ;;  %vm4839_vm15 = vmmov 0  }
 0x494   : > { %v4586_v38 = vunpack.i.h.bf16 %v6494_v63  ;;  %v4585_v49 = vunpack.i.l.bf16 %v6494_v63  ;;  %v7324_v52 = vpack.c.bf16 %v6201_v62, %v7323_v22  ;;  %v1936_v62 = vsel %vm773_vm10, %v4536_v27, %v4581_v60  ;;  %v1913_v57 = vpop.permute.xlu0 %1912  ;;  %v4669_v9 = vld [vmem:[%s7151_s5 + $0x38] sm:$0xff]  }
 0x495   : > { %2159 = vmatprep.subr.bf16.mxu1 %v2046_v15  ;;  %v2040_v3 = vpack.c.bf16 %v1936_v62, %v1931_v6  ;;  %v1926_v27 = vsel %vm773_vm10, %v4551_v43, %v4591_v23  ;;  %v7328_v43 = vld [vmem:[#allocation12_spill] sm:$0xff]  ;;  %v2001_v14 = vpack.c.bf16 %v6125_v16, %v5897_v20 }
 0x496   : > { %2160 = vmatpush2.bf16.msra.mxu1 %v2045_v0  ;;  %2181 = vmatpush1.bf16.msra.mxu0 %v7324_v52  ;;  %v1937_v25 = vsel %vm773_vm10, %v4581_v60, %v4585_v49  ;;  %v1922_v17 = vsel %vm773_vm10, %v4586_v38, %v4590_v55  ;;  %v1921_v58 = vsel %vm773_vm10, %v4541_v44, %v4586_v38 }
 0x497   : > { %v6513_v53 = vpop.permute.xlu1 %1850  ;;  %2182 = vmatprep.subr.bf16.mxu0 %v7322_v34  ;;  %v2041_v18 = vpack.c.bf16 %v1937_v25, %v1932_v24  ;;  %v2035_v59 = vpack.c.bf16 %v1926_v27, %v1921_v58  ;;  %v2016_v2 = vpack.c.bf16 %v7328_v43, %v7327_v33 }
 0x498   : > { %v1927_v36 = vsel %vm773_vm10, %v4591_v23, %v6513_v53 }
 0x499   : > { %v2036_v13 = vpack.c.bf16 %v1927_v36, %v1922_v17  ;;  %2161 = vmatprep.subr.bf16.mxu1 %v2041_v18 }
 0x49a   : > { %2183 = vmatpush1.bf16.msra.mxu0 %v2023_v4  ;;  %2162 = vmatpush2.bf16.msra.mxu1 %v2040_v3 }
 0x49b   : > { %v4594_v19 = vpop.permute.xlu1 %4593  ;;  %2184 = vmatprep.subr.bf16.mxu0 %v7322_v34  ;;  %2163 = vmatprep.subr.bf16.mxu1 %v2036_v13 }
 0x49c   : > { %v4596_v10 = vunpack.i.h.bf16 %v4594_v19  ;;  %v4595_v35 = vunpack.i.l.bf16 %v4594_v19 }
 0x49e   : > { %v1916_v7 = vsel %vm773_vm10, %v4556_v30, %v4595_v35  ;;  %2185 = vmatpush1.bf16.msra.mxu0 %v2021_v40  ;;  %v1917_v44 = vsel %vm773_vm10, %v4595_v35, %v4596_v10  ;;  %2164 = vmatpush2.bf16.msra.mxu1 %v2035_v59  ;;  %v7329_v30 = vpack.c.bf16 %v6165_v39, %v6151_v32  ;;  %v4604_v39 = vpop.permute.xlu0 %4603 }
 0x49f   : > { %v2030_v48 = vpack.c.bf16 %v1916_v7, %v5985_v45  ;;  %v2031_v29 = vpack.c.bf16 %v1917_v44, %v7327_v33  ;;  %2186 = vmatprep.subr.bf16.mxu0 %v7322_v34  ;;  %v1953_v45 = vsel %vm773_vm10, %v4565_v31, %v1913_v57  ;;  %v4599_v47 = vpop.permute.xlu1 %4598  ;;  %v4606_v31 = vunpack.i.h.bf16 %v4604_v39 }
 0x4a0   : > { %v2052_v8 = vpack.c.bf16 %v1953_v45, %v1953_v45  ;;  %v4601_v56 = vunpack.i.h.bf16 %v4599_v47  ;;  %v4600_v32 = vunpack.i.l.bf16 %v4599_v47  ;;  %v4605_v15 = vunpack.i.l.bf16 %v4604_v39  ;;  %v4668_v47 = vld [vmem:[%s7151_s5 + $0x78] sm:$0xff]   ;;  %v4672_v39 = vld [vmem:[%s7151_s5 + $0x68] sm:$0xff]  }
 0x4a1   : > { %2165 = vmatprep.subr.bf16.mxu1 %v2031_v29  ;;  %v1938_v23 = vsel %vm773_vm10, %v4585_v49, %v4606_v31  ;;  %v4674_v31 = vld [vmem:[%s7151_s5 + $0x60] sm:$0xff]  }
 0x4a2   : > { %2187 = vmatpush1.bf16.msra.mxu0 %v2016_v2  ;;  %2166 = vmatpush2.bf16.msra.mxu1 %v2030_v48  ;;  %v2090_v54 = vsel %vm1290_vm2, %v2052_v8, 0  ;;  %v1948_v60 = vsel %vm773_vm10, %v4575_v1, %v4601_v56  ;;  %v1943_v0 = vsel %vm773_vm10, %v4570_v12, %v4600_v32  ;;  %v1933_v38 = vsel %vm773_vm10, %v4580_v21, %v4605_v15  ;;  %v1829_v50 = vpop.permute.xlu0 %1828  ;;  %v7333_v21 = vld [vmem:[#allocation13_spill] sm:$0xff]  ;;  %v4675_v15 = vld [vmem:[%s7151_s5 + $0x20] sm:$0xff]  }
 0x4a3   : > { %2188 = vmatprep.subr.bf16.mxu0 %v7322_v34  ;;  %v4609_v20 = vpop.permute.xlu1 %4608  ;;  %v2047_v16 = vpack.c.bf16 %v1948_v60, %v1943_v0  ;;  %v2042_v51 = vpack.c.bf16 %v1938_v23, %v1933_v38  ;;  %v1918_v49 = vsel %vm773_vm10, %v4596_v10, %v1829_v50  ;;  %3666 = vmatprep.subr.bf16.mxu1 %v4668_v47  ;;  %v4671_v56 = vld [vmem:[%s7151_s5 + $0x30] sm:$0xff]   ;;  %v4676_v60 = vld [vmem:[%s7151_s5 + $0x58] sm:$0xff]  }
 0x4a4   : > { %v4611_v46 = vunpack.i.h.bf16 %v4609_v20  ;;  %v4610_v6 = vunpack.i.l.bf16 %v4609_v20  ;;  %v2032_v42 = vpack.c.bf16 %v1918_v49, %v7333_v21  ;;  %v4677_v0 = vld [vmem:[%s7151_s5 + $0x18] sm:$0xff]   ;;  %v4678_v20 = vld [vmem:[%s7151_s5 + $0x50] sm:$0xff]   ;;  %v4682_v49 = vld [vmem:[%s7151_s5 + $0x40] sm:$0xff]  }
 0x4a5   : > { %2168 = vmatmul.mubr.bf16.vlgmr.msra.gmra.mxu1 %v6464_v11  ;;  %v4683_v21 = vld [vmem:[%s7151_s5] sm:$0xff]  }
 0x4a6   : > { %2189 = vmatpush1.bf16.msra.mxu0 %v7329_v30  ;;  %v1928_v12 = vsel %vm773_vm10, %v6513_v53, %v4611_v46  ;;  %v1923_v1 = vsel %vm773_vm10, %v4590_v55, %v4610_v6  ;;  %3667 = vmatpush3.bf16.msra.mxu1 %v4669_v9  ;;  %v4680_v6 = vld [vmem:[%s7151_s5 + $0x48] sm:$0xff]   ;;  %vm7233_vm10 = vcmask 1040384  }
 0x4a7   : > { %2190 = vmatprep.subr.bf16.mxu0 %v7322_v34  ;;  %v2037_v63 = vpack.c.bf16 %v1928_v12, %v1923_v1  ;;  %3668 = vmatprep.subr.bf16.mxu1 %v4670_v41 }
 0x4a9   : > { %v2063_v25 = vpop.permute.xlu0 %2062 }
 0x4aa   : > { %2191 = vmatpush1.bf16.msra.mxu0 %v7332_v28  ;;  %3669 = vmatpush3.bf16.msra.mxu1 %v4671_v56 }
 0x4ab   : > { %2192 = vmatprep.subr.bf16.mxu0 %v7322_v34  ;;  %3670 = vmatprep.subr.bf16.mxu1 %v4672_v39 }
 0x4ae   : > { %2193 = vmatpush1.bf16.msra.mxu0 %v2001_v14 }
 0x4af   : > { %2200 = vmatprep.subr.bf16.mxu0 %v7322_v34 }
 0x4b0   : > { %v2058_v5 = vpop.permute.xlu1 %2057 }
 0x4b2   : > { %2201 = vmatpush2.bf16.msra.mxu0 %v2090_v54  ;;  %v4673_v54 = vld [vmem:[%s7151_s5 + $0x28] sm:$0xff]  }
 0x4b3   : > { %2202 = vmatprep.subr.bf16.mxu0 %v7322_v34  ;;  %3671 = vmatpush3.bf16.msra.mxu1 %v4673_v54 }
 0x4b4   : > { %3672 = vmatprep.subr.bf16.mxu1 %v4674_v31 }
 0x4b6   : > { %2203 = vmatpush2.bf16.msra.mxu0 %v2047_v16  ;;  %v4679_v16 = vld [vmem:[%s7151_s5 + $0x10] sm:$0xff]  }
 0x4b7   : > { %2204 = vmatprep.subr.bf16.mxu0 %v7322_v34  ;;  %3673 = vmatpush3.bf16.msra.mxu1 %v4675_v15 }
 0x4b8   : > { %3674 = vmatprep.subr.bf16.mxu1 %v4676_v60 }
 0x4ba   : > { %2205 = vmatpush2.bf16.msra.mxu0 %v2042_v51  ;;  %v4681_v51 = vld [vmem:[%s7151_s5 + $0x8] sm:$0xff]  }
 0x4bb   : > { %2206 = vmatprep.subr.bf16.mxu0 %v7322_v34  ;;  %3675 = vmatpush3.bf16.msra.mxu1 %v4677_v0 }
 0x4bc   : > { %3676 = vmatprep.subr.bf16.mxu1 %v4678_v20 }
 0x4be   : > { %2207 = vmatpush2.bf16.msra.mxu0 %v2037_v63 }
 0x4bf   : > { %2208 = vmatprep.subr.bf16.mxu0 %v7322_v34  ;;  %3677 = vmatpush3.bf16.msra.mxu1 %v4679_v16 }
 0x4c0   : > { %3678 = vmatprep.subr.bf16.mxu1 %v4680_v6  ;;  %v4685_v6 = vld [vmem:[%s7151_s5 + $0xb8] sm:$0xff]  }
 0x4c2   : > { %2209 = vmatpush2.bf16.msra.mxu0 %v2032_v42 }
 0x4c3   : > { %3679 = vmatpush3.bf16.msra.mxu1 %v4681_v51 }
 0x4c4   : > { %3680 = vmatprep.subr.bf16.mxu1 %v4682_v49  ;;  %v4690_v49 = vld [vmem:[%s7151_s5 + $0xe0] sm:$0xff]  }
 0x4c5   : > { %2211 = vmatmul.mubr.bf16.vlgmr.msra.gmra.mxu0 %v6464_v11 }
 0x4c7   : > { %3681 = vmatpush3.bf16.msra.mxu1 %v4683_v21  ;;  %v4691_v21 = vld [vmem:[%s7151_s5 + $0xa0] sm:$0xff]  }
 0x551   : > { %v2126_v22 = vpop.f32.mrf.mxu0 }
 0x552   : > { %v6609_v37 = vadd.f32 %v2126_v22, %v2058_v5 }
 0x553   : > { %v2128_v52 = vpop.f32.mrf.mxu0 }
 0x554   : > { %v6590_v55 = vadd.f32 %v2128_v52, %v2058_v5  ;;  %v2219_v48 = vmax.f32 %v6609_v37, 0.0 }
 0x555   : > { %v2130_v61 = vpop.f32.mrf.mxu0 }
 0x556   : > { %v2220_v17 = vmax.f32 %v6590_v55, 0.0  ;;  %v6600_v26 = vadd.f32 %v2130_v61, %v2063_v25 }
 0x557   : > { %v2132_v4 = vpop.f32.mrf.mxu0 }
 0x558   : > { %v6595_v36 = vadd.f32 %v2132_v4, %v2063_v25  ;;  %v2224_v35 = vmax.f32 %v6600_v26, 0.0  ;;  %v2624_v26 = vsel %vm7233_vm10, 65535, %v7322_v34 }
 0x55a   : > { %v2225_v40 = vmax.f32 %v6595_v36, 0.0  ;;  %v4628_v29 = vpack.i.bf16 %v2224_v35, %v2219_v48 }
 0x565   : > { %v2169_v53 = vpop.f32.mrf.mxu1 }
 0x566   : > { %v6592_v24 = vadd.f32 %v2169_v53, %v2058_v5 }
 0x567   : > { %v2171_v62 = vpop.f32.mrf.mxu1 }
 0x568   : > { %v2221_v18 = vmax.f32 %v6592_v24, 0.0  ;;  %v6598_v3 = vadd.f32 %v2171_v62, %v2058_v5 }
 0x569   : > { %v2173_v11 = vpop.f32.mrf.mxu1 }
 0x56a   : > { %v4613_v13 = vpack.i.bf16 %v2221_v18, %v2220_v17  ;;  %v2222_v58 = vmax.f32 %v6598_v3, 0.0  ;;  %v6607_v19 = vadd.f32 %v2173_v11, %v2063_v25 }
 0x56b   : > { %v2175_v27 = vpop.f32.mrf.mxu1 }
 0x56c   : > { %v6612_v10 = vadd.f32 %v2175_v27, %v2063_v25  ;;  %4614 = vrot.lane.b32.xlu1 %v4613_v13, %s7244_s29  ;;  %v4618_v59 = vpack.i.bf16 %v2225_v40, %v2222_v58  ;;  %v2226_v7 = vmax.f32 %v6607_v19, 0.0 }
 0x56e   : > { %v2227_v44 = vmax.f32 %v6612_v10, 0.0 }
 0x570   : > { %v4623_v33 = vpack.i.bf16 %v2227_v44, %v2226_v7  ;;  %4619 = vrot.lane.b32.xlu1 %v4618_v59, %s7244_s29 }
 0x572   : > { %4624 = vrot.lane.b32.xlu0 %v4623_v33, %s7244_s29 }
 0x574   : > { %4629 = vrot.lane.b32.xlu1 %v4628_v29, %s7244_s29 }
 0x585   : > { %v2212_v43 = vpop.f32.mrf.mxu0 }
 0x586   : > { %v6634_v57 = vadd.f32 %v2212_v43, %v2058_v5 }
 0x587   : > { %v2214_v2 = vpop.f32.mrf.mxu0 }
 0x588   : > { %v2223_v14 = vmax.f32 %v6634_v57, 0.0 }
 0x589   : > { %v2215_v30 = vpop.f32.mrf.mxu0 }
 0x58a   : > { %v6636_v45 = vadd.f32 %v2215_v30, %v2063_v25  ;;  %v4684_v25 = vld [vmem:[%s7151_s5 + $0xf8] sm:$0xff]  }
 0x58b   : > { %v2217_v28 = vpop.f32.mrf.mxu0  ;;  %3688 = vmatprep.subr.bf16.mxu1 %v4684_v25 }
 0x58c   : > { %v2228_v8 = vmax.f32 %v6636_v45, 0.0 }
 0x58e   : > { %v4633_v32 = vpack.i.bf16 %v2228_v8, %v2223_v14 }
 0x590   : > { %4634 = vrot.lane.b32.xlu0 %v4633_v32, %s7244_s29 }
 0x5de   : > { %v4615_v38 = vpop.permute.xlu1 %4614 }
 0x5df   : > { %v4617_v23 = vunpack.i.h.bf16 %v4615_v38  ;;  %v4616_v46 = vunpack.i.l.bf16 %v4615_v38 }
 0x5e1   : > { %v2260_v1 = vsel %vm469_vm5, %v4616_v46, %v4617_v23 }
 0x5e2   : > { %v4620_v12 = vpop.permute.xlu1 %4619  ;;  %v6697_v5 = vmax.f32 %v2220_v17, %v2260_v1  ;;  %v4687_v1 = vld [vmem:[%s7151_s5 + $0xb0] sm:$0xff]  }
 0x5e3   : > { %v4621_v50 = vunpack.i.l.bf16 %v4620_v12  ;;  %v4622_v42 = vunpack.i.h.bf16 %v4620_v12  ;;  %v4686_v12 = vld [vmem:[%s7151_s5 + $0xf0] sm:$0xff]  }
 0x5e4   : > { %v4625_v63 = vpop.permute.xlu0 %4624 }
 0x5e5   : > { %v2261_v22 = vsel %vm469_vm5, %v4617_v23, %v4621_v50  ;;  %v4627_v52 = vunpack.i.h.bf16 %v4625_v63  ;;  %v4626_v61 = vunpack.i.l.bf16 %v4625_v63  ;;  %v4689_v63 = vld [vmem:[%s7151_s5 + $0xa8] sm:$0xff]  }
 0x5e6   : > { %v6701_v4 = vmax.f32 %v2221_v18, %v2261_v22  ;;  %v4630_v53 = vpop.permute.xlu1 %4629  ;;  %v4693_v22 = vld [vmem:[%s7151_s5 + $0x98] sm:$0xff]  }
 0x5e7   : > { %v2264_v62 = vsel %vm469_vm5, %v4622_v42, %v4626_v61  ;;  %v2265_v11 = vsel %vm469_vm5, %v4626_v61, %v4627_v52  ;;  %v4632_v13 = vunpack.i.h.bf16 %v4630_v53  ;;  %v4631_v27 = vunpack.i.l.bf16 %v4630_v53  ;;  %v4696_v61 = vld [vmem:[%s7151_s5 + $0x90] sm:$0xff]  }
 0x5e8   : > { %v2283_v55 = vmax.f32 %v2225_v40, %v2264_v62  ;;  %v6712_v24 = vmax.f32 %v2226_v7, %v2265_v11  ;;  %v4638_v17 = vpack.i.bf16 %v6701_v4, %v6697_v5  ;;  %v4695_v40 = vld [vmem:[%s7151_s5 + $0x108] ss:$0 sps:$4 sm:$0x11]   ;;  %v4838_v7 = vmov 0.0  }
 0x5e9   : > { %v2259_v18 = vsel %vm469_vm5, %v4631_v27, %v4616_v46  ;;  %v2263_v59 = vsel %vm469_vm5, %v4632_v13, %v4622_v42  ;;  %3751 = vmatprep.subr.bf16.mxu0 %v4838_v7  ;;  %v2626_v37 = vand.u32 %v4695_v40, %v2624_v26  ;;  %3755 = vmatprep.mubr.msk.bf16.mxu0 %vm4839_vm15, %v4838_v7  ;;  %v4692_v42 = vld [vmem:[%s7151_s5 + $0xd8] sm:$0xff]  }
 0x5ea   : > { %v2277_v33 = vmax.f32 %v2219_v48, %v2259_v18  ;;  %v2282_v29 = vmax.f32 %v2224_v35, %v2263_v59  ;;  %4639 = vrot.lane.b32.xlu1 %v4638_v17, %s7252_s20  ;;  %v4643_v36 = vpack.i.bf16 %v6712_v24, %v2283_v55  ;;  %v4699_v48 = vld [vmem:[%s7151_s5 + $0x100] sm:$0xff]  }
 0x5eb   : > { %3752 = vmatpush3.bf16.msra.mxu0 %v2626_v37 }
 0x5ec   : > { %4644 = vrot.lane.b32.xlu0 %v4643_v36, %s7252_s20  ;;  %v4648_v19 = vpack.i.bf16 %v2282_v29, %v2277_v33  ;;  %3753 = vmatprep.subr.bf16.mxu0 %v4838_v7 }
 0x5ee   : > { %4649 = vrot.lane.b32.xlu1 %v4648_v19, %s7252_s20 }
 0x5ef   : > { %3754 = vmatpush3.bf16.msra.mxu0 %v4699_v48 }
 0x602   : > { %v4635_v35 = vpop.permute.xlu0 %4634 }
 0x603   : > { %v4637_v43 = vunpack.i.h.bf16 %v4635_v35  ;;  %v4636_v2 = vunpack.i.l.bf16 %v4635_v35  ;;  %v4701_v35 = vld [vmem:[%s7151_s5 + $0x80] sm:$0xff]  }
 0x605   : > { %v6740_v30 = vmax.f32 %v2228_v8, %v4637_v43  ;;  %v2266_v47 = vsel %vm469_vm5, %v4627_v52, %v4637_v43  ;;  %v2281_v9 = vmax.f32 %v2223_v14, %v4636_v2  ;;  %v2262_v41 = vsel %vm469_vm5, %v4621_v50, %v4636_v2  ;;  %v4688_v50 = vld [vmem:[%s7151_s5 + $0xe8] sm:$0xff]   ;;  %v4694_v52 = vld [vmem:[%s7151_s5 + $0xd0] sm:$0xff]  }
 0x606   : > { %v6748_v28 = vmax.f32 %v2227_v44, %v2266_v47  ;;  %v6752_v56 = vmax.f32 %v2222_v58, %v2262_v41  ;;  %vm2618_vm5 = vcmask 138240  }
 0x608   : > { %v4658_v45 = vpack.i.bf16 %v6740_v30, %v6748_v28  ;;  %v4653_v8 = vpack.i.bf16 %v2281_v9, %v6752_v56 }
 0x60a   : > { %4654 = vrot.lane.b32.xlu0 %v4653_v8, %s7252_s20  ;;  %4659 = vrot.lane.b32.xlu1 %v4658_v45, %s7252_s20  ;;  %v2751_v45 = vlaneseq  ;;  %v4840_v8 = vmov 1966171168   ;;  %s4845_s20 = smov 22  }
 0x60c   : > { %vm2782_vm4 = vcmp.ge.s32.totalorder %v2751_v45, 25  ;;  %vm2783_vm11 = vcmp.lt.s32.totalorder %v2751_v45, 50  ;;  %vm2790_vm13 = vcmp.ge.s32.totalorder %v2751_v45, 50  ;;  %vm2791_vm14 = vcmp.lt.s32.totalorder %v2751_v45, 75 }
 0x60d   : > { %vm2784_vm0 = vmand %vm2782_vm4, %vm2783_vm11  ;;  %vm2798_vm9 = vcmp.ge.s32.totalorder %v2751_v45, 75  ;;  %vm2799_vm8 = vcmp.lt.s32.totalorder %v2751_v45, 100  ;;  %vm2837_vm4 = vcmp.ge.s32.totalorder %v2751_v45, 125  ;;  %vm2838_vm11 = vcmp.lt.s32.totalorder %v2751_v45, 150 }
 0x60e   : > { %vm2792_vm3 = vmand %vm2790_vm13, %vm2791_vm14  ;;  %vm6938_vm13 = vcmp.ge.s32.totalorder %v2751_v45, 22  ;;  %vm2846_vm14 = vcmp.lt.s32.totalorder %v2751_v45, 47 }
 0x60f   : > { %vm2800_vm10 = vmand %vm2798_vm9, %vm2799_vm8  ;;  %vm6957_vm9 = vcmp.ge.s32.totalorder %v2751_v45, 72  ;;  %vm6967_vm8 = vcmp.ge.s32.totalorder %v2751_v45, 97 }
 0x65c   : > { %v4640_v57 = vpop.permute.xlu1 %4639 }
 0x65d   : > { %v4642_v14 = vunpack.i.h.bf16 %v4640_v57  ;;  %v4641_v32 = vunpack.i.l.bf16 %v4640_v57  ;;  %v2758_v57 = vunpack.c.l.s4 %v4840_v8 }
 0x65e   : > { %v4645_v39 = vpop.permute.xlu0 %4644 }
 0x65f   : > { %v2318_v10 = vsel %vm711_vm12, %v4641_v32, %v4642_v14  ;;  %v4647_v44 = vunpack.i.h.bf16 %v4645_v39  ;;  %v4646_v54 = vunpack.i.l.bf16 %v4645_v39  ;;  %v2759_v39 = vunpack.c.0.s8 %v2758_v57 }
 0x660   : > { %v4650_v3 = vpop.permute.xlu1 %4649  ;;  %v2336_v60 = vmax.f32 %v6697_v5, %v2318_v10  ;;  %v4697_v5 = vld [vmem:[%s7151_s5 + $0xc8] sm:$0xff]   ;;  %v6820_v10 = vshrl.u32 %v2751_v45, 7 }
 0x661   : > { %v2322_v58 = vsel %vm711_vm12, %v4646_v54, %v4647_v44  ;;  %v4652_v31 = vunpack.i.h.bf16 %v4650_v3  ;;  %v4651_v15 = vunpack.i.l.bf16 %v4650_v3 }
 0x662   : > { %v2341_v0 = vmax.f32 %v2283_v55, %v2322_v58  ;;  %v4698_v55 = vld [vmem:[%s7151_s5 + $0x88] sm:$0xff]  }
 0x663   : > { %v2321_v20 = vsel %vm711_vm12, %v4652_v31, %v4646_v54  ;;  %v2317_v16 = vsel %vm711_vm12, %v4651_v15, %v4641_v32  ;;  %v6823_v15 = vsub.s32 %v2759_v39, %v6820_v10  ;;  %v4724_v39 = vld [vmem:[%s7152_s6 + $0x40] sm:$0xff]  }
 0x664   : > { %v2340_v38 = vmax.f32 %v2282_v29, %v2321_v20  ;;  %v2335_v23 = vmax.f32 %v2277_v33, %v2317_v16  ;;  %v2346_v46 = vpack.c.bf16 %v2341_v0, %v2336_v60  ;;  %v4700_v33 = vld [vmem:[%s7151_s5 + $0xc0] sm:$0xff]  }
 0x666   : > { %2660 = vmatprep.mubr.bf16.mxu1 %v2346_v46  ;;  %v2345_v51 = vpack.c.bf16 %v2340_v38, %v2335_v23  ;;  %v4702_v38 = vld [vmem:[%s7152_s6 + $0xb8] sm:$0xff]  }
 0x668   : > { %2661 = vmatmul.mubr.bf16.vlgmr.msra.gmra.mxu1 %v2345_v51 }
 0x669   : > { %3689 = vmatpush3.bf16.msra.mxu1 %v4685_v6 }
 0x66a   : > { %3690 = vmatprep.subr.bf16.mxu1 %v4686_v12 }
 0x66d   : > { %3691 = vmatpush3.bf16.msra.mxu1 %v4687_v1  ;;  %v4703_v1 = vld [vmem:[%s7152_s6 + $0x78] sm:$0xff]  }
 0x66e   : > { %3692 = vmatprep.subr.bf16.mxu1 %v4688_v50  ;;  %3713 = vmatprep.subr.bf16.mxu0 %v4703_v1  ;;  %v3296_v1 = vld [vmem:[%s7155_s9] sm:$0x1] }
 0x671   : > { %3693 = vmatpush3.bf16.msra.mxu1 %v4689_v63 }
 0x672   : > { %3694 = vmatprep.subr.bf16.mxu1 %v4690_v49 }
 0x675   : > { %3695 = vmatpush3.bf16.msra.mxu1 %v4691_v21 }
 0x676   : > { %3696 = vmatprep.subr.bf16.mxu1 %v4692_v42  ;;  %v4704_v42 = vld [vmem:[%s7152_s6 + $0x38] sm:$0xff]  }
 0x679   : > { %3697 = vmatpush3.bf16.msra.mxu1 %v4693_v22  ;;  %v4705_v22 = vld [vmem:[%s7152_s6 + $0xb0] sm:$0xff]  }
 0x67a   : > { %3698 = vmatprep.subr.bf16.mxu1 %v4694_v52  ;;  %v4706_v52 = vld [vmem:[%s7152_s6 + $0x70] sm:$0xff]  }
 0x67c   : > { %v4655_v53 = vpop.permute.xlu0 %4654  ;;  %v4660_v25 = vpop.permute.xlu1 %4659 }
 0x67d   : > { %v4657_v62 = vunpack.i.h.bf16 %v4655_v53  ;;  %v4656_v11 = vunpack.i.l.bf16 %v4655_v53  ;;  %v4662_v13 = vunpack.i.h.bf16 %v4660_v25  ;;  %v4661_v27 = vunpack.i.l.bf16 %v4660_v25  ;;  %3699 = vmatpush3.bf16.msra.mxu1 %v4696_v61  ;;  %v4707_v61 = vld [vmem:[%s7152_s6 + $0x30] sm:$0xff]  }
 0x67e   : > { %3700 = vmatprep.subr.bf16.mxu1 %v4697_v5  ;;  %v4708_v5 = vld [vmem:[%s7152_s6 + $0xa8] sm:$0xff]  }
 0x67f   : > { %v2339_v17 = vmax.f32 %v2281_v9, %v4657_v62  ;;  %v2320_v18 = vsel %vm711_vm12, %v4656_v11, %v4657_v62  ;;  %v2344_v59 = vmax.f32 %v6740_v30, %v4662_v13  ;;  %v2319_v29 = vsel %vm711_vm12, %v4642_v14, %v4656_v11 }
 0x680   : > { %v2323_v36 = vsel %vm711_vm12, %v4647_v44, %v4661_v27  ;;  %v2324_v19 = vsel %vm711_vm12, %v4661_v27, %v4662_v13  ;;  %v2338_v40 = vmax.f32 %v6752_v56, %v2320_v18  ;;  %v2337_v48 = vmax.f32 %v6701_v4, %v2319_v29  ;;  %v4709_v13 = vld [vmem:[%s7152_s6 + $0x68] sm:$0xff]   ;;  %v4712_v29 = vld [vmem:[%s7152_s6 + $0x60] sm:$0xff]  }
 0x681   : > { %v2349_v26 = vpack.c.bf16 %v2344_v59, %v2339_v17  ;;  %v2343_v37 = vmax.f32 %v6748_v28, %v2324_v19  ;;  %3701 = vmatpush3.bf16.msra.mxu1 %v4698_v55  ;;  %v2342_v43 = vmax.f32 %v6712_v24, %v2323_v36  ;;  %vm2753_vm12 = vcmp.lt.s32.totalorder %v2751_v45, 25  ;;  %v4710_v27 = vld [vmem:[%s7152_s6 + $0x28] sm:$0xff]   ;;  %v4711_v55 = vld [vmem:[%s7152_s6 + $0xa0] sm:$0xff]   ;;  %v4714_v19 = vld [vmem:[%s7152_s6 + $0x98] sm:$0xff]  }
 0x682   : > { %3702 = vmatprep.subr.bf16.mxu1 %v4700_v33  ;;  %v4713_v36 = vld [vmem:[%s7152_s6 + $0x20] sm:$0xff]  }
 0x683   : > { %3756 = vmatmul.mubr.msk.bf16.vlgmr.msra.gmra.mxu0 %vm2618_vm5, %v2349_v26  ;;  %v2348_v2 = vpack.c.bf16 %v2343_v37, %v2338_v40  ;;  %v2347_v30 = vpack.c.bf16 %v2342_v43, %v2337_v48  ;;  %v4716_v48 = vld [vmem:[%s7152_s6 + $0x18] sm:$0xff]   ;;  %v4717_v43 = vld [vmem:[%s7152_s6 + $0x90] sm:$0xff]   ;;  %vm2820_vm5 = vcmp.ge.s32.totalorder %v2751_v45, 100 }
 0x684   : > { %3714 = vmatpush3.bf16.msra.mxu0 %v4704_v42 }
 0x685   : > { %2701 = vmatprep.mubr.bf16.mxu1 %v2348_v2  ;;  %3703 = vmatpush3.bf16.msra.mxu1 %v4701_v35  ;;  %v4715_v35 = vld [vmem:[%s7152_s6 + $0x58] sm:$0xff]  }
 0x686   : > { %3239 = vmatprep.subr.bf16.mxu1 %v7322_v34  ;;  %3715 = vmatprep.subr.bf16.mxu0 %v4706_v52 }
 0x688   : > { %2702 = vmatmul.mubr.bf16.vlgmr.msra.gmra.mxu1 %v2347_v30  ;;  %3716 = vmatpush3.bf16.msra.mxu0 %v4707_v61 }
 0x689   : > { %3240 = vmatpush1.bf16.msra.mxu1 %v4702_v38  ;;  %3717 = vmatprep.subr.bf16.mxu0 %v4709_v13 }
 0x68a   : > { %3241 = vmatprep.subr.bf16.mxu1 %v7322_v34 }
 0x68c   : > { %3718 = vmatpush3.bf16.msra.mxu0 %v4710_v27 }
 0x68d   : > { %3242 = vmatpush1.bf16.msra.mxu1 %v4705_v22  ;;  %3719 = vmatprep.subr.bf16.mxu0 %v4712_v29  ;;  %v2984_v29 = vsub.s32 3, %v6820_v10 }
 0x68e   : > { %3243 = vmatprep.subr.bf16.mxu1 %v7322_v34 }
 0x690   : > { %3720 = vmatpush3.bf16.msra.mxu0 %v4713_v36  ;;  %v2972_v36 = vsub.s32 0, %v6820_v10 }
 0x691   : > { %3244 = vmatpush1.bf16.msra.mxu1 %v4708_v5  ;;  %3721 = vmatprep.subr.bf16.mxu0 %v4715_v35 }
 0x692   : > { %3245 = vmatprep.subr.bf16.mxu1 %v7322_v34 }
 0x694   : > { %3722 = vmatpush3.bf16.msra.mxu0 %v4716_v48 }
 0x695   : > { %3246 = vmatpush1.bf16.msra.mxu1 %v4711_v55 }
 0x696   : > { %3247 = vmatprep.subr.bf16.mxu1 %v7322_v34 }
 0x699   : > { %3248 = vmatpush1.bf16.msra.mxu1 %v4714_v19  ;;  %v2980_v19 = vsub.s32 2, %v6820_v10 }
 0x69a   : > { %3249 = vmatprep.subr.bf16.mxu1 %v7322_v34 }
 0x69d   : > { %3250 = vmatpush1.bf16.msra.mxu1 %v4717_v43 }
 0x69e   : > { %3251 = vmatprep.subr.bf16.mxu1 %v7322_v34 }
 0x728   : > { %v3682_v47 = vpop.f32.mrf.mxu1 }
 0x72a   : > { %v3683_v9 = vpop.f32.mrf.mxu1 }
 0x72b   : > { %v3684_v54 = vadd.f32 %v3683_v9, %v3682_v47  ;;  %v4718_v9 = vld [vmem:[%s7152_s6 + $0x50] sm:$0xff]  }
 0x72c   : > { %v3685_v41 = vpop.f32.mrf.mxu1  ;;  %3723 = vmatprep.subr.bf16.mxu0 %v4718_v9 }
 0x72e   : > { %v3686_v4 = vpop.f32.mrf.mxu1 }
 0x72f   : > { %v3687_v0 = vadd.f32 %v3686_v4, %v3685_v41  ;;  %v4719_v41 = vld [vmem:[%s7152_s6 + $0x10] sm:$0xff]   ;;  %v4721_v4 = vld [vmem:[%s7152_s6 + $0x48] sm:$0xff]  }
 0x730   : > { %3724 = vmatpush3.bf16.msra.mxu0 %v4719_v41  ;;  %v4729_v41 = vld [vmem:[%s7154_s8 + $0x28] sm:$0xff]  }
 0x731   : > { %3725 = vmatprep.subr.bf16.mxu0 %v4721_v4  ;;  %v4734_v4 = vld [vmem:[%s7154_s8] sm:$0xff]  }
 0x743   : > { %v2744_v28 = vpop.f32.mrf.mxu0 }
 0x745   : > { %v3757_v56 = vpop.f32.mrf.mxu0 }
 0x747   : > { %v2747_v14 = vpop.f32.mrf.mxu0 }
 0x748   : > { %v3704_v24 = vpop.f32.mrf.mxu1 }
 0x749   : > { %v3758_v32 = vpop.f32.mrf.mxu0 }
 0x74a   : > { %v3705_v44 = vpop.f32.mrf.mxu1 }
 0x74b   : > { %v3706_v3 = vadd.f32 %v3705_v44, %v3704_v24  ;;  %v4723_v24 = vld [vmem:[%s7152_s6 + $0x80] sm:$0xff]  }
 0x74c   : > { %v3707_v58 = vpop.f32.mrf.mxu1  ;;  %v4725_v44 = vld [vmem:[%s7152_s6] sm:$0xff]  }
 0x74d   : > { %v2704_v31 = vadd.f32 %v3706_v3, %v3684_v54  ;;  %v4726_v54 = vld [vmem:[%s7152_s6 + $0xc0] sm:$0xff]  }
 0x74e   : > { %v3708_v60 = vpop.f32.mrf.mxu1 }
 0x74f   : > { %v2745_v20 = vadd.f32 %v2744_v28, %v2704_v31  ;;  %v3709_v16 = vadd.f32 %v3708_v60, %v3707_v58  ;;  %v4720_v28 = vld [vmem:[%s7152_s6 + $0x88] sm:$0xff]  }
 0x750   : > { %3252 = vmatpush1.bf16.msra.mxu1 %v4720_v28  ;;  %v4730_v28 = vld [vmem:[%s7154_s8 + $0x20] sm:$0xff]  }
 0x751   : > { %v2763_v23 = vrot.slane %v2745_v20, %v6823_v15  ;;  %v2802_v46 = vcombine.high %v2745_v20, %v2745_v20  ;;  %v2707_v6 = vadd.f32 %v3709_v16, %v3687_v0  ;;  %2755 = vst.msk [vmem:[#allocation2] sm:$0x1] %vm2753_vm12, %v2745_v20  ;;  %3253 = vmatprep.subr.bf16.mxu1 %v7322_v34  ;;  %vm2821_vm12 = vcmp.lt.s32.totalorder %v2751_v45, 125 }
 0x752   : > { %vm2822_vm1 = vmand %vm2820_vm5, %vm2821_vm12  ;;  %vm6972_vm5 = vcmp.lt.s32.totalorder %v2751_v45, 122 }
 0x753   : > { %v2771_v51 = vrot.slane %v2763_v23, %v6823_v15  ;;  %v2764_v12 = vcombine.high %v2763_v23, %v2763_v23  ;;  %v2748_v50 = vadd.f32 %v2747_v14, %v2707_v6  ;;  %v2809_v21 = vrot.slane %v2802_v46, %v6823_v15  ;;  %v4722_v14 = vld [vmem:[%s7152_s6 + $0x8] sm:$0xff]  }
 0x754   : > { %3726 = vmatpush3.bf16.msra.mxu0 %v4722_v14  ;;  %3254 = vmatpush1.bf16.msra.mxu1 %v4723_v24  ;;  %v4735_v14 = vld [vmem:[%s7156_s10 + $0x28] ss:$0 sps:$4 sm:$0x33]  }
 0x755   : > { %v2786_v63 = vcombine.high %v2771_v51, %v2771_v51  ;;  %v2778_v49 = vrot.slane %v2764_v12, %v6823_v15  ;;  %v2864_v53 = vrot.slane %v2748_v50, %v6823_v15  ;;  %v2816_v25 = vrot.slane %v2809_v21, %v6823_v15  ;;  %3727 = vmatprep.subr.bf16.mxu0 %v4724_v39  ;;  %v4737_v39 = vld [vmem:[%s7156_s10 + $0x18] sm:$0xff]   ;;  %v4740_v12 = vld [vmem:[%s7156_s10] sm:$0xff]  }
 0x756   : > { %v2824_v11 = vcombine.high %v2809_v21, %v2809_v21  ;;  %v2912_v17 = vcombine.high %v2748_v50, %v2748_v50  ;;  %3269 = vmatprep.subr.bf16.mxu1 %v7322_v34 }
 0x757   : > { %2787 = vrot.lane.b32.xlu1 %v2786_v63, %s4841_s1  ;;  %2779 = vrot.lane.b32.xlu0 %v2778_v49, %s4842_s16  ;;  %v2794_v62 = vcombine.high %v2778_v49, %v2778_v49  ;;  %v2841_v59 = vcombine.high %v2816_v25, %v2816_v25  ;;  %v2871_v33 = vrot.slane %v2864_v53, %v6823_v15  ;;  %s4850_s16 = smov 119   ;;  %s4757_s1 = sshll.u32 %s4852_s28, 4  ;;  %s4758_s1 = int_to_ptr.vmem [resolvable:$false] %s4757_s1 }
 0x758   : > { %v2831_v18 = vrot.slane %v2824_v11, %v6823_v15  ;;  %v2879_v40 = vcombine.high %v2864_v53, %v2864_v53  ;;  %v2919_v26 = vrot.slane %v2912_v17, %v6823_v15  ;;  %3728 = vmatpush3.bf16.msra.mxu0 %v4725_v44  ;;  %3270 = vmatpush2.bf16.msra.mxu1 %v4726_v54  ;;  %v4738_v44 = vld [vmem:[%s7156_s10 + $0x10] sm:$0xff]  }
 0x759   : > { %v2894_v37 = vcombine.high %v2871_v33, %v2871_v33  ;;  %3759 = vmatprep.subr.bf16.mxu0 %v4838_v7  ;;  %3779 = vmatprep.subr.bf16.mxu1 %v4838_v7 }
 0x75a   : > { %v2934_v2 = vcombine.high %v2919_v26, %v2919_v26  ;;  %v2849_v30 = vcombine.high %v2831_v18, %v2831_v18  ;;  %v2886_v47 = vrot.slane %v2879_v40, %v6823_v15  ;;  %v2926_v8 = vrot.slane %v2919_v26, %v6823_v15 }
 0x75b   : > { %2817 = vrot.lane.b32.xlu0 %v2816_v25, %s4843_s30  ;;  %2795 = vrot.lane.b32.xlu1 %v2794_v62, %s4844_s0 }
 0x75c   : > { %v2904_v56 = vcombine.high %v2886_v47, %v2886_v47  ;;  %v2941_v57 = vrot.slane %v2934_v2, %v6823_v15  ;;  %v2949_v3 = vcombine.high %v2926_v8, %v2926_v8 }
 0x75e   : > { %v2957_v32 = vcombine.high %v2941_v57, %v2941_v57 }
 0x75f   : > { %2832 = vrot.lane.b32.xlu0 %v2831_v18, %s7334_s23  ;;  %2842 = vrot.lane.b32.xlu1 %v2841_v59, %s4845_s20  ;;  %s4848_s23 = smov 19   ;;  %s4849_s20 = smov 44  }
 0x763   : > { %2872 = vrot.lane.b32.xlu0 %v2871_v33, %s4846_s17  ;;  %2895 = vrot.lane.b32.xlu1 %v2894_v37, %s4835_s26  ;;  %s4847_s26 = smov 47   ;;  %s4851_s17 = smov 69   ;;  %v2976_v33 = vsub.s32 1, %v6820_v10  ;;  %v4728_v10 = vld [vmem:[%s7154_s8 + $0x30] sm:$0xff]  }
 0x767   : > { %2850 = vrot.lane.b32.xlu0 %v2849_v30, %s4847_s26  ;;  %2887 = vrot.lane.b32.xlu1 %v2886_v47, %s7243_s18  ;;  %s3662_s18 = sshll.u32 %s4939_s25, 4  ;;  %s3496_s26 = scalar_lea.sflag [#allocation4], %s404_s19 }
 0x768   : > { %s3506_s30 = scalar_lea.hbm %s7158_s12, %s3662_s18  ;;  %s4759_s25 = scalar_lea.vmem %s4758_s1, 32 }
 0x76b   : > { %2905 = vrot.lane.b32.xlu0 %v2904_v56, %s4848_s23  ;;  %2927 = vrot.lane.b32.xlu1 %v2926_v8, %s4849_s20  ;;  %s7335_s20 = smov 94   ;;  %v4731_v56 = vld [vmem:[%s7154_s8 + $0x18] sm:$0xff]   ;;  %v4732_v8 = vld [vmem:[%s7154_s8 + $0x10] sm:$0xff]   ;;  %s3508_s23 = sshll.u32 %s405_s15, 4  ;;  %s3509_s23 = int_to_ptr.vmem [resolvable:$true] %s3508_s23 }
 0x76c   : > { %s4753_s0 = scalar_lea.vmem %s3509_s23, 16  ;;  %p4760_p0 = scmp.lt.s32.totalorder %s3509_s23, %s4758_s1 }
 0x76d   : > { %p4754_p11 = scmp.ne.s32.totalorder %s3509_s23, %s4753_s0  ;;  %p4761_p1 = scmp.lt.s32.totalorder %s4759_s25, %s4753_s0 }
 0x76f   : > { %2958 = vrot.lane.b32.xlu0 %v2957_v32, %s4850_s16  ;;  %2942 = vrot.lane.b32.xlu1 %v2941_v57, %s4851_s17  ;;  %v4733_v57 = vld [vmem:[%s7154_s8 + $0x8] sm:$0xff]   ;;  %v4736_v32 = vld [vmem:[%s7156_s10 + $0x20] sm:$0xff]   ;;  %p4755_p12 = pnand %p4754_p11, %p4956_p5  ;;  %p4762_p2 = por %p4761_p1, %p4760_p0 }
 0x771   : > { %p4756_p13 = pneg %p4755_p12 }
 0x773   : > { %2950 = vrot.lane.b32.xlu0 %v2949_v3, %s7335_s20  ;;  %p4763_p3 = pnand %p4762_p2, %p4756_p13 }
 0x7c9   : > { %v2788_v34 = vpop.permute.xlu1 %2787  ;;  %v2780_v58 = vpop.permute.xlu0 %2779 }
 0x7ca   : > { %2785 = vst.msk [vmem:[#allocation2] sm:$0x1] %vm2784_vm0, %v2780_v58  ;;  %vm2839_vm0 = vmand %vm2837_vm4, %vm2838_vm11  ;;  %vm6981_vm4 = vcmp.ge.s32.totalorder %v2751_v45, 122  ;;  %vm6986_vm11 = vcmp.lt.s32.totalorder %v2751_v45, 147 }
 0x7cb   : > { %2793 = vst.msk [vmem:[#allocation2] sm:$0x1] %vm2792_vm3, %v2788_v34  ;;  %vm2847_vm3 = vmand %vm6938_vm13, %vm2846_vm14  ;;  %vm6995_vm14 = vcmp.ge.s32.totalorder %v2751_v45, 19  ;;  %v3044_v34 = vld [vmem:[%s7153_s7] sm:$0x1] }
 0x7cd   : > { %v2818_v31 = vpop.permute.xlu0 %2817  ;;  %v2796_v15 = vpop.permute.xlu1 %2795 }
 0x7ce   : > { %2801 = vst.msk [vmem:[#allocation2] sm:$0x1] %vm2800_vm10, %v2796_v15  ;;  %vm6952_vm10 = vcmp.lt.s32.totalorder %v2751_v45, 72 }
 0x7cf   : > { %2823 = vst.msk [vmem:[#allocation2] sm:$0x1] %vm2822_vm1, %v2818_v31  ;;  %vm6947_vm1 = vcmp.ge.s32.totalorder %v2751_v45, 47 }
 0x7d0   : > { %vm2855_vm12 = vmand %vm6947_vm1, %vm6952_vm10  ;;  %vm7009_vm1 = vcmp.ge.s32.totalorder %v2751_v45, 44  ;;  %vm2931_vm10 = vcmp.lt.s32.totalorder %v2751_v45, 69 }
 0x7d1   : > { %v2833_v0 = vpop.permute.xlu0 %2832  ;;  %v2843_v20 = vpop.permute.xlu1 %2842 }
 0x7d2   : > { %v2834_v16 = vrot.slane %v2833_v0, 7 }
 0x7d4   : > { %v2835_v38 = vsel %vm497_vm6, %v2834_v16, %v2833_v0  ;;  %vm6962_vm6 = vcmp.lt.s32.totalorder %v2751_v45, 97 }
 0x7d5   : > { %2840 = vst.msk [vmem:[#allocation2] sm:$0x3] %vm2839_vm0, %v2835_v38  ;;  %v2873_v6 = vpop.permute.xlu0 %2872  ;;  %v2896_v51 = vpop.permute.xlu1 %2895  ;;  %vm2877_vm13 = vmand %vm6957_vm9, %vm6962_vm6  ;;  %vm7000_vm0 = vcmp.lt.s32.totalorder %v2751_v45, 44 }
 0x7d6   : > { %2848 = vst.msk [vmem:[#allocation2 + $0x1] sm:$0x1] %vm2847_vm3, %v2843_v20  ;;  %v2897_v42 = vrot.slane %v2896_v51, 7  ;;  %vm2892_vm3 = vmand %vm6967_vm8, %vm6972_vm5  ;;  %vm7026_vm5 = vcmp.ge.s32.totalorder %v2751_v45, 69 }
 0x7d7   : > { %vm2902_vm9 = vmand %vm6981_vm4, %vm6986_vm11  ;;  %vm2954_vm11 = vcmp.lt.s32.totalorder %v2751_v45, 119 }
 0x7d8   : > { %vm2910_vm6 = vmand %vm6995_vm14, %vm7000_vm0  ;;  %v2898_v25 = vsel %vm1617_vm7, %v2897_v42, %v2896_v51  ;;  %vm2953_vm7 = vcmp.ge.s32.totalorder %v2751_v45, 94  ;;  %vm2965_vm14 = vcmp.lt.s32.totalorder %v2751_v45, 144  ;;  %vm2961_vm0 = vcmask 973824   ;;  %v4739_v51 = vld [vmem:[%s7156_s10 + $0x8] sm:$0xff]  }
 0x7d9   : > { %v2851_v61 = vpop.permute.xlu0 %2850  ;;  %v2888_v5 = vpop.permute.xlu1 %2887  ;;  %vm2932_vm8 = vmand %vm7009_vm1, %vm2931_vm10  ;;  %vm3195_vm10 = vcmask 130048  }
 0x7da   : > { %2856 = vst.msk [vmem:[#allocation2 + $0x1] sm:$0x1] %vm2855_vm12, %v2851_v61  ;;  %vm2946_vm12 = vcmp.lt.s32.totalorder %v2751_v45, 94 }
 0x7db   : > { %2878 = vst.msk [vmem:[#allocation2 + $0x1] sm:$0x1] %vm2877_vm13, %v2873_v6  ;;  %vm2947_vm4 = vmand %vm7026_vm5, %vm2946_vm12  ;;  %vm2964_vm13 = vcmp.ge.s32.totalorder %v2751_v45, 119  ;;  %v4727_v45 = vld [vmem:[%s7154_s8 + $0x38] ss:$0 sps:$4 sm:$0xff]  }
 0x7dc   : > { %2893 = vst.msk [vmem:[#allocation2 + $0x1] sm:$0x1] %vm2892_vm3, %v2888_v5  ;;  %vm2955_vm3 = vmand %vm2953_vm7, %vm2954_vm11  ;;  %v3346_v9 = vsel %vm1290_vm2, %v4727_v45, 0  ;;  %vm3439_vm2 = vcmask 1041408  }
 0x7dd   : > { %v2906_v11 = vpop.permute.xlu0 %2905  ;;  %2903 = vst.msk [vmem:[#allocation2 + $0x1] sm:$0x3] %vm2902_vm9, %v2898_v25  ;;  %v2928_v13 = vpop.permute.xlu1 %2927  ;;  %vm2966_vm1 = vmand %vm2964_vm13, %vm2965_vm14  ;;  %v3441_v24 = vsel %vm3439_vm2, %v4735_v14, 0  ;;  %vm3435_vm9 = vcmask 687104  }
 0x7de   : > { %2911 = vst.msk [vmem:[#allocation2 + $0x2] sm:$0x1] %vm2910_vm6, %v2906_v11  ;;  %vm7363_vm6 = vcmask 1040384  }
 0x7df   : > { %2933 = vst.msk [vmem:[#allocation2 + $0x2] sm:$0x1] %vm2932_vm8, %v2928_v13  ;;  %vm7364_vm8 = vmmov %vm7363_vm6 }
 0x7e1   : > { %v2959_v27 = vpop.permute.xlu0 %2958  ;;  %v2943_v55 = vpop.permute.xlu1 %2942 }
 0x7e2   : > { %v2960_v17 = vrot.slane %v2959_v27, 7  ;;  %2948 = vst.msk [vmem:[#allocation2 + $0x2] sm:$0x1] %vm2947_vm4, %v2943_v55 }
 0x7e4   : > { %v2962_v59 = vsel %vm2961_vm0, %v2960_v17, %v2959_v27 }
 0x7e5   : > { %v2951_v18 = vpop.permute.xlu0 %2950 }
 0x7e6   : > { %2956 = vst.msk [vmem:[#allocation2 + $0x2] sm:$0x1] %vm2955_vm3, %v2951_v18 }
 0x7e7   : > { %2967 = vst.msk [vmem:[#allocation2 + $0x2] sm:$0x3] %vm2966_vm1, %v2962_v59 }
 0x7ee   : > { %v2968_v40 = vld [vmem:[#allocation2] sm:$0xf] }
 0x7ef   : > { %v2977_v26 = vrot.slane %v2968_v40, %v2976_v33  ;;  %v2985_v37 = vrot.slane %v2968_v40, %v2984_v29  ;;  %v2973_v35 = vrot.slane %v2968_v40, %v2972_v36  ;;  %v2981_v48 = vrot.slane %v2968_v40, %v2980_v19 }
 0x7f1   : > { %v2991_v43 = vpack.c.bf16 %v2977_v26, %v2977_v26  ;;  %v2993_v2 = vpack.c.bf16 %v2985_v37, %v2985_v37  ;;  %v2990_v30 = vpack.c.bf16 %v2973_v35, %v2973_v35  ;;  %v2992_v47 = vpack.c.bf16 %v2981_v48, %v2981_v48 }
 0x7f3   : > { %3231 = vmatprep.mubr.bf16.mxu0 %v2991_v43  ;;  %3645 = vmatprep.mubr.msk.bf16.mxu1 %vm3195_vm10, %v2993_v2 }
 0x7f4   : > { %3232 = vmatmul.mubr.bf16.vlgmr.msra.gmra.mxu0 %v2990_v30  ;;  %3272 = vmatmul.mubr.bf16.vlgmr.msra.gmra.mxu1 %v2992_v47 }
 0x7f5   : > { %3760 = vmatpush3.bf16.msra.mxu0 %v3346_v9  ;;  %3775 = vmatprep.mubr.msk.bf16.mxu0 %vm4839_vm15, %v4838_v7 }
 0x7f6   : > { %3761 = vmatprep.subr.bf16.mxu0 %v4838_v7  ;;  %3791 = vmatprep.mubr.msk.bf16.mxu1 %vm4839_vm15, %v4838_v7  ;;  %vm7362_vm15 = vcmask 982016  }
 0x7f7   : > { %3780 = vmatpush3.bf16.msra.mxu1 %v3441_v24 }
 0x7f8   : > { %3781 = vmatprep.subr.bf16.mxu1 %v4838_v7 }
 0x7f9   : > { %3762 = vmatpush3.bf16.msra.mxu0 %v4728_v10 }
 0x7fa   : > { %3763 = vmatprep.subr.bf16.mxu0 %v4838_v7 }
 0x7fb   : > { %3782 = vmatpush3.bf16.msra.mxu1 %v4736_v32 }
 0x7fc   : > { %3783 = vmatprep.subr.bf16.mxu1 %v4838_v7 }
 0x7fd   : > { %3764 = vmatpush3.bf16.msra.mxu0 %v4729_v41 }
 0x7fe   : > { %3765 = vmatprep.subr.bf16.mxu0 %v4838_v7 }
 0x7ff   : > { %3784 = vmatpush3.bf16.msra.mxu1 %v4737_v39 }
 0x800   : > { %3785 = vmatprep.subr.bf16.mxu1 %v4838_v7 }
 0x801   : > { %3766 = vmatpush3.bf16.msra.mxu0 %v4730_v28 }
 0x802   : > { %3767 = vmatprep.subr.bf16.mxu0 %v4838_v7 }
 0x803   : > { %3786 = vmatpush3.bf16.msra.mxu1 %v4738_v44 }
 0x804   : > { %3787 = vmatprep.subr.bf16.mxu1 %v4838_v7 }
 0x805   : > { %3768 = vmatpush3.bf16.msra.mxu0 %v4731_v56 }
 0x806   : > { %3769 = vmatprep.subr.bf16.mxu0 %v4838_v7 }
 0x807   : > { %3788 = vmatpush3.bf16.msra.mxu1 %v4739_v51 }
 0x808   : > { %3789 = vmatprep.subr.bf16.mxu1 %v4838_v7 }
 0x809   : > { %3770 = vmatpush3.bf16.msra.mxu0 %v4732_v8 }
 0x80a   : > { %3771 = vmatprep.subr.bf16.mxu0 %v4838_v7 }
 0x80b   : > { %3790 = vmatpush3.bf16.msra.mxu1 %v4740_v12 }
 0x80d   : > { %3772 = vmatpush3.bf16.msra.mxu0 %v4733_v57 }
 0x80e   : > { %3773 = vmatprep.subr.bf16.mxu0 %v4838_v7  ;;  %v3401_v7 = vld [vmem:[%s7157_s11] sm:$0x1] }
 0x811   : > { %3774 = vmatpush3.bf16.msra.mxu0 %v4734_v4 }
 0x8b4   : > { %v3729_v54 = vpop.f32.mrf.mxu0  ;;  %v3273_v3 = vpop.f32.mrf.mxu1 }
 0x8b6   : > { %v3730_v58 = vpop.f32.mrf.mxu0  ;;  %v3275_v31 = vpop.f32.mrf.mxu1 }
 0x8b7   : > { %v3731_v15 = vadd.f32 %v3730_v58, %v3729_v54 }
 0x8b8   : > { %v3732_v60 = vpop.f32.mrf.mxu0  ;;  %v3276_v0 = vpop.f32.mrf.mxu1 }
 0x8b9   : > { %v3234_v20 = vadd.f32 %v3731_v15, %v3044_v34 }
 0x8ba   : > { %v3733_v16 = vpop.f32.mrf.mxu0  ;;  %v3277_v38 = vpop.f32.mrf.mxu1 }
 0x8bb   : > { %v3274_v23 = vadd.f32 %v3273_v3, %v3234_v20 }
 0x8bd   : > { %v3279_v46 = vmax.f32 %v3274_v23, 0.0 }
 0x8bf   : > { %v3280_v6 = vpack.c.bf16 %v3279_v46, %v3279_v46 }
 0x8c1   : > { %3776 = vmatmul.mubr.msk.bf16.vlgmr.msra.gmra.mxu0 %vm7362_vm15, %v3280_v6 }
 0x981   : > { %v3382_v50 = vpop.f32.mrf.mxu0 }
 0x982   : > { %v3383_v63 = vadd.f32 %v3382_v50, %v3296_v1 }
 0x983   : > { %v3777_v49 = vpop.f32.mrf.mxu0 }
 0x984   : > { %v3388_v21 = vmax.f32 %v3383_v63, 0.0 }
 0x985   : > { %v3385_v42 = vpop.f32.mrf.mxu0 }
 0x986   : > { %v3389_v22 = vpack.c.bf16 %v3388_v21, %v3388_v21 }
 0x987   : > { %v3778_v52 = vpop.f32.mrf.mxu0 }
 0x988   : > { %3792 = vmatmul.mubr.msk.bf16.vlgmr.msra.gmra.mxu1 %vm3435_vm9, %v3389_v22 }
 0xa48   : > { %v3477_v61 = vpop.f32.mrf.mxu1 }
 0xa49   : > { %v3478_v5 = vadd.f32 %v3477_v61, %v3401_v7 }
 0xa4a   : > { %v3793_v53 = vpop.f32.mrf.mxu1 }
 0xa4b   : > { %v3483_v25 = vsel %vm7363_vm6, %v3478_v5, -inf }
 0xa4c   : > { %3484 = vmax.xlane.f32.xlu1 %v3483_v25  ;;  %v3480_v62 = vpop.f32.mrf.mxu1 }
 0xa4e   : > { %v3794_v11 = vpop.f32.mrf.mxu1 }
 0xad5   : > { %v3485_v13 = vpop.xlane.xlu1 %3484 }
 0xad6   : > { %v3486_v27 = vsub.f32 %v3478_v5, %v3485_v13 }
 0xad8   : > { %v3487_v55 = vmul.f32 1.442695, %v3486_v27 }
 0xada   : > { %4741 = vpow2.f32 %v3487_v55 }
 0xae7   : > { %v4742_v17 = vpop.eup %4741 }
 0xae8   : > { %v3489_v18 = vsel %vm7364_vm8, %v4742_v17, 0.0 }
 0xae9   : > { %3490 = vadd.xlane.f32.xlu0 %v3489_v18 }
 0xb72   : > { %v3491_v59 = vpop.xlane.xlu0 %3490 }
 0xb73   : > { %4743 = vrcp.f32 %v3491_v59 }
 0xb80   : > { %v4744_v33 = vpop.eup %4743 }
 0xb81   : > { %v3493_v29 = vmul.f32 %v4744_v33, %v4742_v17 }
 0xb83   : > { %3494 = vst [vmem:[%s405_s15] sm:$0x1] %v3493_v29 }
 0xb84   : > { %4766 = shalt.err (!%p4763_p3)
}
 0xb85   : > { %s4767_s16 = scalar_lea.hbm %s3506_s30, 16  ;;  %s4771_s18 = scalar_lea.hbm %s7158_s12, 32 }
 0xb86   : > { %p4768_p4 = scmp.ne.s32.totalorder %s3506_s30, %s4767_s16  ;;  %p4772_p9 = scmp.lt.s32.totalorder %s3506_s30, %s7158_s12 }
 0xb87   : > { %p4773_p10 = scmp.lt.s32.totalorder %s4771_s18, %s4767_s16 }
 0xb88   : > { %p4769_p7 = pnand %p4768_p4, %p4956_p5 }
 0xb89   : > { %p4774_p11 = por %p4773_p10, %p4772_p9 }
 0xb8a   : > { %p4770_p8 = pneg %p4769_p7 }
 0xb8c   : > { %p4775_p12 = pnand %p4774_p11, %p4770_p8 }
 0xb8e   : > { %4778 = shalt.err (!%p4775_p12)
}
 0xb8f   : > { %3795 = dma.vmem_to_hbm [thread:$0]  (%p4956_p5), %s3509_s23, 16, %s3506_s30, %s3496_s26  }
 0xb90 PF: > { %p3801_p13 = scmp.ge.s32.totalorder %s4813_s24, 2  ;;  %s3520_s29 = sand.u32 1, %s4801_s21  }
 0xb91   : > { %s3521_s0 = scalar_lea.sflag [#allocation4], %s3520_s29 }
 0xb92   : > { %p3798_p0 = pnand %p3801_p13, %p4960_p6 }
 0xb94   : > { %p3799_p1 = pneg %p3798_p0 }
 0xb96   : > { %4796 = dma.done.wait (%p3799_p1), %s3521_s0, 16  }
 0xb97   : > { %4798 = vsyncadd (%p3799_p1), %s3521_s0, 4294967280  ;;  %s7365_s28 = sld [smem:[#allocation6_spill]]  ;;  %p22_p2 = scmp.ge.s32.totalorder %s4943_s27, 4  }
 0xb98   : > { %s7366_s23 = sld [smem:[#allocation7_spill]]  ;;  %s7367_s21 = smov %s4805_s22 }
 0xb99   : > { %s7369_s24 = smov %s4943_s27  ;;  %24 = sbr.rel (!%p22_p2) target bundleno = 6 (0x6), region = 103 }
 0xb9d   : > { %s7368_s22 = smov %s7365_s28 }
 0xb9e   :  { %3525 = vsyncpa [#allocation4], 1 }
 0xb9f   :  { %3527 = vsyncpa [#allocation4 + $0x1], 1 }

</bundles_post_ra>
